<compile_context>
chip_gen: v5e
topology: v5e:2x2
jax: 0.10.0
libtpu: 0.0.40
codegen_flags: <defaults>
</compile_context>

<pallas_src>
import numpy as np
import jax
import jax.numpy as jnp
from jax.experimental import pallas as pl
from jax.experimental.pallas import tpu as pltpu

_EPS = 1e-5
_BF16 = jnp.bfloat16


# -----------------------------------------------------------------------------
# Host-built constant 0/1 gather matrices: a static spatial gather (shift +
# zero-pad + stride-2 pool-offset selection) on the flattened spatial lane axis
# is just a matmul against a 0/1 matrix.
# -----------------------------------------------------------------------------
def _gather_matrix(in_h, in_w, out_h, out_w, stride, off_h, off_w, pad):
  """(in_h*in_w, 9*out_h*out_w) 0/1 matrix G.

  (C, in_h*in_w) @ G yields, for tap t = 3*dy+dx and output position (i, j),
  the input value at (stride*i + off_h + dy - pad, stride*j + off_w + dx - pad)
  or 0 when that index falls in the zero padding.
  """
  g = np.zeros((in_h * in_w, 9 * out_h * out_w), np.float32)
  for dy in range(3):
    for dx in range(3):
      t = dy * 3 + dx
      for i in range(out_h):
        hi = stride * i + off_h + dy - pad
        if hi < 0 or hi >= in_h:
          continue
        for j in range(out_w):
          wi = stride * j + off_w + dx - pad
          if wi < 0 or wi >= in_w:
            continue
          g[hi * in_w + wi, t * out_h * out_w + i * out_w + j] = 1.0
  return g


# conv2 (3x3, pad 1, on the pooled 14x14 map) fused with its 2x2 maxpool:
# one gather per pool offset (A, B).  conv3 (3x3, pad 0, on 7x7): one gather.
_G2 = np.stack([_gather_matrix(14, 14, 7, 7, 2, a, b, 1)
                for a in (0, 1) for b in (0, 1)])          # (4, 196, 441)
_G3 = _gather_matrix(7, 7, 5, 5, 1, 0, 0, 0)               # (49, 225)


# -----------------------------------------------------------------------------
# Fused kernel: one grid step == one input image.
# -----------------------------------------------------------------------------
def _siamese_kernel(x1_ref, w1_ref, s1_ref, t1_ref,
                    g2_ref, w2_ref, s2_ref, t2_ref,
                    g3_ref, w3_ref, s3_ref, t3_ref,
                    w4_ref, s4_ref, t4_ref, w5_ref, b5_ref, o_ref):
  f32 = jnp.float32

  # ---- block 1: conv1 (3x3 pad 1) + bn1 + maxpool2 --------------------------
  # Host supplies the conv1 im2col already split into the 4 pool offsets, so
  # the 2x2 maxpool is an elementwise max of 4 matmul outputs.
  w1 = w1_ref[...]                         # (32, 9)   bf16
  s1, t1 = s1_ref[...], t1_ref[...]        # (32, 1)   f32
  p1 = None
  for ab in range(4):
    y = jnp.dot(w1, x1_ref[0, ab], preferred_element_type=f32)   # (32, 196)
    y = y * s1 + t1
    p1 = y if p1 is None else jnp.maximum(p1, y)
  p1 = p1.astype(_BF16)                    # pooled 14x14 map, flat on lanes

  # ---- block 2: conv2 (3x3 pad 1) + bn2 + maxpool2 --------------------------
  # Lane gather (shift/pad/pool-offset) via 0/1 matmul, then taps stacked on
  # the sublane axis -> a single K = 9*32 conv matmul per pool offset.
  w2 = w2_ref[...]                         # (64, 288) bf16
  s2, t2 = s2_ref[...], t2_ref[...]        # (64, 1)   f32
  p2 = None
  for ab in range(4):
    g = jnp.dot(p1, g2_ref[ab], preferred_element_type=f32)      # (32, 441)
    m = jnp.concatenate([g[:, t * 49:(t + 1) * 49] for t in range(9)], axis=0)
    y = jnp.dot(w2, m.astype(_BF16), preferred_element_type=f32)  # (64, 49)
    y = y * s2 + t2
    p2 = y if p2 is None else jnp.maximum(p2, y)
  p2 = p2.astype(_BF16)                    # pooled 7x7 map, flat on lanes

  # ---- block 3: conv3 (3x3 pad 0) + bn3 + avgpool 5x5 -----------------------
  g = jnp.dot(p2, g3_ref[...], preferred_element_type=f32)        # (64, 225)
  m = jnp.concatenate([g[:, t * 25:(t + 1) * 25] for t in range(9)], axis=0)
  y3 = jnp.dot(w3_ref[...], m.astype(_BF16),
               preferred_element_type=f32)                        # (128, 25)
  y3 = y3 * s3_ref[...] + t3_ref[...]
  feat = jnp.sum(y3, axis=1, keepdims=True) * (1.0 / 25.0)        # (128, 1)

  # ---- head: fc4 + bn4 + fc5 (column-vector orientation) --------------------
  h = jnp.dot(w4_ref[...], feat.astype(_BF16),
              preferred_element_type=f32)                         # (64, 1)
  h = h * s4_ref[...] + t4_ref[...]
  out = jnp.dot(w5_ref[...], h.astype(_BF16),
                preferred_element_type=f32) + b5_ref[...]         # (2, 1)
  o_ref[0] = out.astype(o_ref.dtype)


def _fused_forward(x1, w1, s1, t1, g2, w2, s2, t2, g3, w3, s3, t3,
                   w4, s4, t4, w5, b5):
  n = x1.shape[0]
  consts = (w1, s1, t1, g2, w2, s2, t2, g3, w3, s3, t3, w4, s4, t4, w5, b5)

  def _const_spec(a):
    rank = a.ndim
    return pl.BlockSpec(a.shape, lambda i, _r=rank: (0,) * _r)

  out = pl.pallas_call(
      _siamese_kernel,
      out_shape=jax.ShapeDtypeStruct((n, 2, 1), jnp.float32),
      grid=(n,),
      in_specs=[pl.BlockSpec((1,) + x1.shape[1:], lambda i: (i, 0, 0, 0))]
               + [_const_spec(a) for a in consts],
      out_specs=pl.BlockSpec((1, 2, 1), lambda i: (i, 0, 0)),
      compiler_params=pltpu.CompilerParams(
          dimension_semantics=("parallel",)),   # batch split across v7x cores
  )(x1, *consts)
  return out[:, :, 0]


# -----------------------------------------------------------------------------
# Host-side prep (pure layout / folding glue).
# -----------------------------------------------------------------------------
def _fold_bn(bias, bn):
  s = bn["gamma"] / jnp.sqrt(bn["var"] + _EPS)
  return s, bn["beta"] + (bias - bn["mean"]) * s


def _conv1_im2col(x):
  """(N,1,28,28) -> (N,4,9,196): for pool offset (a,b) and tap (dy,dx), the
  padded-input values feeding conv1 output position (2*ho+a, 2*wo+b)."""
  n = x.shape[0]
  xp = jnp.pad(x[:, 0], ((0, 0), (1, 1), (1, 1)))            # (N, 30, 30)
  subsets = []
  for a in (0, 1):
    for b in (0, 1):
      taps = [xp[:, a + dy:a + dy + 27:2, b + dx:b + dx + 27:2].reshape(n, 196)
              for dy in range(3) for dx in range(3)]
      subsets.append(jnp.stack(taps, axis=1))                # (N, 9, 196)
  return jnp.stack(subsets, axis=1).astype(_BF16)            # (N, 4, 9, 196)


@jax.jit
def siamese_forward(params, x_nchw):
  x1 = _conv1_im2col(x_nchw)

  s1, t1 = _fold_bn(params["c1_b"], params["bn1"])
  s2, t2 = _fold_bn(params["c2_b"], params["bn2"])
  s3, t3 = _fold_bn(params["c3_b"], params["bn3"])
  s4, t4 = _fold_bn(params["fc4_b"], params["bn4"])

  # Tap-stacked weights: column index = (3*dy + dx) * Cin + cin.
  w1 = params["c1_w"].reshape(32, 9).astype(_BF16)
  w2 = params["c2_w"].transpose(0, 2, 3, 1).reshape(64, 9 * 32).astype(_BF16)
  w3 = params["c3_w"].transpose(0, 2, 3, 1).reshape(128, 9 * 64).astype(_BF16)
  w4 = params["fc4_w"].astype(_BF16)                         # (64, 128)
  w5 = params["fc5_w"].astype(_BF16)                         # (2, 64)

  g2 = jnp.asarray(_G2, _BF16)
  g3 = jnp.asarray(_G3, _BF16)

  return _fused_forward(
      x1, w1, s1[:, None], t1[:, None],
      g2, w2, s2[:, None], t2[:, None],
      g3, w3, s3[:, None], t3[:, None],
      w4, s4[:, None], t4[:, None],
      w5, params["fc5_b"][:, None])


# -----------------------------------------------------------------------------
# Plain-XLA f32 reference (eval-mode BN), used for a loose numeric check.
# -----------------------------------------------------------------------------
@jax.jit
def _reference_forward(params, x):
  def conv(x, w, b, pad):
    y = jax.lax.conv_general_dilated(
        x, w, (1, 1), [(pad, pad), (pad, pad)],
        dimension_numbers=("NCHW", "OIHW", "NCHW"))
    return y + b[None, :, None, None]

  def bn2d(x, p):
    s = p["gamma"] / jnp.sqrt(p["var"] + _EPS)
    return (x - p["mean"][None, :, None, None]) * s[None, :, None, None] \
        + p["beta"][None, :, None, None]

  def maxpool2(x):
    return jax.lax.reduce_window(x, -jnp.inf, jax.lax.max,
                                 (1, 1, 2, 2), (1, 1, 2, 2), "VALID")

  h = maxpool2(bn2d(conv(x, params["c1_w"], params["c1_b"], 1), params["bn1"]))
  h = maxpool2(bn2d(conv(h, params["c2_w"], params["c2_b"], 1), params["bn2"]))
  h = bn2d(conv(h, params["c3_w"], params["c3_b"], 0), params["bn3"])
  h = jnp.mean(h, axis=(2, 3))                       # avg_pool2d(5) on 5x5
  h = h @ params["fc4_w"].T + params["fc4_b"]
  s4 = params["bn4"]["gamma"] / jnp.sqrt(params["bn4"]["var"] + _EPS)
  h = (h - params["bn4"]["mean"]) * s4 + params["bn4"]["beta"]
  return h @ params["fc5_w"].T + params["fc5_b"]


# -----------------------------------------------------------------------------
# Deterministic parameter init (shapes from Siamese.__init__)
# -----------------------------------------------------------------------------
def init_params(key):
  keys = iter(jax.random.split(key, 32))

  def nrm(shape, scale=0.1):
    return scale * jax.random.normal(next(keys), shape, dtype=jnp.float32)

  def bn_params(c):
    return {
        "gamma": 1.0 + nrm((c,)),
        "beta": nrm((c,)),
        "mean": nrm((c,)),
        "var": jax.random.uniform(next(keys), (c,), dtype=jnp.float32,
                                  minval=0.5, maxval=1.5),
    }

  return {
      "c1_w": nrm((32, 1, 3, 3)), "c1_b": nrm((32,)), "bn1": bn_params(32),
      "c2_w": nrm((64, 32, 3, 3)), "c2_b": nrm((64,)), "bn2": bn_params(64),
      "c3_w": nrm((128, 64, 3, 3)), "c3_b": nrm((128,)), "bn3": bn_params(128),
      "fc4_w": nrm((64, 128)), "fc4_b": nrm((64,)), "bn4": bn_params(64),
      "fc5_w": nrm((2, 64)), "fc5_b": nrm((2,)),
  }


if __name__ == "__main__":
  root = jax.random.PRNGKey(0)
  pkey, xkey = jax.random.split(root)
  params = init_params(pkey)
  # MNIST-style Siamese branch input, NCHW like PyTorch: (batch=2, 1, 28, 28).
  x = jax.random.normal(xkey, (2, 1, 28, 28), dtype=jnp.float32)

  out = siamese_forward(params, x)
  out = jax.block_until_ready(out)
  assert out.shape == (2, 2) and out.dtype == jnp.float32

  # Loose check vs. f32 XLA reference (kernel matmuls run in bf16).
  ref = _reference_forward(params, x)
  err = float(jnp.max(jnp.abs(out - ref)))
  tol = 0.1 * (float(jnp.max(jnp.abs(ref))) + 1.0)
  assert err <= tol, f"kernel/reference mismatch: max_abs_err={err} tol={tol}"

  print("KERNEL_OK")
</pallas_src>

<mosaic_0001>
module attributes {stable_mosaic.version = 11 : i64} {
  func.func @_siamese_kernel(%arg0: i32, %arg1: memref<1x4x9x196xbf16, #tpu.memory_space<vmem>>, %arg2: memref<32x9xbf16, #tpu.memory_space<vmem>>, %arg3: memref<32x1xf32, #tpu.memory_space<vmem>>, %arg4: memref<32x1xf32, #tpu.memory_space<vmem>>, %arg5: memref<4x196x441xbf16, #tpu.memory_space<vmem>>, %arg6: memref<64x288xbf16, #tpu.memory_space<vmem>>, %arg7: memref<64x1xf32, #tpu.memory_space<vmem>>, %arg8: memref<64x1xf32, #tpu.memory_space<vmem>>, %arg9: memref<49x225xbf16, #tpu.memory_space<vmem>>, %arg10: memref<128x576xbf16, #tpu.memory_space<vmem>>, %arg11: memref<128x1xf32, #tpu.memory_space<vmem>>, %arg12: memref<128x1xf32, #tpu.memory_space<vmem>>, %arg13: memref<64x128xbf16, #tpu.memory_space<vmem>>, %arg14: memref<64x1xf32, #tpu.memory_space<vmem>>, %arg15: memref<64x1xf32, #tpu.memory_space<vmem>>, %arg16: memref<2x64xbf16, #tpu.memory_space<vmem>>, %arg17: memref<2x1xf32, #tpu.memory_space<vmem>>, %arg18: memref<1x2x1xf32, #tpu.memory_space<vmem>>) attributes {dimension_semantics = [#tpu.dimension_semantics<parallel>], iteration_bounds = array<i64: 2>, scalar_prefetch = 0 : i64, scratch_operands = 0 : i64, tpu.core_type = #tpu.core_type<tc>, window_params = [{transform_indices = @transform_0, window_bounds = array<i64: 1, 4, 9, 196>}, {pipeline_mode = #tpu.pipeline_mode<synchronous>, transform_indices = @transform_1, window_bounds = array<i64: 32, 9>}, {pipeline_mode = #tpu.pipeline_mode<synchronous>, transform_indices = @transform_2, window_bounds = array<i64: 32, 1>}, {pipeline_mode = #tpu.pipeline_mode<synchronous>, transform_indices = @transform_3, window_bounds = array<i64: 32, 1>}, {pipeline_mode = #tpu.pipeline_mode<synchronous>, transform_indices = @transform_4, window_bounds = array<i64: 4, 196, 441>}, {pipeline_mode = #tpu.pipeline_mode<synchronous>, transform_indices = @transform_5, window_bounds = array<i64: 64, 288>}, {pipeline_mode = #tpu.pipeline_mode<synchronous>, transform_indices = @transform_6, window_bounds = array<i64: 64, 1>}, {pipeline_mode = #tpu.pipeline_mode<synchronous>, transform_indices = @transform_7, window_bounds = array<i64: 64, 1>}, {pipeline_mode = #tpu.pipeline_mode<synchronous>, transform_indices = @transform_8, window_bounds = array<i64: 49, 225>}, {pipeline_mode = #tpu.pipeline_mode<synchronous>, transform_indices = @transform_9, window_bounds = array<i64: 128, 576>}, {pipeline_mode = #tpu.pipeline_mode<synchronous>, transform_indices = @transform_10, window_bounds = array<i64: 128, 1>}, {pipeline_mode = #tpu.pipeline_mode<synchronous>, transform_indices = @transform_11, window_bounds = array<i64: 128, 1>}, {pipeline_mode = #tpu.pipeline_mode<synchronous>, transform_indices = @transform_12, window_bounds = array<i64: 64, 128>}, {pipeline_mode = #tpu.pipeline_mode<synchronous>, transform_indices = @transform_13, window_bounds = array<i64: 64, 1>}, {pipeline_mode = #tpu.pipeline_mode<synchronous>, transform_indices = @transform_14, window_bounds = array<i64: 64, 1>}, {pipeline_mode = #tpu.pipeline_mode<synchronous>, transform_indices = @transform_15, window_bounds = array<i64: 2, 64>}, {pipeline_mode = #tpu.pipeline_mode<synchronous>, transform_indices = @transform_16, window_bounds = array<i64: 2, 1>}, {transform_indices = @transform_17, window_bounds = array<i64: 1, 2, 1>}]} {
    %c0 = arith.constant 0 : index
    %c0_0 = arith.constant 0 : index
    %0 = vector.load %arg2[%c0, %c0_0] : memref<32x9xbf16, #tpu.memory_space<vmem>>, vector<32x9xbf16>
    %c0_1 = arith.constant 0 : index
    %c0_2 = arith.constant 0 : index
    %1 = vector.load %arg3[%c0_1, %c0_2] : memref<32x1xf32, #tpu.memory_space<vmem>>, vector<32x1xf32>
    %c0_3 = arith.constant 0 : index
    %c0_4 = arith.constant 0 : index
    %2 = vector.load %arg4[%c0_3, %c0_4] : memref<32x1xf32, #tpu.memory_space<vmem>>, vector<32x1xf32>
    %c0_5 = arith.constant 0 : index
    %c0_6 = arith.constant 0 : index
    %c0_7 = arith.constant 0 : index
    %c0_8 = arith.constant 0 : index
    %3 = vector.load %arg1[%c0_5, %c0_6, %c0_7, %c0_8] : memref<1x4x9x196xbf16, #tpu.memory_space<vmem>>, vector<1x1x9x196xbf16>
    %4 = vector.shape_cast %3 : vector<1x1x9x196xbf16> to vector<9x196xbf16>
    %cst = arith.constant dense<0.000000e+00> : vector<32x196xf32>
    %5 = tpu.matmul %0, %4, %cst {dimension_numbers = #tpu.dot_dimension_numbers<[1], [0], [0], [1], [0, 0, 1, 1], [], []>} : vector<32x9xbf16>, vector<9x196xbf16>, vector<32x196xf32> -> vector<32x196xf32>
    %6 = vector.broadcast %1 : vector<32x1xf32> to vector<32x196xf32>
    %7 = arith.mulf %5, %6 : vector<32x196xf32>
    %8 = vector.broadcast %2 : vector<32x1xf32> to vector<32x196xf32>
    %9 = arith.addf %7, %8 : vector<32x196xf32>
    %c0_9 = arith.constant 0 : index
    %c1 = arith.constant 1 : index
    %c0_10 = arith.constant 0 : index
    %c0_11 = arith.constant 0 : index
    %10 = vector.load %arg1[%c0_9, %c1, %c0_10, %c0_11] : memref<1x4x9x196xbf16, #tpu.memory_space<vmem>>, vector<1x1x9x196xbf16>
    %11 = vector.shape_cast %10 : vector<1x1x9x196xbf16> to vector<9x196xbf16>
    %cst_12 = arith.constant dense<0.000000e+00> : vector<32x196xf32>
    %12 = tpu.matmul %0, %11, %cst_12 {dimension_numbers = #tpu.dot_dimension_numbers<[1], [0], [0], [1], [0, 0, 1, 1], [], []>} : vector<32x9xbf16>, vector<9x196xbf16>, vector<32x196xf32> -> vector<32x196xf32>
    %13 = vector.broadcast %1 : vector<32x1xf32> to vector<32x196xf32>
    %14 = arith.mulf %12, %13 : vector<32x196xf32>
    %15 = vector.broadcast %2 : vector<32x1xf32> to vector<32x196xf32>
    %16 = arith.addf %14, %15 : vector<32x196xf32>
    %17 = arith.maximumf %9, %16 : vector<32x196xf32>
    %c0_13 = arith.constant 0 : index
    %c2 = arith.constant 2 : index
    %c0_14 = arith.constant 0 : index
    %c0_15 = arith.constant 0 : index
    %18 = vector.load %arg1[%c0_13, %c2, %c0_14, %c0_15] : memref<1x4x9x196xbf16, #tpu.memory_space<vmem>>, vector<1x1x9x196xbf16>
    %19 = vector.shape_cast %18 : vector<1x1x9x196xbf16> to vector<9x196xbf16>
    %cst_16 = arith.constant dense<0.000000e+00> : vector<32x196xf32>
    %20 = tpu.matmul %0, %19, %cst_16 {dimension_numbers = #tpu.dot_dimension_numbers<[1], [0], [0], [1], [0, 0, 1, 1], [], []>} : vector<32x9xbf16>, vector<9x196xbf16>, vector<32x196xf32> -> vector<32x196xf32>
    %21 = vector.broadcast %1 : vector<32x1xf32> to vector<32x196xf32>
    %22 = arith.mulf %20, %21 : vector<32x196xf32>
    %23 = vector.broadcast %2 : vector<32x1xf32> to vector<32x196xf32>
    %24 = arith.addf %22, %23 : vector<32x196xf32>
    %25 = arith.maximumf %17, %24 : vector<32x196xf32>
    %c0_17 = arith.constant 0 : index
    %c3 = arith.constant 3 : index
    %c0_18 = arith.constant 0 : index
    %c0_19 = arith.constant 0 : index
    %26 = vector.load %arg1[%c0_17, %c3, %c0_18, %c0_19] : memref<1x4x9x196xbf16, #tpu.memory_space<vmem>>, vector<1x1x9x196xbf16>
    %27 = vector.shape_cast %26 : vector<1x1x9x196xbf16> to vector<9x196xbf16>
    %cst_20 = arith.constant dense<0.000000e+00> : vector<32x196xf32>
    %28 = tpu.matmul %0, %27, %cst_20 {dimension_numbers = #tpu.dot_dimension_numbers<[1], [0], [0], [1], [0, 0, 1, 1], [], []>} : vector<32x9xbf16>, vector<9x196xbf16>, vector<32x196xf32> -> vector<32x196xf32>
    %29 = vector.broadcast %1 : vector<32x1xf32> to vector<32x196xf32>
    %30 = arith.mulf %28, %29 : vector<32x196xf32>
    %31 = vector.broadcast %2 : vector<32x1xf32> to vector<32x196xf32>
    %32 = arith.addf %30, %31 : vector<32x196xf32>
    %33 = arith.maximumf %25, %32 : vector<32x196xf32>
    %34 = arith.truncf %33 : vector<32x196xf32> to vector<32x196xbf16>
    %c0_21 = arith.constant 0 : index
    %c0_22 = arith.constant 0 : index
    %35 = vector.load %arg6[%c0_21, %c0_22] : memref<64x288xbf16, #tpu.memory_space<vmem>>, vector<64x288xbf16>
    %c0_23 = arith.constant 0 : index
    %c0_24 = arith.constant 0 : index
    %36 = vector.load %arg7[%c0_23, %c0_24] : memref<64x1xf32, #tpu.memory_space<vmem>>, vector<64x1xf32>
    %c0_25 = arith.constant 0 : index
    %c0_26 = arith.constant 0 : index
    %37 = vector.load %arg8[%c0_25, %c0_26] : memref<64x1xf32, #tpu.memory_space<vmem>>, vector<64x1xf32>
    %c0_27 = arith.constant 0 : index
    %c0_28 = arith.constant 0 : index
    %c0_29 = arith.constant 0 : index
    %38 = vector.load %arg5[%c0_27, %c0_28, %c0_29] : memref<4x196x441xbf16, #tpu.memory_space<vmem>>, vector<1x196x441xbf16>
    %39 = vector.shape_cast %38 : vector<1x196x441xbf16> to vector<196x441xbf16>
    %cst_30 = arith.constant dense<0.000000e+00> : vector<32x441xf32>
    %40 = tpu.matmul %34, %39, %cst_30 {dimension_numbers = #tpu.dot_dimension_numbers<[1], [0], [0], [1], [0, 0, 1, 1], [], []>} : vector<32x196xbf16>, vector<196x441xbf16>, vector<32x441xf32> -> vector<32x441xf32>
    %41 = vector.extract_strided_slice %40 {offsets = [0, 0], sizes = [32, 49], strides = [1, 1]} : vector<32x441xf32> to vector<32x49xf32>
    %42 = vector.extract_strided_slice %40 {offsets = [0, 49], sizes = [32, 49], strides = [1, 1]} : vector<32x441xf32> to vector<32x49xf32>
    %43 = vector.extract_strided_slice %40 {offsets = [0, 98], sizes = [32, 49], strides = [1, 1]} : vector<32x441xf32> to vector<32x49xf32>
    %44 = vector.extract_strided_slice %40 {offsets = [0, 147], sizes = [32, 49], strides = [1, 1]} : vector<32x441xf32> to vector<32x49xf32>
    %45 = vector.extract_strided_slice %40 {offsets = [0, 196], sizes = [32, 49], strides = [1, 1]} : vector<32x441xf32> to vector<32x49xf32>
    %46 = vector.extract_strided_slice %40 {offsets = [0, 245], sizes = [32, 49], strides = [1, 1]} : vector<32x441xf32> to vector<32x49xf32>
    %47 = vector.extract_strided_slice %40 {offsets = [0, 294], sizes = [32, 49], strides = [1, 1]} : vector<32x441xf32> to vector<32x49xf32>
    %48 = vector.extract_strided_slice %40 {offsets = [0, 343], sizes = [32, 49], strides = [1, 1]} : vector<32x441xf32> to vector<32x49xf32>
    %49 = vector.extract_strided_slice %40 {offsets = [0, 392], sizes = [32, 49], strides = [1, 1]} : vector<32x441xf32> to vector<32x49xf32>
    %50 = tpu.concatenate %41, %42, %43, %44, %45, %46, %47, %48, %49 in 0 : vector<32x49xf32>, vector<32x49xf32>, vector<32x49xf32>, vector<32x49xf32>, vector<32x49xf32>, vector<32x49xf32>, vector<32x49xf32>, vector<32x49xf32>, vector<32x49xf32> -> vector<288x49xf32>
    %51 = arith.truncf %50 : vector<288x49xf32> to vector<288x49xbf16>
    %cst_31 = arith.constant dense<0.000000e+00> : vector<64x49xf32>
    %52 = tpu.matmul %35, %51, %cst_31 {dimension_numbers = #tpu.dot_dimension_numbers<[1], [0], [0], [1], [0, 0, 1, 1], [], []>} : vector<64x288xbf16>, vector<288x49xbf16>, vector<64x49xf32> -> vector<64x49xf32>
    %53 = vector.broadcast %36 : vector<64x1xf32> to vector<64x49xf32>
    %54 = arith.mulf %52, %53 : vector<64x49xf32>
    %55 = vector.broadcast %37 : vector<64x1xf32> to vector<64x49xf32>
    %56 = arith.addf %54, %55 : vector<64x49xf32>
    %c1_32 = arith.constant 1 : index
    %c0_33 = arith.constant 0 : index
    %c0_34 = arith.constant 0 : index
    %57 = vector.load %arg5[%c1_32, %c0_33, %c0_34] : memref<4x196x441xbf16, #tpu.memory_space<vmem>>, vector<1x196x441xbf16>
    %58 = vector.shape_cast %57 : vector<1x196x441xbf16> to vector<196x441xbf16>
    %cst_35 = arith.constant dense<0.000000e+00> : vector<32x441xf32>
    %59 = tpu.matmul %34, %58, %cst_35 {dimension_numbers = #tpu.dot_dimension_numbers<[1], [0], [0], [1], [0, 0, 1, 1], [], []>} : vector<32x196xbf16>, vector<196x441xbf16>, vector<32x441xf32> -> vector<32x441xf32>
    %60 = vector.extract_strided_slice %59 {offsets = [0, 0], sizes = [32, 49], strides = [1, 1]} : vector<32x441xf32> to vector<32x49xf32>
    %61 = vector.extract_strided_slice %59 {offsets = [0, 49], sizes = [32, 49], strides = [1, 1]} : vector<32x441xf32> to vector<32x49xf32>
    %62 = vector.extract_strided_slice %59 {offsets = [0, 98], sizes = [32, 49], strides = [1, 1]} : vector<32x441xf32> to vector<32x49xf32>
    %63 = vector.extract_strided_slice %59 {offsets = [0, 147], sizes = [32, 49], strides = [1, 1]} : vector<32x441xf32> to vector<32x49xf32>
    %64 = vector.extract_strided_slice %59 {offsets = [0, 196], sizes = [32, 49], strides = [1, 1]} : vector<32x441xf32> to vector<32x49xf32>
    %65 = vector.extract_strided_slice %59 {offsets = [0, 245], sizes = [32, 49], strides = [1, 1]} : vector<32x441xf32> to vector<32x49xf32>
    %66 = vector.extract_strided_slice %59 {offsets = [0, 294], sizes = [32, 49], strides = [1, 1]} : vector<32x441xf32> to vector<32x49xf32>
    %67 = vector.extract_strided_slice %59 {offsets = [0, 343], sizes = [32, 49], strides = [1, 1]} : vector<32x441xf32> to vector<32x49xf32>
    %68 = vector.extract_strided_slice %59 {offsets = [0, 392], sizes = [32, 49], strides = [1, 1]} : vector<32x441xf32> to vector<32x49xf32>
    %69 = tpu.concatenate %60, %61, %62, %63, %64, %65, %66, %67, %68 in 0 : vector<32x49xf32>, vector<32x49xf32>, vector<32x49xf32>, vector<32x49xf32>, vector<32x49xf32>, vector<32x49xf32>, vector<32x49xf32>, vector<32x49xf32>, vector<32x49xf32> -> vector<288x49xf32>
    %70 = arith.truncf %69 : vector<288x49xf32> to vector<288x49xbf16>
    %cst_36 = arith.constant dense<0.000000e+00> : vector<64x49xf32>
    %71 = tpu.matmul %35, %70, %cst_36 {dimension_numbers = #tpu.dot_dimension_numbers<[1], [0], [0], [1], [0, 0, 1, 1], [], []>} : vector<64x288xbf16>, vector<288x49xbf16>, vector<64x49xf32> -> vector<64x49xf32>
    %72 = vector.broadcast %36 : vector<64x1xf32> to vector<64x49xf32>
    %73 = arith.mulf %71, %72 : vector<64x49xf32>
    %74 = vector.broadcast %37 : vector<64x1xf32> to vector<64x49xf32>
    %75 = arith.addf %73, %74 : vector<64x49xf32>
    %76 = arith.maximumf %56, %75 : vector<64x49xf32>
    %c2_37 = arith.constant 2 : index
    %c0_38 = arith.constant 0 : index
    %c0_39 = arith.constant 0 : index
    %77 = vector.load %arg5[%c2_37, %c0_38, %c0_39] : memref<4x196x441xbf16, #tpu.memory_space<vmem>>, vector<1x196x441xbf16>
    %78 = vector.shape_cast %77 : vector<1x196x441xbf16> to vector<196x441xbf16>
    %cst_40 = arith.constant dense<0.000000e+00> : vector<32x441xf32>
    %79 = tpu.matmul %34, %78, %cst_40 {dimension_numbers = #tpu.dot_dimension_numbers<[1], [0], [0], [1], [0, 0, 1, 1], [], []>} : vector<32x196xbf16>, vector<196x441xbf16>, vector<32x441xf32> -> vector<32x441xf32>
    %80 = vector.extract_strided_slice %79 {offsets = [0, 0], sizes = [32, 49], strides = [1, 1]} : vector<32x441xf32> to vector<32x49xf32>
    %81 = vector.extract_strided_slice %79 {offsets = [0, 49], sizes = [32, 49], strides = [1, 1]} : vector<32x441xf32> to vector<32x49xf32>
    %82 = vector.extract_strided_slice %79 {offsets = [0, 98], sizes = [32, 49], strides = [1, 1]} : vector<32x441xf32> to vector<32x49xf32>
    %83 = vector.extract_strided_slice %79 {offsets = [0, 147], sizes = [32, 49], strides = [1, 1]} : vector<32x441xf32> to vector<32x49xf32>
    %84 = vector.extract_strided_slice %79 {offsets = [0, 196], sizes = [32, 49], strides = [1, 1]} : vector<32x441xf32> to vector<32x49xf32>
    %85 = vector.extract_strided_slice %79 {offsets = [0, 245], sizes = [32, 49], strides = [1, 1]} : vector<32x441xf32> to vector<32x49xf32>
    %86 = vector.extract_strided_slice %79 {offsets = [0, 294], sizes = [32, 49], strides = [1, 1]} : vector<32x441xf32> to vector<32x49xf32>
    %87 = vector.extract_strided_slice %79 {offsets = [0, 343], sizes = [32, 49], strides = [1, 1]} : vector<32x441xf32> to vector<32x49xf32>
    %88 = vector.extract_strided_slice %79 {offsets = [0, 392], sizes = [32, 49], strides = [1, 1]} : vector<32x441xf32> to vector<32x49xf32>
    %89 = tpu.concatenate %80, %81, %82, %83, %84, %85, %86, %87, %88 in 0 : vector<32x49xf32>, vector<32x49xf32>, vector<32x49xf32>, vector<32x49xf32>, vector<32x49xf32>, vector<32x49xf32>, vector<32x49xf32>, vector<32x49xf32>, vector<32x49xf32> -> vector<288x49xf32>
    %90 = arith.truncf %89 : vector<288x49xf32> to vector<288x49xbf16>
    %cst_41 = arith.constant dense<0.000000e+00> : vector<64x49xf32>
    %91 = tpu.matmul %35, %90, %cst_41 {dimension_numbers = #tpu.dot_dimension_numbers<[1], [0], [0], [1], [0, 0, 1, 1], [], []>} : vector<64x288xbf16>, vector<288x49xbf16>, vector<64x49xf32> -> vector<64x49xf32>
    %92 = vector.broadcast %36 : vector<64x1xf32> to vector<64x49xf32>
    %93 = arith.mulf %91, %92 : vector<64x49xf32>
    %94 = vector.broadcast %37 : vector<64x1xf32> to vector<64x49xf32>
    %95 = arith.addf %93, %94 : vector<64x49xf32>
    %96 = arith.maximumf %76, %95 : vector<64x49xf32>
    %c3_42 = arith.constant 3 : index
    %c0_43 = arith.constant 0 : index
    %c0_44 = arith.constant 0 : index
    %97 = vector.load %arg5[%c3_42, %c0_43, %c0_44] : memref<4x196x441xbf16, #tpu.memory_space<vmem>>, vector<1x196x441xbf16>
    %98 = vector.shape_cast %97 : vector<1x196x441xbf16> to vector<196x441xbf16>
    %cst_45 = arith.constant dense<0.000000e+00> : vector<32x441xf32>
    %99 = tpu.matmul %34, %98, %cst_45 {dimension_numbers = #tpu.dot_dimension_numbers<[1], [0], [0], [1], [0, 0, 1, 1], [], []>} : vector<32x196xbf16>, vector<196x441xbf16>, vector<32x441xf32> -> vector<32x441xf32>
    %100 = vector.extract_strided_slice %99 {offsets = [0, 0], sizes = [32, 49], strides = [1, 1]} : vector<32x441xf32> to vector<32x49xf32>
    %101 = vector.extract_strided_slice %99 {offsets = [0, 49], sizes = [32, 49], strides = [1, 1]} : vector<32x441xf32> to vector<32x49xf32>
    %102 = vector.extract_strided_slice %99 {offsets = [0, 98], sizes = [32, 49], strides = [1, 1]} : vector<32x441xf32> to vector<32x49xf32>
    %103 = vector.extract_strided_slice %99 {offsets = [0, 147], sizes = [32, 49], strides = [1, 1]} : vector<32x441xf32> to vector<32x49xf32>
    %104 = vector.extract_strided_slice %99 {offsets = [0, 196], sizes = [32, 49], strides = [1, 1]} : vector<32x441xf32> to vector<32x49xf32>
    %105 = vector.extract_strided_slice %99 {offsets = [0, 245], sizes = [32, 49], strides = [1, 1]} : vector<32x441xf32> to vector<32x49xf32>
    %106 = vector.extract_strided_slice %99 {offsets = [0, 294], sizes = [32, 49], strides = [1, 1]} : vector<32x441xf32> to vector<32x49xf32>
    %107 = vector.extract_strided_slice %99 {offsets = [0, 343], sizes = [32, 49], strides = [1, 1]} : vector<32x441xf32> to vector<32x49xf32>
    %108 = vector.extract_strided_slice %99 {offsets = [0, 392], sizes = [32, 49], strides = [1, 1]} : vector<32x441xf32> to vector<32x49xf32>
    %109 = tpu.concatenate %100, %101, %102, %103, %104, %105, %106, %107, %108 in 0 : vector<32x49xf32>, vector<32x49xf32>, vector<32x49xf32>, vector<32x49xf32>, vector<32x49xf32>, vector<32x49xf32>, vector<32x49xf32>, vector<32x49xf32>, vector<32x49xf32> -> vector<288x49xf32>
    %110 = arith.truncf %109 : vector<288x49xf32> to vector<288x49xbf16>
    %cst_46 = arith.constant dense<0.000000e+00> : vector<64x49xf32>
    %111 = tpu.matmul %35, %110, %cst_46 {dimension_numbers = #tpu.dot_dimension_numbers<[1], [0], [0], [1], [0, 0, 1, 1], [], []>} : vector<64x288xbf16>, vector<288x49xbf16>, vector<64x49xf32> -> vector<64x49xf32>
    %112 = vector.broadcast %36 : vector<64x1xf32> to vector<64x49xf32>
    %113 = arith.mulf %111, %112 : vector<64x49xf32>
    %114 = vector.broadcast %37 : vector<64x1xf32> to vector<64x49xf32>
    %115 = arith.addf %113, %114 : vector<64x49xf32>
    %116 = arith.maximumf %96, %115 : vector<64x49xf32>
    %117 = arith.truncf %116 : vector<64x49xf32> to vector<64x49xbf16>
    %c0_47 = arith.constant 0 : index
    %c0_48 = arith.constant 0 : index
    %118 = vector.load %arg9[%c0_47, %c0_48] : memref<49x225xbf16, #tpu.memory_space<vmem>>, vector<49x225xbf16>
    %cst_49 = arith.constant dense<0.000000e+00> : vector<64x225xf32>
    %119 = tpu.matmul %117, %118, %cst_49 {dimension_numbers = #tpu.dot_dimension_numbers<[1], [0], [0], [1], [0, 0, 1, 1], [], []>} : vector<64x49xbf16>, vector<49x225xbf16>, vector<64x225xf32> -> vector<64x225xf32>
    %120 = vector.extract_strided_slice %119 {offsets = [0, 0], sizes = [64, 25], strides = [1, 1]} : vector<64x225xf32> to vector<64x25xf32>
    %121 = vector.extract_strided_slice %119 {offsets = [0, 25], sizes = [64, 25], strides = [1, 1]} : vector<64x225xf32> to vector<64x25xf32>
    %122 = vector.extract_strided_slice %119 {offsets = [0, 50], sizes = [64, 25], strides = [1, 1]} : vector<64x225xf32> to vector<64x25xf32>
    %123 = vector.extract_strided_slice %119 {offsets = [0, 75], sizes = [64, 25], strides = [1, 1]} : vector<64x225xf32> to vector<64x25xf32>
    %124 = vector.extract_strided_slice %119 {offsets = [0, 100], sizes = [64, 25], strides = [1, 1]} : vector<64x225xf32> to vector<64x25xf32>
    %125 = vector.extract_strided_slice %119 {offsets = [0, 125], sizes = [64, 25], strides = [1, 1]} : vector<64x225xf32> to vector<64x25xf32>
    %126 = vector.extract_strided_slice %119 {offsets = [0, 150], sizes = [64, 25], strides = [1, 1]} : vector<64x225xf32> to vector<64x25xf32>
    %127 = vector.extract_strided_slice %119 {offsets = [0, 175], sizes = [64, 25], strides = [1, 1]} : vector<64x225xf32> to vector<64x25xf32>
    %128 = vector.extract_strided_slice %119 {offsets = [0, 200], sizes = [64, 25], strides = [1, 1]} : vector<64x225xf32> to vector<64x25xf32>
    %129 = tpu.concatenate %120, %121, %122, %123, %124, %125, %126, %127, %128 in 0 : vector<64x25xf32>, vector<64x25xf32>, vector<64x25xf32>, vector<64x25xf32>, vector<64x25xf32>, vector<64x25xf32>, vector<64x25xf32>, vector<64x25xf32>, vector<64x25xf32> -> vector<576x25xf32>
    %c0_50 = arith.constant 0 : index
    %c0_51 = arith.constant 0 : index
    %130 = vector.load %arg10[%c0_50, %c0_51] : memref<128x576xbf16, #tpu.memory_space<vmem>>, vector<128x576xbf16>
    %131 = arith.truncf %129 : vector<576x25xf32> to vector<576x25xbf16>
    %cst_52 = arith.constant dense<0.000000e+00> : vector<128x25xf32>
    %132 = tpu.matmul %130, %131, %cst_52 {dimension_numbers = #tpu.dot_dimension_numbers<[1], [0], [0], [1], [0, 0, 1, 1], [], []>} : vector<128x576xbf16>, vector<576x25xbf16>, vector<128x25xf32> -> vector<128x25xf32>
    %c0_53 = arith.constant 0 : index
    %c0_54 = arith.constant 0 : index
    %133 = vector.load %arg11[%c0_53, %c0_54] : memref<128x1xf32, #tpu.memory_space<vmem>>, vector<128x1xf32>
    %134 = vector.broadcast %133 : vector<128x1xf32> to vector<128x25xf32>
    %135 = arith.mulf %132, %134 : vector<128x25xf32>
    %c0_55 = arith.constant 0 : index
    %c0_56 = arith.constant 0 : index
    %136 = vector.load %arg12[%c0_55, %c0_56] : memref<128x1xf32, #tpu.memory_space<vmem>>, vector<128x1xf32>
    %137 = vector.broadcast %136 : vector<128x1xf32> to vector<128x25xf32>
    %138 = arith.addf %135, %137 : vector<128x25xf32>
    %cst_57 = arith.constant dense<0.000000e+00> : vector<128xf32>
    %139 = vector.multi_reduction <add>, %138, %cst_57 [1] : vector<128x25xf32> to vector<128xf32>
    %140 = vector.shape_cast %139 : vector<128xf32> to vector<128x1xf32>
    %cst_58 = arith.constant 4.000000e-02 : f32
    %141 = vector.broadcast %cst_58 : f32 to vector<128x1xf32>
    %142 = arith.mulf %140, %141 : vector<128x1xf32>
    %c0_59 = arith.constant 0 : index
    %c0_60 = arith.constant 0 : index
    %143 = vector.load %arg13[%c0_59, %c0_60] : memref<64x128xbf16, #tpu.memory_space<vmem>>, vector<64x128xbf16>
    %144 = arith.truncf %142 : vector<128x1xf32> to vector<128x1xbf16>
    %cst_61 = arith.constant dense<0.000000e+00> : vector<64x1xf32>
    %145 = tpu.matmul %143, %144, %cst_61 {dimension_numbers = #tpu.dot_dimension_numbers<[1], [0], [0], [1], [0, 0, 1, 1], [], []>} : vector<64x128xbf16>, vector<128x1xbf16>, vector<64x1xf32> -> vector<64x1xf32>
    %c0_62 = arith.constant 0 : index
    %c0_63 = arith.constant 0 : index
    %146 = vector.load %arg14[%c0_62, %c0_63] : memref<64x1xf32, #tpu.memory_space<vmem>>, vector<64x1xf32>
    %147 = arith.mulf %145, %146 : vector<64x1xf32>
    %c0_64 = arith.constant 0 : index
    %c0_65 = arith.constant 0 : index
    %148 = vector.load %arg15[%c0_64, %c0_65] : memref<64x1xf32, #tpu.memory_space<vmem>>, vector<64x1xf32>
    %149 = arith.addf %147, %148 : vector<64x1xf32>
    %c0_66 = arith.constant 0 : index
    %c0_67 = arith.constant 0 : index
    %150 = vector.load %arg16[%c0_66, %c0_67] : memref<2x64xbf16, #tpu.memory_space<vmem>>, vector<2x64xbf16>
    %151 = arith.truncf %149 : vector<64x1xf32> to vector<64x1xbf16>
    %cst_68 = arith.constant dense<0.000000e+00> : vector<2x1xf32>
    %152 = tpu.matmul %150, %151, %cst_68 {dimension_numbers = #tpu.dot_dimension_numbers<[1], [0], [0], [1], [0, 0, 1, 1], [], []>} : vector<2x64xbf16>, vector<64x1xbf16>, vector<2x1xf32> -> vector<2x1xf32>
    %c0_69 = arith.constant 0 : index
    %c0_70 = arith.constant 0 : index
    %153 = vector.load %arg17[%c0_69, %c0_70] : memref<2x1xf32, #tpu.memory_space<vmem>>, vector<2x1xf32>
    %154 = arith.addf %152, %153 : vector<2x1xf32>
    %c0_71 = arith.constant 0 : index
    %c0_72 = arith.constant 0 : index
    %c0_73 = arith.constant 0 : index
    %155 = vector.load %arg18[%c0_71, %c0_72, %c0_73] : memref<1x2x1xf32, #tpu.memory_space<vmem>>, vector<1x2x1xf32>
    %156 = vector.shape_cast %155 : vector<1x2x1xf32> to vector<2x1xf32>
    %157 = vector.shape_cast %154 : vector<2x1xf32> to vector<1x2x1xf32>
    tpu.vector_store %arg18[%c0_71, %c0_72, %c0_73], %157 {strides = array<i32>} : memref<1x2x1xf32, #tpu.memory_space<vmem>>, vector<1x2x1xf32>,
    return
  }
  func.func @transform_0(%arg0: i32) -> (i32, i32, i32, i32) {
    %c0_i32 = arith.constant 0 : i32
    %c0_i32_0 = arith.constant 0 : i32
    %c0_i32_1 = arith.constant 0 : i32
    %c0_i32_2 = arith.constant 0 : i32
    return %arg0, %c0_i32, %c0_i32_0, %c0_i32_1 : i32, i32, i32, i32
  }
  func.func @transform_1(%arg0: i32) -> (i32, i32) {
    %c0_i32 = arith.constant 0 : i32
    %c0_i32_0 = arith.constant 0 : i32
    %c0_i32_1 = arith.constant 0 : i32
    return %c0_i32, %c0_i32_0 : i32, i32
  }
  func.func @transform_2(%arg0: i32) -> (i32, i32) {
    %c0_i32 = arith.constant 0 : i32
    %c0_i32_0 = arith.constant 0 : i32
    %c0_i32_1 = arith.constant 0 : i32
    return %c0_i32, %c0_i32_0 : i32, i32
  }
  func.func @transform_3(%arg0: i32) -> (i32, i32) {
    %c0_i32 = arith.constant 0 : i32
    %c0_i32_0 = arith.constant 0 : i32
    %c0_i32_1 = arith.constant 0 : i32
    return %c0_i32, %c0_i32_0 : i32, i32
  }
  func.func @transform_4(%arg0: i32) -> (i32, i32, i32) {
    %c0_i32 = arith.constant 0 : i32
    %c0_i32_0 = arith.constant 0 : i32
    %c0_i32_1 = arith.constant 0 : i32
    %c0_i32_2 = arith.constant 0 : i32
    return %c0_i32, %c0_i32_0, %c0_i32_1 : i32, i32, i32
  }
  func.func @transform_5(%arg0: i32) -> (i32, i32) {
    %c0_i32 = arith.constant 0 : i32
    %c0_i32_0 = arith.constant 0 : i32
    %c0_i32_1 = arith.constant 0 : i32
    return %c0_i32, %c0_i32_0 : i32, i32
  }
  func.func @transform_6(%arg0: i32) -> (i32, i32) {
    %c0_i32 = arith.constant 0 : i32
    %c0_i32_0 = arith.constant 0 : i32
    %c0_i32_1 = arith.constant 0 : i32
    return %c0_i32, %c0_i32_0 : i32, i32
  }
  func.func @transform_7(%arg0: i32) -> (i32, i32) {
    %c0_i32 = arith.constant 0 : i32
    %c0_i32_0 = arith.constant 0 : i32
    %c0_i32_1 = arith.constant 0 : i32
    return %c0_i32, %c0_i32_0 : i32, i32
  }
  func.func @transform_8(%arg0: i32) -> (i32, i32) {
    %c0_i32 = arith.constant 0 : i32
    %c0_i32_0 = arith.constant 0 : i32
    %c0_i32_1 = arith.constant 0 : i32
    return %c0_i32, %c0_i32_0 : i32, i32
  }
  func.func @transform_9(%arg0: i32) -> (i32, i32) {
    %c0_i32 = arith.constant 0 : i32
    %c0_i32_0 = arith.constant 0 : i32
    %c0_i32_1 = arith.constant 0 : i32
    return %c0_i32, %c0_i32_0 : i32, i32
  }
  func.func @transform_10(%arg0: i32) -> (i32, i32) {
    %c0_i32 = arith.constant 0 : i32
    %c0_i32_0 = arith.constant 0 : i32
    %c0_i32_1 = arith.constant 0 : i32
    return %c0_i32, %c0_i32_0 : i32, i32
  }
  func.func @transform_11(%arg0: i32) -> (i32, i32) {
    %c0_i32 = arith.constant 0 : i32
    %c0_i32_0 = arith.constant 0 : i32
    %c0_i32_1 = arith.constant 0 : i32
    return %c0_i32, %c0_i32_0 : i32, i32
  }
  func.func @transform_12(%arg0: i32) -> (i32, i32) {
    %c0_i32 = arith.constant 0 : i32
    %c0_i32_0 = arith.constant 0 : i32
    %c0_i32_1 = arith.constant 0 : i32
    return %c0_i32, %c0_i32_0 : i32, i32
  }
  func.func @transform_13(%arg0: i32) -> (i32, i32) {
    %c0_i32 = arith.constant 0 : i32
    %c0_i32_0 = arith.constant 0 : i32
    %c0_i32_1 = arith.constant 0 : i32
    return %c0_i32, %c0_i32_0 : i32, i32
  }
  func.func @transform_14(%arg0: i32) -> (i32, i32) {
    %c0_i32 = arith.constant 0 : i32
    %c0_i32_0 = arith.constant 0 : i32
    %c0_i32_1 = arith.constant 0 : i32
    return %c0_i32, %c0_i32_0 : i32, i32
  }
  func.func @transform_15(%arg0: i32) -> (i32, i32) {
    %c0_i32 = arith.constant 0 : i32
    %c0_i32_0 = arith.constant 0 : i32
    %c0_i32_1 = arith.constant 0 : i32
    return %c0_i32, %c0_i32_0 : i32, i32
  }
  func.func @transform_16(%arg0: i32) -> (i32, i32) {
    %c0_i32 = arith.constant 0 : i32
    %c0_i32_0 = arith.constant 0 : i32
    %c0_i32_1 = arith.constant 0 : i32
    return %c0_i32, %c0_i32_0 : i32, i32
  }
  func.func @transform_17(%arg0: i32) -> (i32, i32, i32) {
    %c0_i32 = arith.constant 0 : i32
    %c0_i32_0 = arith.constant 0 : i32
    %c0_i32_1 = arith.constant 0 : i32
    return %arg0, %c0_i32, %c0_i32_0 : i32, i32, i32
  }
}

</mosaic_0001>

<bundles_post_ra>
// kernel: siamese_forward.1
= control target key start
LH: loop header
LB: loop body
LE: loop exit
PB: predicated region body
PF: predicated region fallthrough
CT: control target
= control target key end

     0   :  { %s7801_s24 = smov 0   ;;  %s10835_s0 = inlined_call_operand.vmem [shape: bf16[2,4,9,196], index: 0, kind: input, shape index: {}]   ;;  %s10836_s1 = inlined_call_operand.vmem [shape: bf16[32,9], index: 1, kind: input, shape index: {}]   ;;  %s10837_s2 = inlined_call_operand.vmem [shape: f32[32,1], index: 2, kind: input, shape index: {}]   ;;  %s10838_s3 = inlined_call_operand.vmem [shape: f32[32,1], index: 3, kind: input, shape index: {}]   ;;  %s10839_s4 = inlined_call_operand.vmem [shape: bf16[4,196,441], index: 4, kind: input, shape index: {}]   ;;  %s10840_s5 = inlined_call_operand.vmem [shape: bf16[64,288], index: 5, kind: input, shape index: {}]   ;;  %s10841_s6 = inlined_call_operand.vmem [shape: f32[64,1], index: 6, kind: input, shape index: {}]   ;;  %s10842_s7 = inlined_call_operand.vmem [shape: f32[64,1], index: 7, kind: input, shape index: {}]   ;;  %s10843_s8 = inlined_call_operand.vmem [shape: bf16[49,225], index: 8, kind: input, shape index: {}]   ;;  %s10844_s9 = inlined_call_operand.vmem [shape: bf16[128,576], index: 9, kind: input, shape index: {}]   ;;  %s10845_s10 = inlined_call_operand.vmem [shape: f32[128,1], index: 10, kind: input, shape index: {}]   ;;  %s10846_s11 = inlined_call_operand.vmem [shape: f32[128,1], index: 11, kind: input, shape index: {}]   ;;  %s10847_s12 = inlined_call_operand.vmem [shape: bf16[64,128], index: 12, kind: input, shape index: {}]   ;;  %s10848_s13 = inlined_call_operand.vmem [shape: f32[64,1], index: 13, kind: input, shape index: {}]   ;;  %s10849_s14 = inlined_call_operand.vmem [shape: f32[64,1], index: 14, kind: input, shape index: {}]   ;;  %s10850_s15 = inlined_call_operand.vmem [shape: bf16[2,64], index: 15, kind: input, shape index: {}]   ;;  %s10851_s16 = inlined_call_operand.vmem [shape: f32[2,1], index: 16, kind: input, shape index: {}]   ;;  %s10852_s17 = inlined_call_operand.vmem [shape: f32[2,2,1], index: 17, kind: output, shape index: {}]  }
   0x1   :  { %10873 = sst [smem:[#allocation33_spill]] %s10835_s0 }
   0x2   :  { %10874 = sst [smem:[#allocation34_spill]] %s10836_s1 }
   0x3   :  { %10875 = sst [smem:[#allocation35_spill]] %s10837_s2 }
   0x4   :  { %10876 = sst [smem:[#allocation36_spill]] %s10838_s3 }
   0x5   :  { %10877 = sst [smem:[#allocation37_spill]] %s10840_s5 }
   0x6   :  { %10878 = sst [smem:[#allocation38_spill]] %s10850_s15 }
   0x7   :  { %10879 = sst [smem:[#allocation39_spill]] %s10851_s16 }
   0x8   :  { %10880 = sst [smem:[#allocation40_spill]] %s10852_s17 }
   0x9 LB: > { %10881 = sst [smem:[#allocation2_spill]] %s7691_s24  ;;  %s5467_s25 = sadd.s32 4294967295, %s7691_s24   ;;  %s7691_s24 = sphi %s7801_s24, %s27_s24  }
   0xa   : > { %p5471_p0 = scmp.ge.s32.totalorder %s7691_s24, 1  ;;  %p487_p1 = scmp.lt.s32.totalorder %s7691_s24, 3 }
   0xc   : > { %p488_p2 = pnand %p5471_p0, %p487_p1 }
   0xe   : > { %491 = sbr.rel (%p488_p2) target bundleno = 3174 (0xc66), region = 88 }
  0x13   : > { %p538_p3 = scmp.lt.s32.totalorder %s5467_s25, 1  ;;  %vm587_vm0 = vcmask 1043456   ;;  %s10882_s2 = sld [smem:[#allocation35_spill]]  ;;  %vm588_vm1 = vcmask 1044480   ;;  %v7693_v2 = vmov 65535   ;;  %v10868_v4 = vmov 0  }
  0x14   : > { %s10883_s3 = sld [smem:[#allocation36_spill]]  ;;  %v589_v3 = vsel %vm587_vm0, 4294967295, %v7693_v2  ;;  %7062 = vset.pattern.permute.xlu0 %v10868_v4  ;;  %7063 = vset.pattern.permute.xlu1 %v10868_v4  ;;  %vm580_vm2 = vcmask 72704   ;;  %v5651_v48 = vld [vmem:[%s10839_s4 + $0xe0] sm:$0xf]  ;;  %vm1271_vm3 = vcmask 1041408  }
  0x15   : > { %s10961_s25 = smov (!%p538_p3, %s5467_s25), 1  ;;  %7064 = vset.pattern.permute.xlu2 %v10868_v4  ;;  %s10884_s19 = sld [smem:[#allocation33_spill]]  ;;  %v590_v5 = vsel %vm588_vm1, %v589_v3, 0  ;;  %v6823_v49 = vld [vmem:[%s10839_s4 + $0xec] sm:$0xf0]  ;;  %vm1264_vm4 = vcmask 556032  }
  0x16   : > { %s6770_s0 = sshll.u32 %s10961_s25, 6  ;;  %s10885_s22 = sld [smem:[#allocation34_spill]]  ;;  %v6821_v50 = vld [vmem:[%s10839_s4 + $0xe4] sm:$0xf]  ;;  %v5652_v51 = vor.u32 %v6823_v49, %v5651_v48  ;;  %v5653_v52 = vld [vmem:[%s10839_s4 + $0xf0] sm:$0xf0] }
  0x17   : > { %v5656_v53 = vor.u32 %v6821_v50, %v5653_v52  ;;  %v5635_v55 = vld [vmem:[%s10839_s4 + $0xc0] sm:$0xf]  ;;  %v6819_v56 = vld [vmem:[%s10839_s4 + $0xcc] sm:$0xf0]  ;;  %v6817_v57 = vld [vmem:[%s10839_s4 + $0xc4] sm:$0xf] }
  0x18   : > { %v5636_v58 = vor.u32 %v6819_v56, %v5635_v55  ;;  %v5637_v59 = vld [vmem:[%s10839_s4 + $0xd0] sm:$0xf0]  ;;  %v5619_v62 = vld [vmem:[%s10839_s4 + $0xa0] sm:$0xf]  ;;  %v6815_v63 = vld [vmem:[%s10839_s4 + $0xac] sm:$0xf0] }
  0x19   : > { %v552_v0 = vld [vmem:[%s10882_s2] sm:$0xff]  ;;  %v553_v26 = vld [vmem:[%s10882_s2 + $0x8] sm:$0xff]  ;;  %v554_v34 = vld [vmem:[%s10882_s2 + $0x10] sm:$0xff]  ;;  %v5640_v60 = vor.u32 %v6817_v57, %v5637_v59  ;;  %s10869_s28 = smov 30   ;;  %s10864_s29 = smov 41   ;;  %vm1472_vm5 = vcmask 244736  }
  0x1a   : > { %v556_v1 = vld [vmem:[%s10883_s3] sm:$0xff]  ;;  %637 = vperm.xlu0 %7062, %v552_v0   ;;  %v557_v27 = vld [vmem:[%s10883_s3 + $0x8] sm:$0xff]  ;;  %647 = vperm.xlu2 %7064, %v554_v34   ;;  %v558_v38 = vld [vmem:[%s10883_s3 + $0x10] sm:$0xff]  ;;  %s10858_s30 = smov 11   ;;  %s10860_s18 = smov 79   ;;  %vm1566_vm6 = vcmask 334848  }
  0x1b   : > { %665 = vperm.xlu1 %7063, %v556_v1   ;;  %s7824_s1 = scalar_lea.vmem %s10884_s19, %s6770_s0  ;;  %v559_v39 = vld [vmem:[%s10883_s3 + $0x18] sm:$0xff]  ;;  %v6813_v0 = vld [vmem:[%s10839_s4 + $0xa4] sm:$0xf]  ;;  %v5620_v1 = vor.u32 %v6815_v63, %v5619_v62  ;;  %v5621_v2 = vld [vmem:[%s10839_s4 + $0xb0] sm:$0xf0]  ;;  %s10866_s0 = smov 90  }
  0x1c   : > { %v5485_v6 = vld [vmem:[%s7824_s1] sm:$0xf]  ;;  %v6774_v7 = vld [vmem:[%s7824_s1 + $0x4] sm:$0x10]  ;;  %v6773_v8 = vld [vmem:[%s7824_s1 + $0x4] sm:$0xf]  ;;  %v5624_v3 = vor.u32 %v6813_v0, %v5621_v2 }
  0x1d   : > { %v5486_v9 = vor.u32 %v6774_v7, %v5485_v6  ;;  %v5487_v10 = vld [vmem:[%s7824_s1 + $0x8] sm:$0x10]  ;;  %v5499_v11 = vld [vmem:[%s7824_s1 + $0x10] sm:$0xf]  ;;  %v6776_v12 = vld [vmem:[%s7824_s1 + $0x14] sm:$0x10] }
  0x1e   : > { %v5490_v13 = vor.u32 %v6773_v8, %v5487_v10  ;;  %v5500_v14 = vor.u32 %v6776_v12, %v5499_v11  ;;  %v5513_v15 = vld [vmem:[%s7824_s1 + $0x20] sm:$0xf]  ;;  %v6778_v16 = vld [vmem:[%s7824_s1 + $0x24] sm:$0x10]  ;;  %v6775_v17 = vld [vmem:[%s7824_s1 + $0x14] sm:$0xf] }
  0x1f   : > { %v592_v18 = vand.u32 %v5486_v9, %v590_v5  ;;  %v5514_v19 = vor.u32 %v6778_v16, %v5513_v15  ;;  %v5501_v20 = vld [vmem:[%s7824_s1 + $0x18] sm:$0x10]  ;;  %v6779_v21 = vld [vmem:[%s7824_s1 + $0x34] sm:$0xf]  ;;  %v6772_v24 = vld [vmem:[%s10885_s22 + $0x8] sm:$0xff]  ;;  %s10854_s19 = smov 60  }
  0x20   : > { %v5529_v22 = vld [vmem:[%s7824_s1 + $0x38] sm:$0x10]  ;;  %v595_v23 = vand.u32 %v5490_v13, %v590_v5  ;;  %v703_v25 = vand.u32 %v5500_v14, %v590_v5  ;;  %v5504_v28 = vor.u32 %v6775_v17, %v5501_v20  ;;  %v6771_v30 = vld [vmem:[%s10885_s22] sm:$0xff]  ;;  %v5527_v35 = vld [vmem:[%s7824_s1 + $0x30] sm:$0xf]  ;;  %s10856_s20 = smov 120  }
  0x21   : > { %v5532_v29 = vor.u32 %v6779_v21, %v5529_v22  ;;  %7035 = vmatpush.bf16.msra.mxu2 %v592_v18  ;;  %604 = vmatpush.bf16.msra.mxu0 %v592_v18  ;;  %v782_v31 = vand.u32 %v5514_v19, %v590_v5  ;;  %v6780_v36 = vld [vmem:[%s7824_s1 + $0x34] sm:$0x10]  ;;  %v6777_v42 = vld [vmem:[%s7824_s1 + $0x24] sm:$0xf]  ;;  %v5515_v43 = vld [vmem:[%s7824_s1 + $0x28] sm:$0x10] }
  0x22   : > { %623 = vmatpush.bf16.msra.mxu1 %v595_v23  ;;  %v706_v32 = vand.u32 %v5504_v28, %v590_v5  ;;  %642 = vperm.xlu0 %7062, %v553_v26   ;;  %v5528_v37 = vor.u32 %v6780_v36, %v5527_v35  ;;  %v555_v41 = vld [vmem:[%s10882_s2 + $0x18] sm:$0xff]  ;;  %v5518_v44 = vor.u32 %v6777_v42, %v5515_v43  ;;  %v5603_v6 = vld [vmem:[%s10839_s4 + $0x80] sm:$0xf]  ;;  %v6811_v7 = vld [vmem:[%s10839_s4 + $0x8c] sm:$0xf0]  ;;  %s10862_s1 = smov 109  }
  0x23   : > { %v864_v33 = vand.u32 %v5532_v29, %v590_v5  ;;  %670 = vperm.xlu1 %7063, %v557_v27   ;;  %652 = vperm.xlu2 %7064, %v555_v41   ;;  %v6809_v8 = vld [vmem:[%s10839_s4 + $0x84] sm:$0xf]  ;;  %v5604_v9 = vor.u32 %v6811_v7, %v5603_v6  ;;  %v5605_v10 = vld [vmem:[%s10839_s4 + $0x90] sm:$0xf0]  ;;  %v5587_v14 = vld [vmem:[%s10839_s4 + $0x60] sm:$0xf] }
  0x24   : > { %5492 = vmatmul.msk.bf16.vlgmr.msra.gmra.mxu2 %vm580_vm2, %v6772_v24  ;;  %5491 = vmatmul.msk.bf16.vlgmr.msra.gmra.mxu0 %vm580_vm2, %v6771_v30  ;;  %v861_v40 = vand.u32 %v5528_v37, %v590_v5  ;;  %v785_v45 = vand.u32 %v5518_v44, %v590_v5  ;;  %v5608_v12 = vor.u32 %v6809_v8, %v5605_v10  ;;  %v6807_v15 = vld [vmem:[%s10839_s4 + $0x6c] sm:$0xf0]  ;;  %v6805_v16 = vld [vmem:[%s10839_s4 + $0x64] sm:$0xf]  ;;  %v5589_v18 = vld [vmem:[%s10839_s4 + $0x70] sm:$0xf0] }
  0x25   : > { %715 = vmatpush.bf16.msrb.mxu2 %v703_v25  ;;  %5493 = vmatmul.msk.bf16.vlgmr.msra.gmra.mxu1 %vm580_vm2, %v6771_v30  ;;  %v5588_v17 = vor.u32 %v6807_v15, %v5587_v14  ;;  %v5592_v19 = vor.u32 %v6805_v16, %v5589_v18  ;;  %v5571_v21 = vld [vmem:[%s10839_s4 + $0x40] sm:$0xf]  ;;  %v6803_v22 = vld [vmem:[%s10839_s4 + $0x4c] sm:$0xf0]  ;;  %v6801_v23 = vld [vmem:[%s10839_s4 + $0x44] sm:$0xf] }
  0x26   : > { %794 = vmatpush.bf16.msrb.mxu0 %v782_v31  ;;  %734 = vmatpush.bf16.msrb.mxu1 %v706_v32  ;;  %v5573_v25 = vld [vmem:[%s10839_s4 + $0x50] sm:$0xf0]  ;;  %v1012_v26 = vld [vmem:[%s10839_s4 + $0x180] sm:$0x33]  ;;  %v6795_v44 = vld [vmem:[%s10839_s4 + $0xc] sm:$0xf0] }
  0x27   : > { %892 = vmatpush.bf16.msra.mxu3 %v864_v33  ;;  %v5576_v27 = vor.u32 %v6801_v23, %v5573_v25  ;;  %v1160_v28 = vunpack.c.l.b16 %v1012_v26  ;;  %v1161_v29 = vunpack.c.h.b16 %v1012_v26  ;;  %v5555_v32 = vld [vmem:[%s10839_s4 + $0x20] sm:$0xf]  ;;  %v6799_v33 = vld [vmem:[%s10839_s4 + $0x2c] sm:$0xf0]  ;;  %v6797_v35 = vld [vmem:[%s10839_s4 + $0x24] sm:$0xf] }
  0x28   : > { %v5556_v36 = vor.u32 %v6799_v33, %v5555_v32  ;;  %v5557_v37 = vld [vmem:[%s10839_s4 + $0x30] sm:$0xf0]  ;;  %v5539_v43 = vld [vmem:[%s10839_s4] sm:$0xf]  ;;  %v6839_v49 = vld [vmem:[%s10839_s4 + $0x16c] sm:$0xf0] }
  0x29   : > { %873 = vmatpush.bf16.msra.mxu2 %v861_v40  ;;  %v1212_v34 = vpack.c.b16 %v1160_v28, %v1160_v28  ;;  %v5560_v40 = vor.u32 %v6797_v35, %v5557_v37  ;;  %v5540_v48 = vor.u32 %v6795_v44, %v5539_v43  ;;  %v6793_v50 = vld [vmem:[%s10839_s4 + $0x4] sm:$0xf]  ;;  %v5717_v56 = vld [vmem:[%s10839_s4 + $0x170] sm:$0xf0]  ;;  %v5699_v59 = vld [vmem:[%s10839_s4 + $0x140] sm:$0xf] }
  0x2a   : > { %5535 = vmatmul.msk.bf16.vlgmr.msra.gmra.mxu3 %vm580_vm2, %v6771_v30  ;;  %675 = vperm.xlu0 %7062, %v558_v38   ;;  %v1213_v38 = vpack.c.b16 %v1161_v29, %v1161_v29  ;;  %v6837_v55 = vld [vmem:[%s10839_s4 + $0x164] sm:$0xf]  ;;  %v5701_v0 = vld [vmem:[%s10839_s4 + $0x150] sm:$0xf0]  ;;  %v6824_v2 = vld [vmem:[%s10839_s4 + $0xf4] sm:$0xf0] }
  0x2b   : > { %680 = vperm.xlu1 %7063, %v559_v39   ;;  %813 = vmatpush.bf16.msra.mxu1 %v785_v45  ;;  %v1273_v39 = vsel %vm1271_vm3, %v1212_v34, 0  ;;  %v5715_v45 = vld [vmem:[%s10839_s4 + $0x160] sm:$0xf]  ;;  %v5720_v57 = vor.u32 %v6837_v55, %v5717_v56  ;;  %v6833_v62 = vld [vmem:[%s10839_s4 + $0x144] sm:$0xf]  ;;  %vm1525_vm7 = vcmask 89088  }
  0x2c   : > { %1284 = vmatpush.bf16.msra.mxu0 %v5652_v51  ;;  %v1276_v42 = vsel %vm1271_vm3, %v1213_v38, 0  ;;  %v5541_v51 = vld [vmem:[%s10839_s4 + $0x10] sm:$0xf0]  ;;  %v5716_v52 = vor.u32 %v6839_v49, %v5715_v45  ;;  %v5704_v6 = vor.u32 %v6833_v62, %v5701_v0  ;;  %v6822_v8 = vld [vmem:[%s10839_s4 + $0xec] sm:$0xf]  ;;  %s10886_s5 = sld [smem:[#allocation37_spill]] }
  0x2d   : > { %1344 = vmatpush.bf16.msrb.mxu3 %v1276_v42  ;;  %v5683_v15 = vld [vmem:[%s10839_s4 + $0x120] sm:$0xf]  ;;  %v6831_v16 = vld [vmem:[%s10839_s4 + $0x12c] sm:$0xf0]  ;;  %v6818_v25 = vld [vmem:[%s10839_s4 + $0xcc] sm:$0xf] }
  0x2e   : > { %v5684_v18 = vor.u32 %v6831_v16, %v5683_v15  ;;  %v5645_v26 = vld [vmem:[%s10839_s4 + $0xd8] sm:$0xf0]  ;;  %v5667_v32 = vld [vmem:[%s10839_s4 + $0x100] sm:$0xf]  ;;  %v6827_v33 = vld [vmem:[%s10839_s4 + $0x10c] sm:$0xf0] }
  0x2f   : > { %v5648_v28 = vor.u32 %v6818_v25, %v5645_v26  ;;  %v6825_v34 = vld [vmem:[%s10839_s4 + $0x104] sm:$0xf]  ;;  %v5668_v35 = vor.u32 %v6827_v33, %v5667_v32  ;;  %v5627_v37 = vld [vmem:[%s10839_s4 + $0xa8] sm:$0xf]  ;;  %v6816_v38 = vld [vmem:[%s10839_s4 + $0xb4] sm:$0xf0] }
  0x30   : > { %1285 = vmatpush.bf16.msra.mxu0 %v5636_v58  ;;  %v6814_v42 = vld [vmem:[%s10839_s4 + $0xac] sm:$0xf]  ;;  %v5629_v43 = vld [vmem:[%s10839_s4 + $0xb8] sm:$0xf0]  ;;  %v5611_v49 = vld [vmem:[%s10839_s4 + $0x88] sm:$0xf] }
  0x31   : > { %1345 = vmatpush.bf16.msrb.mxu3 %v5720_v57  ;;  %v5632_v45 = vor.u32 %v6814_v42, %v5629_v43  ;;  %v5613_v55 = vld [vmem:[%s10839_s4 + $0x98] sm:$0xf0]  ;;  %v5595_v0 = vld [vmem:[%s10839_s4 + $0x68] sm:$0xf]  ;;  %v6800_v42 = vld [vmem:[%s10839_s4 + $0x34] sm:$0xf0] }
  0x32   : > { %v1013_v25 = vld [vmem:[%s10839_s4 + $0x188] sm:$0x33]  ;;  %vm1665_vm8 = vcmask 261120   ;;  %s10901_s21 = smov 11   ;;  %s10903_s23 = smov 60   ;;  %vm4146_vm9 = vcmask 1040384  }
  0x33   : > { %v1162_v32 = vunpack.c.l.b16 %v1013_v25  ;;  %v1163_v33 = vunpack.c.h.b16 %v1013_v25  ;;  %s10915_s26 = smov 30   ;;  %vm4133_vm10 = vcmask 400384   ;;  %s7704_s24 = smov 81   ;;  %vm4357_vm11 = vcmask 23552  }
  0x34   : > { %5505 = vmatmul.msk.bf16.vlgmr.msrb.gmra.mxu2 %vm580_vm2, %v6771_v30  ;;  %5519 = vmatmul.msk.bf16.vlgmr.msrb.gmra.mxu0 %vm580_vm2, %v6771_v30  ;;  %s7710_s15 = smov 106   ;;  %vm4730_vm12 = vcmask 523264   ;;  %vm5224_vm13 = vcmask 203776   ;;  %s10956_s27 = sld [smem:[#allocation38_spill]]  ;;  %vm5412_vm14 = vcmask 1024  }
  0x35   : > { %5494 = vmatmul.msk.bf16.gmra.mxu1 %vm580_vm2, %v6772_v24  ;;  %1322 = vmatpush.bf16.msrb.mxu2 %v5656_v53  ;;  %v5544_v53 = vor.u32 %v6793_v50, %v5541_v51  ;;  %v6812_v50 = vld [vmem:[%s10839_s4 + $0x94] sm:$0xf0]  ;;  %v6810_v51 = vld [vmem:[%s10839_s4 + $0x8c] sm:$0xf]  ;;  %v1214_v43 = vpack.c.b16 %v1162_v32, %v1162_v32  ;;  %s5474_s2 = sshll.u32 %s10961_s25, 1  ;;  %s10957_s17 = sld [smem:[#allocation39_spill]] }
  0x36   : > { %1286 = vmatpush.bf16.msra.mxu0 %v5620_v1  ;;  %v5659_v1 = vld [vmem:[%s10839_s4 + $0xe8] sm:$0xf]  ;;  %1346 = vmatpush.bf16.msrb.mxu3 %v5704_v6 }
  0x37   : > { %v5660_v7 = vor.u32 %v6824_v2, %v5659_v1 }
  0x39   : > { %1323 = vmatpush.bf16.msrb.mxu2 %v5640_v60  ;;  %v6835_v60 = vld [vmem:[%s10839_s4 + $0x14c] sm:$0xf0] }
  0x3a   : > { %5536 = vmatmul.msk.bf16.gmra.mxu3 %vm580_vm2, %v6772_v24  ;;  %1287 = vmatpush.bf16.msra.mxu0 %v5604_v9  ;;  %v5700_v63 = vor.u32 %v6835_v60, %v5699_v59  ;;  %v5661_v9 = vld [vmem:[%s10839_s4 + $0xf8] sm:$0xf0]  ;;  %v5616_v59 = vor.u32 %v6810_v51, %v5613_v55 }
  0x3b   : > { %v5664_v14 = vor.u32 %v6822_v8, %v5661_v9  ;;  %v5565_v51 = vld [vmem:[%s10839_s4 + $0x38] sm:$0xf0] }
  0x3d   : > { %1324 = vmatpush.bf16.msrb.mxu2 %v5624_v3 }
  0x3e   : > { %1288 = vmatpush.bf16.msra.mxu0 %v5588_v17  ;;  %v6829_v17 = vld [vmem:[%s10839_s4 + $0x124] sm:$0xf] }
  0x41   : > { %1325 = vmatpush.bf16.msrb.mxu2 %v5608_v12 }
  0x44   : > { %5506 = vmatmul.msk.bf16.gmra.mxu2 %vm580_vm2, %v6772_v24  ;;  %5520 = vmatmul.msk.bf16.gmra.mxu0 %vm580_vm2, %v6772_v24 }
  0x45   : > { %5507 = vmatmul.msk.bf16.vlgmr.msrb.gmra.mxu1 %vm580_vm2, %v6771_v30  ;;  %1326 = vmatpush.bf16.msrb.mxu2 %v5592_v19  ;;  %v5685_v19 = vld [vmem:[%s10839_s4 + $0x130] sm:$0xf0] }
  0x46   : > { %1306 = vmatpush.bf16.msrb.mxu1 %v1273_v39  ;;  %v5688_v23 = vor.u32 %v6829_v17, %v5685_v19  ;;  %v5579_v19 = vld [vmem:[%s10839_s4 + $0x48] sm:$0xf] }
  0x48   : > { %1347 = vmatpush.bf16.msrb.mxu3 %v5688_v23 }
  0x49   : > { %1327 = vmatpush.bf16.msrb.mxu2 %v5576_v27 }
  0x4a   : > { %1307 = vmatpush.bf16.msrb.mxu1 %v5716_v52 }
  0x4d   : > { %1328 = vmatpush.bf16.msrb.mxu2 %v5560_v40  ;;  %v5628_v40 = vor.u32 %v6816_v38, %v5627_v37 }
  0x4e   : > { %1308 = vmatpush.bf16.msrb.mxu1 %v5700_v63 }
  0x51   : > { %1329 = vmatpush.bf16.msrb.mxu2 %v5544_v53  ;;  %v5612_v53 = vor.u32 %v6812_v50, %v5611_v49 }
  0x52   : > { %1309 = vmatpush.bf16.msrb.mxu1 %v5684_v18 }
  0x54   : > { %5533 = vmatmul.msk.bf16.vlgmr.msra.gmra.mxu2 %vm580_vm2, %v6771_v30 }
  0x55   : > { %5508 = vmatmul.msk.bf16.gmra.mxu1 %vm580_vm2, %v6772_v24  ;;  %1398 = vmatpush.bf16.msra.mxu2 %v5664_v14 }
  0x56   : > { %1310 = vmatpush.bf16.msrb.mxu1 %v5668_v35 }
  0x59   : > { %1399 = vmatpush.bf16.msra.mxu2 %v5648_v28 }
  0x5d   : > { %1400 = vmatpush.bf16.msra.mxu2 %v5632_v45  ;;  %v6798_v45 = vld [vmem:[%s10839_s4 + $0x2c] sm:$0xf] }
  0x5e   : > { %v5568_v55 = vor.u32 %v6798_v45, %v5565_v51  ;;  %v6832_v45 = vld [vmem:[%s10839_s4 + $0x134] sm:$0xf0] }
  0x61   : > { %1401 = vmatpush.bf16.msra.mxu2 %v5616_v59 }
  0x64   : > { %5534 = vmatmul.msk.bf16.gmra.mxu2 %vm580_vm2, %v6772_v24 }
  0x65   : > { %5521 = vmatmul.msk.bf16.vlgmr.msra.gmra.mxu1 %vm580_vm2, %v6771_v30 }
  0x74   : > { %v8140_v6 = vpop.permute.xlu2 %647 }
  0x75   : > { %5522 = vmatmul.msk.bf16.gmra.mxu1 %vm580_vm2, %v6772_v24  ;;  %v5572_v24 = vor.u32 %v6803_v22, %v5571_v21  ;;  %v5643_v21 = vld [vmem:[%s10839_s4 + $0xc8] sm:$0xf]  ;;  %v6820_v22 = vld [vmem:[%s10839_s4 + $0xd4] sm:$0xf0] }
  0x77   : > { %1289 = vmatpush.bf16.msra.mxu0 %v5572_v24  ;;  %v5644_v24 = vor.u32 %v6820_v22, %v5643_v21  ;;  %v6804_v21 = vld [vmem:[%s10839_s4 + $0x54] sm:$0xf0] }
  0x78   : > { %v5580_v23 = vor.u32 %v6804_v21, %v5579_v19 }
  0x7b   : > { %1290 = vmatpush.bf16.msra.mxu0 %v5556_v36  ;;  %v5669_v36 = vld [vmem:[%s10839_s4 + $0x110] sm:$0xf0] }
  0x7c   : > { %v5672_v39 = vor.u32 %v6825_v34, %v5669_v36 }
  0x7e   : > { %1348 = vmatpush.bf16.msrb.mxu3 %v5672_v39 }
  0x7f   : > { %1291 = vmatpush.bf16.msra.mxu0 %v5540_v48 }
  0x83   : > { %1360 = vmatpush.bf16.msrb.mxu0 %v5660_v7 }
  0x87   : > { %1361 = vmatpush.bf16.msrb.mxu0 %v5644_v24  ;;  %v5581_v24 = vld [vmem:[%s10839_s4 + $0x58] sm:$0xf0] }
  0x8b   : > { %1362 = vmatpush.bf16.msrb.mxu0 %v5628_v40  ;;  %v5563_v40 = vld [vmem:[%s10839_s4 + $0x28] sm:$0xf] }
  0x8c   : > { %v8045_v10 = vpop.permute.xlu0 %637  ;;  %v5564_v50 = vor.u32 %v6800_v42, %v5563_v40  ;;  %v5709_v42 = vld [vmem:[%s10839_s4 + $0x158] sm:$0xf0] }
  0x8d   : > { %v8073_v27 = vpop.permute.xlu1 %665 }
  0x8f   : > { %1363 = vmatpush.bf16.msrb.mxu0 %v5612_v53  ;;  %v1279_v53 = vsel %vm1271_vm3, %v1214_v43, 0  ;;  %v5691_v43 = vld [vmem:[%s10839_s4 + $0x128] sm:$0xf] }
  0x90   : > { %1382 = vmatpush.bf16.msra.mxu1 %v1279_v53 }
  0x94   : > { %v8112_v52 = vpop.permute.xlu0 %642 }
  0x95   : > { %v8134_v1 = vpop.permute.xlu1 %670 }
  0x9c   : > { %v8231_v25 = vpop.permute.xlu0 %675 }
  0xa1   : > { %v7940_v11 = vpop.f32.mrf.mxu0 }
  0xa2   : > { %v7882_v46 = vpop.f32.mrf.mxu1  ;;  %v655_v56 = vmul.f32 %v8045_v10, %v7940_v11  ;;  %v6808_v11 = vld [vmem:[%s10839_s4 + $0x74] sm:$0xf0] }
  0xa3   : > { %v656_v38 = vmul.f32 %v8045_v10, %v7882_v46 }
  0xa4   : > { %v683_v2 = vadd.f32 %v8073_v27, %v655_v56 }
  0xa7   : > { %v7884_v47 = vpop.f32.mrf.mxu2 }
  0xa9   : > { %v7973_v30 = vpop.f32.mrf.mxu0 }
  0xaa   : > { %v7898_v54 = vpop.f32.mrf.mxu1  ;;  %v657_v57 = vmul.f32 %v8112_v52, %v7973_v30  ;;  %v6806_v30 = vld [vmem:[%s10839_s4 + $0x6c] sm:$0xf] }
  0xac   : > { %v685_v7 = vadd.f32 %v8134_v1, %v657_v57 }
  0xad   : > { %v8148_v17 = vpop.f32.mrf.mxu3 }
  0xaf   : > { %v7912_v61 = vpop.f32.mrf.mxu2 }
  0xb1   : > { %v8037_v3 = vpop.f32.mrf.mxu0 }
  0xb2   : > { %v7926_v5 = vpop.f32.mrf.mxu1  ;;  %v825_v14 = vmul.f32 %v8037_v3, %v8045_v10  ;;  %v6802_v3 = vld [vmem:[%s10839_s4 + $0x4c] sm:$0xf] }
  0xb3   : > { %v5584_v28 = vor.u32 %v6802_v3, %v5581_v24  ;;  %v658_v24 = vmul.f32 %v8112_v52, %v7898_v54  ;;  %v5707_v54 = vld [vmem:[%s10839_s4 + $0x148] sm:$0xf] }
  0xb4   : > { %v833_v35 = vadd.f32 %v825_v14, %v8073_v27  ;;  %v6840_v14 = vld [vmem:[%s10839_s4 + $0x174] sm:$0xf0] }
  0xb5   : > { %v686_v51 = vadd.f32 %v8134_v1, %v658_v24 }
  0xb7   : > { %v7942_v13 = vpop.f32.mrf.mxu2 }
  0xb8   : > { %v746_v60 = vmul.f32 %v7942_v13, %v8045_v10  ;;  %v5596_v13 = vor.u32 %v6808_v11, %v5595_v0  ;;  %v659_v11 = vmul.f32 %v8140_v6, %v7884_v47 }
  0xb9   : > { %v798_v48 = vpop.f32.mrf.mxu0 }
  0xba   : > { %v7956_v20 = vpop.f32.mrf.mxu1  ;;  %v754_v9 = vadd.f32 %v746_v60, %v8073_v27  ;;  %v827_v16 = vmul.f32 %v798_v48, %v8112_v52  ;;  %1364 = vmatpush.bf16.msrb.mxu0 %v5596_v13  ;;  %v1215_v48 = vpack.c.b16 %v1163_v33, %v1163_v33  ;;  %v6796_v13 = vld [vmem:[%s10839_s4 + $0x14] sm:$0xf0] }
  0xbc   : > { %v762_v34 = vmax.f32 %v683_v2, %v754_v9  ;;  %v835_v37 = vadd.f32 %v827_v16, %v8134_v1  ;;  %v1282_v56 = vsel %vm1271_vm3, %v1215_v48, 0  ;;  %v8207_v2 = vpop.permute.xlu2 %652  ;;  %v5549_v16 = vld [vmem:[%s10839_s4 + $0x18] sm:$0xf0]  ;;  %v8264_v48 = vpop.permute.xlu1 %680 }
  0xbd   : > { %1420 = vmatpush.bf16.msra.mxu3 %v1282_v56 }
  0xbe   : > { %1365 = vmatpush.bf16.msrb.mxu0 %v5580_v23  ;;  %v841_v57 = vmax.f32 %v762_v34, %v833_v35  ;;  %v5725_v23 = vld [vmem:[%s10839_s4 + $0x178] sm:$0xf0]  ;;  %v687_v34 = vadd.f32 %v8231_v25, %v659_v11  ;;  %v661_v35 = vmul.f32 %v8207_v2, %v7912_v61 }
  0xbf   : > { %v7975_v31 = vpop.f32.mrf.mxu2 }
  0xc0   : > { %v748_v62 = vmul.f32 %v7975_v31, %v8112_v52  ;;  %v5597_v31 = vld [vmem:[%s10839_s4 + $0x78] sm:$0xf0] }
  0xc1   : > { %v5600_v8 = vor.u32 %v6806_v30, %v5597_v31  ;;  %v8168_v26 = vpop.f32.mrf.mxu0  ;;  %v5547_v30 = vld [vmem:[%s10839_s4 + $0x8] sm:$0xf] }
  0xc2   : > { %v7990_v41 = vpop.f32.mrf.mxu1  ;;  %v756_v15 = vadd.f32 %v748_v62, %v8134_v1  ;;  %1366 = vmatpush.bf16.msrb.mxu0 %v5564_v50  ;;  %v5723_v31 = vld [vmem:[%s10839_s4 + $0x168] sm:$0xf]  ;;  %v5548_v9 = vor.u32 %v6796_v13, %v5547_v30  ;;  %v829_v61 = vmul.f32 %v8168_v26, %v8140_v6  ;;  %v905_v50 = vmul.f32 %v8148_v17, %v8045_v10 }
  0xc3   : > { %1402 = vmatpush.bf16.msra.mxu2 %v5600_v8  ;;  %v747_v0 = vmul.f32 %v7990_v41, %v8045_v10  ;;  %v5724_v21 = vor.u32 %v6840_v14, %v5723_v31  ;;  %v5692_v17 = vor.u32 %v6832_v45, %v5691_v43  ;;  %v689_v30 = vadd.f32 %v8264_v48, %v661_v35  ;;  %v5675_v31 = vld [vmem:[%s10839_s4 + $0x108] sm:$0xf] }
  0xc4   : > { %v764_v36 = vmax.f32 %v685_v7, %v756_v15  ;;  %v896_v7 = vpop.f32.mrf.mxu3  ;;  %v6794_v15 = vld [vmem:[%s10839_s4 + $0xc] sm:$0xf]  ;;  %v837_v11 = vadd.f32 %v829_v61, %v8231_v25  ;;  %v662_v43 = vmul.f32 %v8207_v2, %v7956_v20 }
  0xc5   : > { %v5552_v3 = vor.u32 %v6794_v15, %v5549_v16  ;;  %v755_v33 = vadd.f32 %v747_v0, %v8073_v27  ;;  %1383 = vmatpush.bf16.msra.mxu1 %v5724_v21  ;;  %v913_v15 = vadd.f32 %v905_v50, %v8073_v27  ;;  %v6863_v50 = vld [vmem:[%s10839_s4 + $0x23c] sm:$0xf0] }
  0xc6   : > { %v843_v59 = vmax.f32 %v764_v36, %v835_v37  ;;  %1367 = vmatpush.bf16.msrb.mxu0 %v5548_v9 }
  0xc7   : > { %v8017_v58 = vpop.f32.mrf.mxu2  ;;  %1403 = vmatpush.bf16.msra.mxu2 %v5584_v28 }
  0xc8   : > { %v750_v41 = vmul.f32 %v8017_v58, %v8140_v6 }
  0xc9   : > { %v803_v36 = vpop.f32.mrf.mxu0 }
  0xca   : > { %v8047_v12 = vpop.f32.mrf.mxu1 }
  0xcb   : > { %1404 = vmatpush.bf16.msra.mxu2 %v5568_v55  ;;  %v749_v58 = vmul.f32 %v8047_v12, %v8112_v52  ;;  %v831_v55 = vmul.f32 %v803_v36, %v8207_v2 }
  0xcc   : > { %v899_v14 = vpop.f32.mrf.mxu3 }
  0xcd   : > { %v757_v26 = vadd.f32 %v749_v58, %v8134_v1  ;;  %v839_v9 = vadd.f32 %v831_v55, %v8264_v48 }
  0xcf   : > { %v8075_v29 = vpop.f32.mrf.mxu2  ;;  %1405 = vmatpush.bf16.msra.mxu2 %v5552_v3  ;;  %v6826_v3 = vld [vmem:[%s10839_s4 + $0x10c] sm:$0xf] }
  0xd0   : > { %v752_v12 = vmul.f32 %v8075_v29, %v8207_v2  ;;  %v6836_v29 = vld [vmem:[%s10839_s4 + $0x154] sm:$0xf0] }
  0xd1   : > { %v5708_v40 = vor.u32 %v6836_v29, %v5707_v54  ;;  %v5953_v54 = vld [vmem:[%s10839_s4 + $0x270] sm:$0xf]  ;;  %v6871_v29 = vld [vmem:[%s10839_s4 + $0x27c] sm:$0xf0] }
  0xd2   : > { %v8101_v44 = vpop.f32.mrf.mxu1  ;;  %v760_v53 = vadd.f32 %v752_v12, %v8264_v48  ;;  %v5954_v61 = vor.u32 %v6871_v29, %v5953_v54  ;;  %v5985_v54 = vld [vmem:[%s10839_s4 + $0x2b0] sm:$0xf]  ;;  %v6879_v29 = vld [vmem:[%s10839_s4 + $0x2bc] sm:$0xf0] }
  0xd3   : > { %1384 = vmatpush.bf16.msra.mxu1 %v5708_v40  ;;  %v751_v36 = vmul.f32 %v8101_v44, %v8140_v6  ;;  %v660_v40 = vmul.f32 %v8140_v6, %v7926_v5  ;;  %v5937_v5 = vld [vmem:[%s10839_s4 + $0x250] sm:$0xf] }
  0xd7   : > { %v875_v63 = vpop.f32.mrf.mxu2  ;;  %1385 = vmatpush.bf16.msra.mxu1 %v5692_v17 }
  0xd8   : > { %v904_v22 = vmul.f32 %v875_v63, %v8045_v10  ;;  %v8192_v63 = vadd.f32 %v8073_v27, %v656_v38  ;;  %v6834_v38 = vld [vmem:[%s10839_s4 + $0x14c] sm:$0xf] }
  0xda   : > { %v8150_v18 = vpop.f32.mrf.mxu1  ;;  %v912_v49 = vadd.f32 %v904_v22, %v8073_v27  ;;  %v6838_v22 = vld [vmem:[%s10839_s4 + $0x16c] sm:$0xf] }
  0xdb   : > { %v5728_v32 = vor.u32 %v6838_v22, %v5725_v23  ;;  %v5677_v22 = vld [vmem:[%s10839_s4 + $0x118] sm:$0xf0]  ;;  %v753_v44 = vmul.f32 %v8150_v18, %v8207_v2  ;;  %v6867_v18 = vld [vmem:[%s10839_s4 + $0x25c] sm:$0xf0] }
  0xdc   : > { %v920_v47 = vmax.f32 %v841_v57, %v912_v49  ;;  %v6830_v57 = vld [vmem:[%s10839_s4 + $0x12c] sm:$0xf]  ;;  %v5680_v35 = vor.u32 %v6826_v3, %v5677_v22  ;;  %v5938_v20 = vor.u32 %v6867_v18, %v5937_v5  ;;  %v6843_v3 = vld [vmem:[%s10839_s4 + $0x19c] sm:$0xf0]  ;;  %v6025_v5 = vld [vmem:[%s10839_s4 + $0x2f8] sm:$0xf] }
  0xdd   : > { %1421 = vmatpush.bf16.msra.mxu3 %v5728_v32  ;;  %v6888_v18 = vld [vmem:[%s10839_s4 + $0x304] sm:$0xf0] }
  0xdf   : > { %v877_v39 = vpop.f32.mrf.mxu2 }
  0xe0   : > { %v906_v46 = vmul.f32 %v877_v39, %v8112_v52  ;;  %v758_v39 = vadd.f32 %v750_v41, %v8231_v25  ;;  %v765_v41 = vmax.f32 %v686_v51, %v757_v26  ;;  %v759_v26 = vadd.f32 %v751_v36, %v8231_v25 }
  0xe1   : > { %v688_v51 = vadd.f32 %v8231_v25, %v660_v40 }
  0xe2   : > { %v914_v60 = vadd.f32 %v906_v46, %v8134_v1  ;;  %v815_v62 = vpop.f32.mrf.mxu1  ;;  %v5712_v46 = vor.u32 %v6834_v38, %v5709_v42  ;;  %v766_v0 = vmax.f32 %v687_v34, %v758_v39 }
  0xe3   : > { %v826_v19 = vmul.f32 %v815_v62, %v8045_v10  ;;  %v907_v62 = vmul.f32 %v896_v7, %v8112_v52 }
  0xe4   : > { %v922_v8 = vmax.f32 %v843_v59, %v914_v60  ;;  %v5693_v59 = vld [vmem:[%s10839_s4 + $0x138] sm:$0xf0]  ;;  %v763_v60 = vmax.f32 %v8192_v63, %v755_v33  ;;  %v6828_v63 = vld [vmem:[%s10839_s4 + $0x114] sm:$0xf0]  ;;  %1422 = vmatpush.bf16.msra.mxu3 %v5712_v46  ;;  %v845_v12 = vmax.f32 %v766_v0, %v837_v11  ;;  %v5921_v46 = vld [vmem:[%s10839_s4 + $0x230] sm:$0xf] }
  0xe5   : > { %v834_v49 = vadd.f32 %v826_v19, %v8073_v27  ;;  %v915_v16 = vadd.f32 %v907_v62, %v8134_v1  ;;  %v5676_v21 = vor.u32 %v6828_v63, %v5675_v31  ;;  %v5922_v17 = vor.u32 %v6863_v50, %v5921_v46  ;;  %v5905_v0 = vld [vmem:[%s10839_s4 + $0x210] sm:$0xf]  ;;  %v6859_v11 = vld [vmem:[%s10839_s4 + $0x21c] sm:$0xf0]  ;;  %v6884_v46 = vld [vmem:[%s10839_s4 + $0x2e4] sm:$0xf0] }
  0xe6   : > { %v8235_v28 = vpack.c.bf16 %v922_v8, %v920_v47  ;;  %v5696_v47 = vor.u32 %v6830_v57, %v5693_v59  ;;  %v768_v8 = vmax.f32 %v689_v30, %v760_v53  ;;  %v761_v53 = vadd.f32 %v753_v44, %v8264_v48  ;;  %v8435_v44 = vld [vmem:[%s10839_s4 + $0x318] sm:$0x33] }
  0xe7   : > { %v880_v37 = vpop.f32.mrf.mxu2  ;;  %v842_v7 = vmax.f32 %v763_v60, %v834_v49  ;;  %1386 = vmatpush.bf16.msra.mxu1 %v5676_v21  ;;  %v901_v49 = vpop.f32.mrf.mxu3  ;;  %v909_v57 = vmul.f32 %v899_v14, %v8140_v6  ;;  %v767_v60 = vmax.f32 %v688_v51, %v759_v26  ;;  %v5841_v21 = vld [vmem:[%s10839_s4 + $0x190] sm:$0xf]  ;;  %v5993_v51 = vld [vmem:[%s10839_s4 + $0x2b8] sm:$0xf] }
  0xe8   : > { %1292 = vmatmul.bf16.vlgmr.msra.gmra.mxu0 %v8235_v28  ;;  %1330 = vmatmul.bf16.vlgmr.msrb.gmra.mxu2 %v8235_v28  ;;  %v908_v13 = vmul.f32 %v880_v37, %v8140_v6  ;;  %v911_v62 = vmul.f32 %v901_v49, %v8207_v2  ;;  %v5842_v22 = vor.u32 %v6843_v3, %v5841_v21 }
  0xe9   : > { %v921_v27 = vmax.f32 %v842_v7, %v913_v15  ;;  %1423 = vmatpush.bf16.msra.mxu3 %v5696_v47  ;;  %v917_v31 = vadd.f32 %v909_v57, %v8231_v25  ;;  %v6026_v49 = vor.u32 %v6888_v18, %v6025_v5  ;;  %v6876_v57 = vld [vmem:[%s10839_s4 + $0x2a4] sm:$0xf0] }
  0xea   : > { %v817_v56 = vpop.f32.mrf.mxu1  ;;  %v916_v23 = vadd.f32 %v908_v13, %v8231_v25  ;;  %v919_v63 = vadd.f32 %v911_v62, %v8264_v48 }
  0xeb   : > { %v828_v10 = vmul.f32 %v817_v56, %v8112_v52  ;;  %v690_v56 = vadd.f32 %v8264_v48, %v662_v43 }
  0xec   : > { %v924_v38 = vmax.f32 %v845_v12, %v916_v23  ;;  %v8397_v23 = vld [vmem:[%s10839_s4 + $0x310] sm:$0x33] }
  0xed   : > { %v836_v52 = vadd.f32 %v828_v10, %v8134_v1  ;;  %v847_v1 = vmax.f32 %v768_v8, %v839_v9  ;;  %1424 = vmatpush.bf16.msra.mxu3 %v5680_v35  ;;  %v769_v30 = vmax.f32 %v690_v56, %v761_v53  ;;  %v5889_v8 = vld [vmem:[%s10839_s4 + $0x1f0] sm:$0xf]  ;;  %v6855_v9 = vld [vmem:[%s10839_s4 + $0x1fc] sm:$0xf0]  ;;  %v6880_v53 = vld [vmem:[%s10839_s4 + $0x2c4] sm:$0xf0] }
  0xee   : > { %v5890_v14 = vor.u32 %v6855_v9, %v5889_v8  ;;  %v6883_v35 = vld [vmem:[%s10839_s4 + $0x2dc] sm:$0xf0]  ;;  %v5977_v56 = vld [vmem:[%s10839_s4 + $0x298] sm:$0xf] }
  0xef   : > { %v844_v58 = vmax.f32 %v765_v41, %v836_v52  ;;  %v882_v19 = vpop.f32.mrf.mxu2 }
  0xf0   : > { %v910_v24 = vmul.f32 %v882_v19, %v8207_v2 }
  0xf1   : > { %v923_v32 = vmax.f32 %v844_v58, %v915_v16  ;;  %v5857_v16 = vld [vmem:[%s10839_s4 + $0x1b0] sm:$0xf]  ;;  %v6847_v58 = vld [vmem:[%s10839_s4 + $0x1bc] sm:$0xf0] }
  0xf2   : > { %v918_v33 = vadd.f32 %v910_v24, %v8264_v48  ;;  %v820_v34 = vpop.f32.mrf.mxu1  ;;  %v5858_v19 = vor.u32 %v6847_v58, %v5857_v16  ;;  %v2058_v24 = vunpack.c.l.b16 %v8397_v23 }
  0xf3   : > { %v8306_v37 = vpack.c.bf16 %v923_v32, %v921_v27  ;;  %v830_v42 = vmul.f32 %v820_v34, %v8140_v6  ;;  %v6017_v32 = vld [vmem:[%s10839_s4 + $0x2f0] sm:$0xf] }
  0xf4   : > { %v926_v39 = vmax.f32 %v847_v1, %v918_v33  ;;  %v2110_v12 = vpack.c.b16 %v2058_v24, %v2058_v24  ;;  %v6887_v1 = vld [vmem:[%s10839_s4 + $0x2fc] sm:$0xf0]  ;;  %v6001_v34 = vld [vmem:[%s10839_s4 + $0x2d0] sm:$0xf] }
  0xf5   : > { %5729 = vmatmul.msk.bf16.vlgmr.msrb.gmra.mxu1 %vm1264_vm4, %v8306_v37  ;;  %5731 = vmatmul.msk.bf16.vlgmr.msrb.gmra.mxu3 %vm1264_vm4, %v8306_v37  ;;  %v838_v55 = vadd.f32 %v830_v42, %v8231_v25  ;;  %v5873_v25 = vld [vmem:[%s10839_s4 + $0x1d0] sm:$0xf]  ;;  %v6018_v33 = vor.u32 %v6887_v1, %v6017_v32  ;;  %v6002_v36 = vor.u32 %v6883_v35, %v6001_v34  ;;  %v2060_v42 = vunpack.c.l.b16 %v8435_v44 }
  0xf6   : > { %v8325_v45 = vpack.c.bf16 %v926_v39, %v924_v38  ;;  %2174 = vmatpush.bf16.msrb.mxu3 %v5954_v61  ;;  %v2163_v27 = vsel %vm1271_vm3, %v2110_v12, 0  ;;  %v5986_v38 = vor.u32 %v6879_v29, %v5985_v54  ;;  %v5969_v39 = vld [vmem:[%s10839_s4 + $0x290] sm:$0xf]  ;;  %v6875_v61 = vld [vmem:[%s10839_s4 + $0x29c] sm:$0xf0] }
  0xf7   : > { %v846_v13 = vmax.f32 %v767_v60, %v838_v55  ;;  %v5970_v40 = vor.u32 %v6875_v61, %v5969_v39  ;;  %v2112_v43 = vpack.c.b16 %v2060_v42, %v2060_v42  ;;  %v5994_v55 = vor.u32 %v6880_v53, %v5993_v51 }
  0xf8   : > { %1297 = vmatmul.bf16.gmra.mxu0 %v8325_v45  ;;  %1335 = vmatmul.bf16.gmra.mxu2 %v8325_v45 }
  0xf9   : > { %v925_v7 = vmax.f32 %v846_v13, %v917_v31  ;;  %v2169_v26 = vsel %vm1271_vm3, %v2112_v43, 0 }
  0xfa   : > { %v822_v59 = vpop.f32.mrf.mxu1  ;;  %2175 = vmatpush.bf16.msrb.mxu3 %v5938_v20  ;;  %v6009_v20 = vld [vmem:[%s10839_s4 + $0x2d8] sm:$0xf] }
  0xfb   : > { %v832_v10 = vmul.f32 %v822_v59, %v8207_v2  ;;  %v5906_v2 = vor.u32 %v6859_v11, %v5905_v0  ;;  %v6010_v50 = vor.u32 %v6884_v46, %v6009_v20  ;;  %v5978_v59 = vor.u32 %v6876_v57, %v5977_v56 }
  0xfd   : > { %v840_v6 = vadd.f32 %v832_v10, %v8264_v48  ;;  %v6851_v48 = vld [vmem:[%s10839_s4 + $0x1dc] sm:$0xf0] }
  0xfe   : > { %2176 = vmatpush.bf16.msrb.mxu3 %v5922_v17  ;;  %v5874_v15 = vor.u32 %v6851_v48, %v5873_v25 }
  0xff   : > { %v848_v41 = vmax.f32 %v769_v30, %v840_v6 }
 0x101   : > { %v927_v52 = vmax.f32 %v848_v41, %v919_v63 }
 0x102   : > { %2177 = vmatpush.bf16.msrb.mxu3 %v5906_v2 }
 0x103   : > { %v8358_v47 = vpack.c.bf16 %v927_v52, %v925_v7 }
 0x105   : > { %5730 = vmatmul.msk.bf16.gmra.mxu1 %vm1264_vm4, %v8358_v47  ;;  %5732 = vmatmul.msk.bf16.gmra.mxu3 %vm1264_vm4, %v8358_v47 }
 0x106   : > { %2178 = vmatpush.bf16.msrb.mxu3 %v5890_v14 }
 0x108   : > { %1368 = vmatmul.bf16.vlgmr.msrb.gmra.mxu0 %v8235_v28  ;;  %1406 = vmatmul.bf16.vlgmr.msra.gmra.mxu2 %v8235_v28 }
 0x10a   : > { %2179 = vmatpush.bf16.msrb.mxu3 %v5874_v15 }
 0x10e   : > { %2180 = vmatpush.bf16.msrb.mxu3 %v5858_v19 }
 0x112   : > { %2181 = vmatpush.bf16.msrb.mxu3 %v5842_v22 }
 0x115   : > { %5733 = vmatmul.msk.bf16.vlgmr.msra.gmra.mxu1 %vm1264_vm4, %v8306_v37  ;;  %5735 = vmatmul.msk.bf16.vlgmr.msra.gmra.mxu3 %vm1264_vm4, %v8306_v37 }
 0x116   : > { %2196 = vmatpush.bf16.msra.mxu3 %v2163_v27 }
 0x118   : > { %1373 = vmatmul.bf16.gmra.mxu0 %v8325_v45  ;;  %1411 = vmatmul.bf16.gmra.mxu2 %v8325_v45 }
 0x11a   : > { %2197 = vmatpush.bf16.msra.mxu3 %v6018_v33 }
 0x11e   : > { %2198 = vmatpush.bf16.msra.mxu3 %v6002_v36 }
 0x122   : > { %2199 = vmatpush.bf16.msra.mxu3 %v5986_v38 }
 0x125   : > { %5734 = vmatmul.msk.bf16.gmra.mxu1 %vm1264_vm4, %v8358_v47  ;;  %5736 = vmatmul.msk.bf16.gmra.mxu3 %vm1264_vm4, %v8358_v47 }
 0x126   : > { %2200 = vmatpush.bf16.msra.mxu3 %v5970_v40 }
 0x135   : > { %2182 = vmatmul.bf16.vlgmr.msrb.gmra.mxu3 %v8235_v28 }
 0x136   : > { %2272 = vmatpush.bf16.msrb.mxu3 %v2169_v26 }
 0x13a   : > { %2273 = vmatpush.bf16.msrb.mxu3 %v6026_v49 }
 0x13e   : > { %2274 = vmatpush.bf16.msrb.mxu3 %v6010_v50 }
 0x142   : > { %2275 = vmatpush.bf16.msrb.mxu3 %v5994_v55 }
 0x145   : > { %2187 = vmatmul.bf16.gmra.mxu3 %v8325_v45 }
 0x146   : > { %2276 = vmatpush.bf16.msrb.mxu3 %v5978_v59 }
 0x155   : > { %6031 = vmatmul.msk.bf16.vlgmr.msra.gmra.mxu3 %vm1264_vm4, %v8306_v37 }
 0x165   : > { %6032 = vmatmul.msk.bf16.gmra.mxu3 %vm1264_vm4, %v8358_v47  ;;  %v1293_v60 = vpop.f32.mrf.mxu0 }
 0x16b   : > { %v1331_v62 = vpop.f32.mrf.mxu2 }
 0x16d   : > { %v1295_v10 = vpop.f32.mrf.mxu0 }
 0x172   : > { %v1312_v17 = vpop.f32.mrf.mxu1 }
 0x173   : > { %v1333_v0 = vpop.f32.mrf.mxu2  ;;  %v8470_v6 = vadd.f32 %v1312_v17, %v1293_v60 }
 0x175   : > { %6035 = vmatmul.msk.bf16.vlgmr.msrb.gmra.mxu3 %vm1264_vm4, %v8306_v37  ;;  %v1298_v11 = vpop.f32.mrf.mxu0 }
 0x178   : > { %v1350_v30 = vpop.f32.mrf.mxu3 }
 0x179   : > { %v8476_v7 = vadd.f32 %v1350_v30, %v1331_v62 }
 0x17a   : > { %v1314_v13 = vpop.f32.mrf.mxu1 }
 0x17b   : > { %v8472_v31 = vadd.f32 %v1314_v13, %v1295_v10  ;;  %v1336_v41 = vpop.f32.mrf.mxu2  ;;  %v7100_v10 = vpack.i.bf16 %v8476_v7, %v8470_v6 }
 0x17d   : > { %v1587_v63 = vpack.c.bf16 %v8472_v31, %v8470_v6  ;;  %v1300_v8 = vpop.f32.mrf.mxu0 }
 0x180   : > { %v1352_v2 = vpop.f32.mrf.mxu3 }
 0x181   : > { %v8478_v52 = vadd.f32 %v1352_v2, %v1333_v0 }
 0x182   : > { %v1317_v9 = vpop.f32.mrf.mxu1 }
 0x183   : > { %v8482_v14 = vpack.i.bf16 %v8478_v52, %v8476_v7  ;;  %v1338_v25 = vpop.f32.mrf.mxu2  ;;  %v8488_v15 = vadd.f32 %v1317_v9, %v1298_v11  ;;  %v7115_v11 = vpack.i.bf16 %v8478_v52, %v8472_v31  ;;  %v7150_v9 = vpack.i.bf16 %v8472_v31, %v8470_v6  ;;  %v5955_v6 = vld [vmem:[%s10839_s4 + $0x280] sm:$0xf0] }
 0x185   : > { %7066 = vrot.lane.b32.xlu1 %v8482_v14, %s10862_s1  ;;  %6036 = vmatmul.msk.bf16.gmra.mxu3 %vm1264_vm4, %v8358_v47  ;;  %v1369_v3 = vpop.f32.mrf.mxu0 }
 0x188   : > { %v1355_v48 = vpop.f32.mrf.mxu3 }
 0x189   : > { %v1356_v16 = vadd.f32 %v1355_v48, %v1336_v41 }
 0x18a   : > { %v1319_v58 = vpop.f32.mrf.mxu1 }
 0x18b   : > { %v8490_v19 = vadd.f32 %v1319_v58, %v1300_v8  ;;  %v7070_v21 = vpack.i.bf16 %v1356_v16, %v8488_v15  ;;  %v1407_v27 = vpop.f32.mrf.mxu2 }
 0x18d   : > { %7071 = vrot.lane.b32.xlu2 %v7070_v21, %s10869_s28  ;;  %v1588_v22 = vpack.c.bf16 %v8490_v19, %v8488_v15  ;;  %v1371_v34 = vpop.f32.mrf.mxu0  ;;  %v7135_v13 = vpack.i.bf16 %v8490_v19, %v8488_v15 }
 0x190   : > { %v1357_v24 = vpop.f32.mrf.mxu3 }
 0x191   : > { %v1358_v12 = vadd.f32 %v1357_v24, %v1338_v25 }
 0x192   : > { %v1388_v32 = vpop.f32.mrf.mxu1 }
 0x193   : > { %v7075_v1 = vpack.i.bf16 %v1358_v12, %v1356_v16  ;;  %v7080_v33 = vpack.i.bf16 %v1358_v12, %v8490_v19  ;;  %v1389_v36 = vadd.f32 %v1388_v32, %v1369_v3  ;;  %v1409_v39 = vpop.f32.mrf.mxu2  ;;  %v5747_v19 = vld [vmem:[%s10886_s5 + $0x8] sm:$0xf] }
 0x195   : > { %7076 = vrot.lane.b32.xlu1 %v7075_v1, %s10862_s1  ;;  %7081 = vrot.lane.b32.xlu0 %v7080_v33, %s10869_s28  ;;  %v1374_v61 = vpop.f32.mrf.mxu0  ;;  %v7140_v8 = vpack.i.bf16 %v1389_v36, %v8476_v7  ;;  %s10902_s1 = smov 120  }
 0x198   : > { %v1426_v35 = vpop.f32.mrf.mxu3 }
 0x199   : > { %v1427_v54 = vadd.f32 %v1426_v35, %v1407_v27 }
 0x19a   : > { %v1390_v29 = vpop.f32.mrf.mxu1 }
 0x19b   : > { %v7085_v38 = vpack.i.bf16 %v1427_v54, %v1389_v36  ;;  %v1391_v42 = vadd.f32 %v1390_v29, %v1371_v34  ;;  %v1412_v18 = vpop.f32.mrf.mxu2 }
 0x19d   : > { %7086 = vrot.lane.b32.xlu2 %v7085_v38, %s10864_s29  ;;  %v1376_v50 = vpop.f32.mrf.mxu0  ;;  %v7120_v17 = vpack.i.bf16 %v1391_v42, %v1389_v36  ;;  %v7145_v48 = vpack.i.bf16 %v1391_v42, %v8478_v52 }
 0x1a0   : > { %v1428_v40 = vpop.f32.mrf.mxu3 }
 0x1a1   : > { %v1429_v43 = vadd.f32 %v1428_v40, %v1409_v39 }
 0x1a2   : > { %v1393_v26 = vpop.f32.mrf.mxu1 }
 0x1a3   : > { %v7090_v5 = vpack.i.bf16 %v1429_v43, %v1391_v42  ;;  %v1394_v20 = vadd.f32 %v1393_v26, %v1374_v61  ;;  %v1414_v57 = vpop.f32.mrf.mxu2  ;;  %v7170_v58 = vpack.i.bf16 %v1429_v43, %v1427_v54 }
 0x1a5   : > { %7091 = vrot.lane.b32.xlu0 %v7090_v5, %s10864_s29  ;;  %v7125_v30 = vpack.i.bf16 %v1394_v20, %v1356_v16 }
 0x1a8   : > { %v1431_v49 = vpop.f32.mrf.mxu3 }
 0x1a9   : > { %v1432_v46 = vadd.f32 %v1431_v49, %v1412_v18 }
 0x1aa   : > { %v1395_v51 = vpop.f32.mrf.mxu1 }
 0x1ab   : > { %v7095_v53 = vpack.i.bf16 %v1432_v46, %v1394_v20  ;;  %v1396_v55 = vadd.f32 %v1395_v51, %v1376_v50 }
 0x1ad   : > { %7096 = vrot.lane.b32.xlu2 %v7095_v53, %s10864_s29  ;;  %v7105_v56 = vpack.i.bf16 %v1396_v55, %v1394_v20  ;;  %v7130_v2 = vpack.i.bf16 %v1396_v55, %v1358_v12 }
 0x1af   : > { %7106 = vrot.lane.b32.xlu1 %v7105_v56, %s10866_s0 }
 0x1b0   : > { %v1433_v59 = vpop.f32.mrf.mxu3 }
 0x1b1   : > { %v1434_v60 = vadd.f32 %v1433_v59, %v1414_v57 }
 0x1b3   : > { %v7110_v62 = vpack.i.bf16 %v1434_v60, %v1396_v55  ;;  %v7165_v16 = vpack.i.bf16 %v1434_v60, %v1432_v46 }
 0x1b5   : > { %7111 = vrot.lane.b32.xlu0 %v7110_v62, %s10864_s29  ;;  %7101 = vrot.lane.b32.xlu2 %v7100_v10, %s10869_s28  ;;  %s7703_s29 = smov 103  }
 0x1b7   : > { %7121 = vrot.lane.b32.xlu1 %v7120_v17, %s10866_s0 }
 0x1b8   : > { %v2183_v0 = vpop.f32.mrf.mxu3 }
 0x1bd   : > { %7116 = vrot.lane.b32.xlu0 %v7115_v11, %s10869_s28  ;;  %7126 = vrot.lane.b32.xlu2 %v7125_v30, %s10858_s30 }
 0x1bf   : > { %7136 = vrot.lane.b32.xlu1 %v7135_v13, %s10860_s18 }
 0x1c0   : > { %v8515_v41 = vpop.f32.mrf.mxu3 }
 0x1c5   : > { %7131 = vrot.lane.b32.xlu0 %v7130_v2, %s10858_s30  ;;  %7141 = vrot.lane.b32.xlu2 %v7140_v8, %s10858_s30 }
 0x1c7   : > { %7151 = vrot.lane.b32.xlu1 %v7150_v9, %s10860_s18  ;;  %s10898_s18 = smov 41  }
 0x1c8   : > { %v8523_v25 = vpop.f32.mrf.mxu3 }
 0x1cd   : > { %7146 = vrot.lane.b32.xlu0 %v7145_v48, %s10858_s30  ;;  %7156 = vrot.lane.b32.xlu2 %v7075_v1, %s10854_s19  ;;  %s10897_s30 = smov 90  }
 0x1cf   : > { %7166 = vrot.lane.b32.xlu1 %v7165_v16, %s10856_s20 }
 0x1d0   : > { %v8529_v7 = vpop.f32.mrf.mxu3 }
 0x1d5   : > { %7161 = vrot.lane.b32.xlu0 %v8482_v14, %s10854_s19  ;;  %7171 = vrot.lane.b32.xlu2 %v7170_v58, %s10856_s20  ;;  %s10899_s19 = smov 109   ;;  %s10900_s20 = smov 79  }
 0x1d8   : > { %v2202_v21 = vpop.f32.mrf.mxu3 }
 0x1d9   : > { %v8534_v3 = vadd.f32 %v2202_v21, %v2183_v0 }
 0x1e7   : > { %v7072_v52 = vpop.permute.xlu2 %7071 }
 0x1e8   : > { %v7074_v38 = vunpack.i.h.bf16 %v7072_v52  ;;  %v7073_v14 = vunpack.i.l.bf16 %v7072_v52 }
 0x1ea   : > { %v1475_v42 = vsel %vm1472_vm5, %v7073_v14, %v7074_v38 }
 0x1f7   : > { %v7067_v24 = vpop.permute.xlu1 %7066  ;;  %v7087_v12 = vpop.permute.xlu2 %7086 }
 0x1f8   : > { %v7069_v34 = vunpack.i.h.bf16 %v7067_v24  ;;  %v7068_v35 = vunpack.i.l.bf16 %v7067_v24  ;;  %v7089_v57 = vunpack.i.h.bf16 %v7087_v12  ;;  %v7088_v59 = vunpack.i.l.bf16 %v7087_v12 }
 0x1fa   : > { %v1593_v39 = vpack.c.bf16 %v7069_v34, %v7068_v35  ;;  %v1567_v30 = vsel %vm1566_vm6, %v7088_v59, %v7089_v57 }
 0x207   : > { %v7077_v27 = vpop.permute.xlu1 %7076  ;;  %v7082_v33 = vpop.permute.xlu0 %7081 }
 0x208   : > { %v7079_v32 = vunpack.i.h.bf16 %v7077_v27  ;;  %v7078_v1 = vunpack.i.l.bf16 %v7077_v27  ;;  %v7084_v29 = vunpack.i.h.bf16 %v7082_v33  ;;  %v7083_v54 = vunpack.i.l.bf16 %v7082_v33  ;;  %v7097_v61 = vpop.permute.xlu2 %7096 }
 0x209   : > { %v7099_v20 = vunpack.i.h.bf16 %v7097_v61  ;;  %v7098_v46 = vunpack.i.l.bf16 %v7097_v61 }
 0x20a   : > { %v1594_v36 = vpack.c.bf16 %v7079_v32, %v7078_v1  ;;  %v1476_v40 = vsel %vm1472_vm5, %v7083_v54, %v7084_v29 }
 0x20b   : > { %v1592_v43 = vpack.c.bf16 %v1476_v40, %v1475_v42  ;;  %v1569_v62 = vsel %vm1566_vm6, %v7098_v46, %v7099_v20 }
 0x20c   : > { %1678 = vmatpush.bf16.msra.mxu0 %v1594_v36 }
 0x210   : > { %1679 = vmatpush.bf16.msra.mxu0 %v1593_v39  ;;  %v7102_v26 = vpop.permute.xlu2 %7101 }
 0x211   : > { %v7104_v13 = vunpack.i.h.bf16 %v7102_v26  ;;  %v7103_v2 = vunpack.i.l.bf16 %v7102_v26 }
 0x213   : > { %v1473_v12 = vsel %vm1472_vm5, %v7103_v2, %v7104_v13 }
 0x214   : > { %1680 = vmatpush.bf16.msra.mxu0 %v1592_v43 }
 0x217   : > { %v7092_v5 = vpop.permute.xlu0 %7091 }
 0x218   : > { %v7127_v49 = vpop.permute.xlu2 %7126  ;;  %v7094_v51 = vunpack.i.h.bf16 %v7092_v5  ;;  %v7093_v53 = vunpack.i.l.bf16 %v7092_v5 }
 0x219   : > { %v7129_v36 = vunpack.i.h.bf16 %v7127_v49  ;;  %v7128_v29 = vunpack.i.l.bf16 %v7127_v49 }
 0x21a   : > { %v1568_v0 = vsel %vm1566_vm6, %v7093_v53, %v7094_v51 }
 0x21b   : > { %v1601_v16 = vpack.c.bf16 %v1568_v0, %v1567_v30  ;;  %v1528_v5 = vsel %vm1525_vm7, %v7128_v29, %v7129_v36  ;;  %v6782_v0 = vld [vmem:[%s10886_s5 + $0x8] sm:$0xf0]  ;;  %v6872_v29 = vld [vmem:[%s10839_s4 + $0x284] sm:$0xf0] }
 0x220   : > { %v7142_v11 = vpop.permute.xlu2 %7141 }
 0x221   : > { %v7107_v18 = vpop.permute.xlu1 %7106  ;;  %v7144_v49 = vunpack.i.h.bf16 %v7142_v11 }
 0x222   : > { %v7109_v8 = vunpack.i.h.bf16 %v7107_v18  ;;  %v7108_v9 = vunpack.i.l.bf16 %v7107_v18 }
 0x224   : > { %v1600_v32 = vpack.c.bf16 %v7109_v8, %v7108_v9 }
 0x227   : > { %v7112_v50 = vpop.permute.xlu0 %7111 }
 0x228   : > { %v7114_v55 = vunpack.i.h.bf16 %v7112_v50  ;;  %v7113_v56 = vunpack.i.l.bf16 %v7112_v50  ;;  %v7157_v54 = vpop.permute.xlu2 %7156  ;;  %v7143_v50 = vunpack.i.l.bf16 %v7142_v11 }
 0x229   : > { %v7122_v60 = vpop.permute.xlu1 %7121  ;;  %v7159_v11 = vunpack.i.h.bf16 %v7157_v54  ;;  %v7158_v30 = vunpack.i.l.bf16 %v7157_v54 }
 0x22a   : > { %v1570_v10 = vsel %vm1566_vm6, %v7113_v56, %v7114_v55  ;;  %v7124_v24 = vunpack.i.h.bf16 %v7122_v60  ;;  %v7123_v1 = vunpack.i.l.bf16 %v7122_v60 }
 0x22b   : > { %v1602_v17 = vpack.c.bf16 %v1570_v10, %v1569_v62  ;;  %v1526_v62 = vsel %vm1525_vm7, %v7143_v50, %v7144_v49 }
 0x22c   : > { %v1599_v39 = vpack.c.bf16 %v7124_v24, %v7123_v1  ;;  %v6869_v24 = vld [vmem:[%s10839_s4 + $0x274] sm:$0xf] }
 0x22d   : > { %1707 = vmatpush.bf16.msrb.mxu1 %v1602_v17  ;;  %v5739_v17 = vld [vmem:[%s10886_s5] sm:$0xf] }
 0x22e   : > { %v8557_v15 = vor.u32 %v6782_v0, %v5739_v17  ;;  %v6860_v0 = vld [vmem:[%s10839_s4 + $0x224] sm:$0xf0] }
 0x22f   : > { %v7117_v48 = vpop.permute.xlu0 %7116 }
 0x230   : > { %v7119_v58 = vunpack.i.h.bf16 %v7117_v48  ;;  %v7118_v21 = vunpack.i.l.bf16 %v7117_v48  ;;  %v7172_v56 = vpop.permute.xlu2 %7171 }
 0x231   : > { %v7137_v52 = vpop.permute.xlu1 %7136  ;;  %1708 = vmatpush.bf16.msrb.mxu1 %v1601_v16  ;;  %v7174_v2 = vunpack.i.h.bf16 %v7172_v56  ;;  %v7173_v8 = vunpack.i.l.bf16 %v7172_v56  ;;  %v1596_v16 = vpack.c.bf16 %v7159_v11, %v7158_v30  ;;  %v6853_v56 = vld [vmem:[%s10839_s4 + $0x1f4] sm:$0xf]  ;;  %v2059_v11 = vunpack.c.h.b16 %v8397_v23 }
 0x232   : > { %v1474_v27 = vsel %vm1472_vm5, %v7118_v21, %v7119_v58  ;;  %v7139_v33 = vunpack.i.h.bf16 %v7137_v52  ;;  %v7138_v34 = vunpack.i.l.bf16 %v7137_v52 }
 0x233   : > { %v1591_v35 = vpack.c.bf16 %v1474_v27, %v1473_v12  ;;  %v1603_v52 = vpack.c.bf16 %v7174_v2, %v7173_v8  ;;  %v5741_v12 = vld [vmem:[%s10886_s5 + $0xc] sm:$0xf0]  ;;  %v5958_v27 = vor.u32 %v6869_v24, %v5955_v6  ;;  %v6849_v8 = vld [vmem:[%s10839_s4 + $0x1d4] sm:$0xf]  ;;  %v6788_v24 = vld [vmem:[%s10886_s5 + $0x38] sm:$0xf0] }
 0x234   : > { %v1590_v14 = vpack.c.bf16 %v7139_v33, %v7138_v34  ;;  %v6865_v33 = vld [vmem:[%s10839_s4 + $0x254] sm:$0xf]  ;;  %v5939_v34 = vld [vmem:[%s10839_s4 + $0x260] sm:$0xf0] }
 0x235   : > { %1681 = vmatpush.bf16.msra.mxu0 %v1591_v35  ;;  %1709 = vmatpush.bf16.msrb.mxu1 %v1600_v32  ;;  %v5961_v35 = vld [vmem:[%s10839_s4 + $0x278] sm:$0xf]  ;;  %v5942_v36 = vor.u32 %v6865_v33, %v5939_v34  ;;  %v6852_v33 = vld [vmem:[%s10839_s4 + $0x1e4] sm:$0xf0]  ;;  %v6881_v34 = vld [vmem:[%s10839_s4 + $0x2d4] sm:$0xf] }
 0x236   : > { %v5962_v54 = vor.u32 %v6872_v29, %v5961_v35  ;;  %v6003_v35 = vld [vmem:[%s10839_s4 + $0x2e0] sm:$0xf0] }
 0x237   : > { %v7132_v38 = vpop.permute.xlu0 %7131  ;;  %v6006_v29 = vor.u32 %v6881_v34, %v6003_v35  ;;  %v2061_v35 = vunpack.c.h.b16 %v8435_v44  ;;  %v6886_v44 = vld [vmem:[%s10839_s4 + $0x2fc] sm:$0xf] }
 0x238   : > { %v7134_v61 = vunpack.i.h.bf16 %v7132_v38  ;;  %v7133_v40 = vunpack.i.l.bf16 %v7132_v38  ;;  %v5751_v38 = vld [vmem:[%s10886_s5 + $0x18] sm:$0xf] }
 0x239   : > { %v7152_v42 = vpop.permute.xlu1 %7151  ;;  %1682 = vmatpush.bf16.msra.mxu0 %v1590_v14  ;;  %1710 = vmatpush.bf16.msrb.mxu1 %v1599_v39  ;;  %v6861_v14 = vld [vmem:[%s10839_s4 + $0x234] sm:$0xf]  ;;  %v5923_v39 = vld [vmem:[%s10839_s4 + $0x240] sm:$0xf0] }
 0x23a   : > { %v7154_v43 = vunpack.i.h.bf16 %v7152_v42  ;;  %v7153_v26 = vunpack.i.l.bf16 %v7152_v42  ;;  %v1529_v18 = vsel %vm1525_vm7, %v7133_v40, %v7134_v61  ;;  %v5945_v61 = vld [vmem:[%s10839_s4 + $0x258] sm:$0xf]  ;;  %v5926_v40 = vor.u32 %v6861_v14, %v5923_v39  ;;  %v6868_v42 = vld [vmem:[%s10839_s4 + $0x264] sm:$0xf0] }
 0x23b   : > { %v1598_v20 = vpack.c.bf16 %v1529_v18, %v1528_v5  ;;  %v6785_v5 = vld [vmem:[%s10886_s5 + $0x20] sm:$0xf0]  ;;  %v5946_v18 = vor.u32 %v6868_v42, %v5945_v61  ;;  %v5865_v14 = vld [vmem:[%s10839_s4 + $0x1b8] sm:$0xf]  ;;  %v6848_v61 = vld [vmem:[%s10839_s4 + $0x1c4] sm:$0xf0] }
 0x23c   : > { %v1589_v46 = vpack.c.bf16 %v7154_v43, %v7153_v26  ;;  %v6857_v43 = vld [vmem:[%s10839_s4 + $0x214] sm:$0xf]  ;;  %v5907_v26 = vld [vmem:[%s10839_s4 + $0x220] sm:$0xf0] }
 0x23d   : > { %1711 = vmatpush.bf16.msrb.mxu1 %v1598_v20  ;;  %v5929_v20 = vld [vmem:[%s10839_s4 + $0x238] sm:$0xf]  ;;  %v5910_v49 = vor.u32 %v6857_v43, %v5907_v26  ;;  %v6789_v26 = vld [vmem:[%s10886_s5 + $0x40] sm:$0xf0] }
 0x23e   : > { %1683 = vmatpush.bf16.msra.mxu0 %v1589_v46  ;;  %v6864_v46 = vld [vmem:[%s10839_s4 + $0x244] sm:$0xf0]  ;;  %v5771_v43 = vld [vmem:[%s10886_s5 + $0x38] sm:$0xf] }
 0x23f   : > { %v7147_v51 = vpop.permute.xlu0 %7146  ;;  %v5930_v50 = vor.u32 %v6864_v46, %v5929_v20  ;;  %v6877_v20 = vld [vmem:[%s10839_s4 + $0x2b4] sm:$0xf]  ;;  %v5987_v46 = vld [vmem:[%s10839_s4 + $0x2c0] sm:$0xf0] }
 0x240   : > { %v7149_v53 = vunpack.i.h.bf16 %v7147_v51  ;;  %v7148_v55 = vunpack.i.l.bf16 %v7147_v51  ;;  %v8630_v51 = vor.u32 %v6785_v5, %v5751_v38  ;;  %v5843_v38 = vld [vmem:[%s10839_s4 + $0x1a0] sm:$0xf0]  ;;  %v6787_v5 = vld [vmem:[%s10886_s5 + $0x34] sm:$0xf] }
 0x241   : > { %v7167_v57 = vpop.permute.xlu1 %7166 }
 0x242   : > { %v7169_v59 = vunpack.i.h.bf16 %v7167_v57  ;;  %v7168_v60 = vunpack.i.l.bf16 %v7167_v57  ;;  %1684 = vmatpush.bf16.msra.mxu0 %v1588_v22  ;;  %v1527_v10 = vsel %vm1525_vm7, %v7148_v55, %v7149_v53  ;;  %v6783_v22 = vld [vmem:[%s10886_s5 + $0x10] sm:$0xf0]  ;;  %v5759_v53 = vld [vmem:[%s10886_s5 + $0x20] sm:$0xf]  ;;  %v6786_v55 = vld [vmem:[%s10886_s5 + $0x28] sm:$0xf0] }
 0x243   : > { %v1597_v13 = vpack.c.bf16 %v1527_v10, %v1526_v62  ;;  %v8575_v31 = vor.u32 %v6783_v22, %v5747_v19  ;;  %v5891_v57 = vld [vmem:[%s10839_s4 + $0x200] sm:$0xf0]  ;;  %v6784_v62 = vld [vmem:[%s10886_s5 + $0x1c] sm:$0xf]  ;;  %v5753_v10 = vld [vmem:[%s10886_s5 + $0x24] sm:$0xf0] }
 0x244   : > { %v1604_v9 = vpack.c.bf16 %v7169_v59, %v7168_v60  ;;  %v5913_v59 = vld [vmem:[%s10839_s4 + $0x218] sm:$0xf]  ;;  %v8648_v60 = vor.u32 %v6786_v55, %v5759_v53  ;;  %v5894_v17 = vor.u32 %v6853_v56, %v5891_v57  ;;  %v8660_v2 = vor.u32 %v6784_v62, %v5753_v10  ;;  %v6844_v53 = vld [vmem:[%s10839_s4 + $0x1a4] sm:$0xf0]  ;;  %v6870_v55 = vld [vmem:[%s10839_s4 + $0x27c] sm:$0xf] }
 0x245   : > { %1712 = vmatpush.bf16.msrb.mxu1 %v1597_v13  ;;  %v5914_v30 = vor.u32 %v6860_v0, %v5913_v59  ;;  %v2111_v13 = vpack.c.b16 %v2059_v11, %v2059_v11  ;;  %v5897_v19 = vld [vmem:[%s10839_s4 + $0x1f8] sm:$0xf]  ;;  %v8750_v56 = vor.u32 %v6789_v26, %v5771_v43  ;;  %v5963_v59 = vld [vmem:[%s10839_s4 + $0x288] sm:$0xf0]  ;;  %v6873_v62 = vld [vmem:[%s10839_s4 + $0x294] sm:$0xf] }
 0x246   : > { %1685 = vmatpush.bf16.msra.mxu0 %v1587_v63  ;;  %1742 = vmatpush.bf16.msrb.mxu2 %v1604_v9  ;;  %v6781_v63 = vld [vmem:[%s10886_s5 + $0x4] sm:$0xf]  ;;  %v6846_v43 = vld [vmem:[%s10839_s4 + $0x1bc] sm:$0xf]  ;;  %v5867_v26 = vld [vmem:[%s10839_s4 + $0x1c8] sm:$0xf0] }
 0x247   : > { %v7162_v48 = vpop.permute.xlu0 %7161  ;;  %v8583_v1 = vor.u32 %v6781_v63, %v5741_v12  ;;  %v5875_v9 = vld [vmem:[%s10839_s4 + $0x1e0] sm:$0xf0]  ;;  %v2166_v23 = vsel %vm1271_vm3, %v2111_v13, 0  ;;  %v6845_v63 = vld [vmem:[%s10839_s4 + $0x1b4] sm:$0xf] }
 0x248   : > { %v7164_v58 = vunpack.i.h.bf16 %v7162_v48  ;;  %v7163_v21 = vunpack.i.l.bf16 %v7162_v48  ;;  %v5878_v22 = vor.u32 %v6849_v8, %v5875_v9  ;;  %v6856_v48 = vld [vmem:[%s10839_s4 + $0x204] sm:$0xf0]  ;;  %v5859_v12 = vld [vmem:[%s10839_s4 + $0x1c0] sm:$0xf0]  ;;  %v5947_v13 = vld [vmem:[%s10839_s4 + $0x268] sm:$0xf0] }
 0x249   : > { %1686 = vmatmul.bf16.vlgmr.msra.gmra.mxu0 %v8557_v15  ;;  %1713 = vmatpush.bf16.msrb.mxu1 %v1596_v16  ;;  %v5898_v16 = vor.u32 %v6856_v48, %v5897_v19  ;;  %v5971_v10 = vld [vmem:[%s10839_s4 + $0x2a0] sm:$0xf0]  ;;  %v6862_v9 = vld [vmem:[%s10839_s4 + $0x23c] sm:$0xf]  ;;  %v5931_v19 = vld [vmem:[%s10839_s4 + $0x248] sm:$0xf0] }
 0x24a   : > { %1743 = vmatpush.bf16.msrb.mxu2 %v1603_v52  ;;  %v1595_v32 = vpack.c.bf16 %v7164_v58, %v7163_v21  ;;  %2212 = vmatpush.bf16.msrb.mxu0 %v5958_v27  ;;  %v6885_v58 = vld [vmem:[%s10839_s4 + $0x2f4] sm:$0xf]  ;;  %v6019_v21 = vld [vmem:[%s10839_s4 + $0x300] sm:$0xf0]  ;;  %v5763_v52 = vld [vmem:[%s10886_s5 + $0x30] sm:$0xf]  ;;  %v5974_v0 = vor.u32 %v6873_v62, %v5971_v10 }
 0x24b   : > { %v6022_v6 = vor.u32 %v6885_v58, %v6019_v21  ;;  %v5881_v27 = vld [vmem:[%s10839_s4 + $0x1d8] sm:$0xf]  ;;  %v8720_v42 = vor.u32 %v6788_v24, %v5763_v52  ;;  %v5915_v48 = vld [vmem:[%s10839_s4 + $0x228] sm:$0xf0]  ;;  %v6791_v58 = vld [vmem:[%s10886_s5 + $0x50] sm:$0xf0] }
 0x24c   : > { %v5783_v24 = vld [vmem:[%s10886_s5 + $0x50] sm:$0xf]  ;;  %v6874_v62 = vld [vmem:[%s10839_s4 + $0x29c] sm:$0xf]  ;;  %v5979_v10 = vld [vmem:[%s10839_s4 + $0x2a8] sm:$0xf0] }
 0x24d   : > { %1714 = vmatpush.bf16.msrb.mxu1 %v1595_v32  ;;  %5785 = vmatmul.msk.bf16.vlgmr.msrb.gmra.mxu2 %vm1665_vm8, %v8575_v31  ;;  %v5862_v32 = vor.u32 %v6845_v63, %v5859_v12  ;;  %v6854_v63 = vld [vmem:[%s10839_s4 + $0x1fc] sm:$0xf]  ;;  %v5899_v12 = vld [vmem:[%s10839_s4 + $0x208] sm:$0xf0] }
 0x24e   : > { %2213 = vmatpush.bf16.msrb.mxu0 %v5942_v36  ;;  %2250 = vmatpush.bf16.msra.mxu2 %v5962_v54  ;;  %v5882_v36 = vor.u32 %v6852_v33, %v5881_v27  ;;  %v6841_v54 = vld [vmem:[%s10839_s4 + $0x194] sm:$0xf]  ;;  %v5777_v33 = vld [vmem:[%s10886_s5 + $0x54] sm:$0xf0]  ;;  %v5902_v34 = vor.u32 %v6854_v63, %v5899_v12  ;;  %v6127_v12 = vld [vmem:[%s10839_s4 + $0x360] sm:$0xf] }
 0x24f   : > { %v5846_v39 = vor.u32 %v6841_v54, %v5843_v38  ;;  %v6850_v54 = vld [vmem:[%s10839_s4 + $0x1dc] sm:$0xf]  ;;  %v5883_v38 = vld [vmem:[%s10839_s4 + $0x1e8] sm:$0xf0] }
 0x250   : > { %1715 = vmatmul.bf16.vlgmr.msrb.gmra.mxu1 %v8583_v1 }
 0x251   : > { %2234 = vmatpush.bf16.msra.mxu1 %v2166_v23  ;;  %v5934_v23 = vor.u32 %v6862_v9, %v5931_v19  ;;  %v6915_v9 = vld [vmem:[%s10839_s4 + $0x3ec] sm:$0xf0] }
 0x252   : > { %2214 = vmatpush.bf16.msrb.mxu0 %v5926_v40  ;;  %2251 = vmatpush.bf16.msra.mxu2 %v5946_v18  ;;  %v5866_v40 = vor.u32 %v6848_v61, %v5865_v14  ;;  %v5765_v18 = vld [vmem:[%s10886_s5 + $0x3c] sm:$0xf0]  ;;  %v6027_v61 = vld [vmem:[%s10839_s4 + $0x308] sm:$0xf0] }
 0x253   : > { %v8761_v11 = vor.u32 %v6787_v5, %v5765_v18  ;;  %v6882_v5 = vld [vmem:[%s10839_s4 + $0x2dc] sm:$0xf]  ;;  %v5870_v18 = vor.u32 %v6846_v43, %v5867_v26  ;;  %v6271_v43 = vld [vmem:[%s10839_s4 + $0x480] sm:$0xf]  ;;  %v6935_v26 = vld [vmem:[%s10839_s4 + $0x48c] sm:$0xf0] }
 0x255   : > { %2235 = vmatpush.bf16.msra.mxu1 %v6022_v6  ;;  %v6792_v6 = vld [vmem:[%s10886_s5 + $0x58] sm:$0xf0] }
 0x256   : > { %2215 = vmatpush.bf16.msrb.mxu0 %v5910_v49  ;;  %2252 = vmatpush.bf16.msra.mxu2 %v5930_v50  ;;  %v5990_v49 = vor.u32 %v6877_v20, %v5987_v46  ;;  %v5849_v50 = vld [vmem:[%s10839_s4 + $0x198] sm:$0xf]  ;;  %v8805_v27 = vor.u32 %v6792_v6, %v5783_v24  ;;  %v6011_v20 = vld [vmem:[%s10839_s4 + $0x2e8] sm:$0xf0]  ;;  %v6842_v46 = vld [vmem:[%s10839_s4 + $0x19c] sm:$0xf] }
 0x257   : > { %v5850_v57 = vor.u32 %v6844_v53, %v5849_v50  ;;  %v6014_v50 = vor.u32 %v6882_v5, %v6011_v20  ;;  %v6143_v24 = vld [vmem:[%s10839_s4 + $0x380] sm:$0xf]  ;;  %v6903_v6 = vld [vmem:[%s10839_s4 + $0x38c] sm:$0xf0]  ;;  %v6272_v5 = vor.u32 %v6935_v26, %v6271_v43  ;;  %v6231_v43 = vld [vmem:[%s10839_s4 + $0x428] sm:$0xf] }
 0x258   : > { %v6144_v63 = vor.u32 %v6903_v6, %v6143_v24  ;;  %v6931_v20 = vld [vmem:[%s10839_s4 + $0x46c] sm:$0xf0]  ;;  %v6279_v6 = vld [vmem:[%s10839_s4 + $0x488] sm:$0xf]  ;;  %v6924_v26 = vld [vmem:[%s10839_s4 + $0x434] sm:$0xf0] }
 0x259   : > { %1691 = vmatmul.bf16.gmra.mxu0 %v8630_v51  ;;  %2236 = vmatpush.bf16.msra.mxu1 %v6006_v29 }
 0x25a   : > { %2216 = vmatpush.bf16.msrb.mxu0 %v5894_v17  ;;  %2253 = vmatpush.bf16.msra.mxu2 %v5914_v30  ;;  %v5966_v17 = vor.u32 %v6870_v55, %v5963_v59  ;;  %v6866_v30 = vld [vmem:[%s10839_s4 + $0x25c] sm:$0xf] }
 0x25b   : > { %v5950_v8 = vor.u32 %v6866_v30, %v5947_v13  ;;  %v6878_v55 = vld [vmem:[%s10839_s4 + $0x2bc] sm:$0xf]  ;;  %v6919_v30 = vld [vmem:[%s10839_s4 + $0x40c] sm:$0xf0] }
 0x25d   : > { %5786 = vmatmul.msk.bf16.gmra.mxu2 %vm1665_vm8, %v8648_v60  ;;  %2237 = vmatpush.bf16.msra.mxu1 %v5990_v49  ;;  %v5851_v49 = vld [vmem:[%s10839_s4 + $0x1a8] sm:$0xf0] }
 0x25e   : > { %2217 = vmatpush.bf16.msrb.mxu0 %v5878_v22  ;;  %2254 = vmatpush.bf16.msra.mxu2 %v5898_v16  ;;  %v6858_v22 = vld [vmem:[%s10839_s4 + $0x21c] sm:$0xf]  ;;  %v5775_v16 = vld [vmem:[%s10886_s5 + $0x48] sm:$0xf]  ;;  %v5854_v53 = vor.u32 %v6842_v46, %v5851_v49 }
 0x25f   : > { %v5918_v21 = vor.u32 %v6858_v22, %v5915_v48  ;;  %v8790_v52 = vor.u32 %v6791_v58, %v5775_v16  ;;  %v6911_v22 = vld [vmem:[%s10839_s4 + $0x3cc] sm:$0xf0]  ;;  %v6159_v16 = vld [vmem:[%s10839_s4 + $0x3a0] sm:$0xf] }
 0x260   : > { %1720 = vmatmul.bf16.gmra.mxu1 %v8660_v2  ;;  %v6907_v58 = vld [vmem:[%s10839_s4 + $0x3ac] sm:$0xf0] }
 0x261   : > { %2238 = vmatpush.bf16.msra.mxu1 %v5974_v0  ;;  %v6207_v0 = vld [vmem:[%s10839_s4 + $0x400] sm:$0xf] }
 0x262   : > { %2218 = vmatpush.bf16.msrb.mxu0 %v5862_v32  ;;  %2255 = vmatpush.bf16.msra.mxu2 %v5882_v36  ;;  %v6790_v32 = vld [vmem:[%s10886_s5 + $0x4c] sm:$0xf]  ;;  %v2113_v36 = vpack.c.b16 %v2061_v35, %v2061_v35  ;;  %v6208_v13 = vor.u32 %v6919_v30, %v6207_v0  ;;  %v6895_v35 = vld [vmem:[%s10839_s4 + $0x34c] sm:$0xf0] }
 0x263   : > { %v8814_v29 = vor.u32 %v6790_v32, %v5777_v33  ;;  %v6899_v32 = vld [vmem:[%s10839_s4 + $0x36c] sm:$0xf0] }
 0x264   : > { %v2172_v14 = vsel %vm1271_vm3, %v2113_v36, 0  ;;  %v6128_v33 = vor.u32 %v6899_v32, %v6127_v12 }
 0x265   : > { %2310 = vmatpush.bf16.msrb.mxu1 %v2172_v14 }
 0x266   : > { %2219 = vmatpush.bf16.msrb.mxu0 %v5846_v39  ;;  %2256 = vmatpush.bf16.msra.mxu2 %v5866_v40  ;;  %v5886_v39 = vor.u32 %v6850_v54, %v5883_v38  ;;  %v6030_v40 = vor.u32 %v6886_v44, %v6027_v61  ;;  %v6095_v54 = vld [vmem:[%s10839_s4 + $0x320] sm:$0xf]  ;;  %v6891_v38 = vld [vmem:[%s10839_s4 + $0x32c] sm:$0xf0] }
 0x267   : > { %v6096_v14 = vor.u32 %v6891_v38, %v6095_v54 }
 0x269   : > { %1696 = vmatmul.bf16.gmra.mxu0 %v8720_v42  ;;  %2311 = vmatpush.bf16.msrb.mxu1 %v6030_v40 }
 0x26a   : > { %2257 = vmatpush.bf16.msra.mxu2 %v5850_v57  ;;  %2288 = vmatpush.bf16.msra.mxu0 %v5966_v17  ;;  %v5995_v57 = vld [vmem:[%s10839_s4 + $0x2c8] sm:$0xf0]  ;;  %v5982_v17 = vor.u32 %v6874_v62, %v5979_v10 }
 0x26b   : > { %v5998_v59 = vor.u32 %v6878_v55, %v5995_v57  ;;  %v6223_v57 = vld [vmem:[%s10839_s4 + $0x420] sm:$0xf] }
 0x26d   : > { %5787 = vmatmul.msk.bf16.gmra.mxu2 %vm1665_vm8, %v8750_v56  ;;  %2312 = vmatpush.bf16.msrb.mxu1 %v6014_v50  ;;  %v6239_v50 = vld [vmem:[%s10839_s4 + $0x440] sm:$0xf] }
 0x26e   : > { %2289 = vmatpush.bf16.msra.mxu0 %v5950_v8  ;;  %v6191_v8 = vld [vmem:[%s10839_s4 + $0x3e0] sm:$0xf] }
 0x26f   : > { %v6192_v19 = vor.u32 %v6915_v9, %v6191_v8 }
 0x270   : > { %1725 = vmatmul.bf16.gmra.mxu1 %v8761_v11 }
 0x271   : > { %2313 = vmatpush.bf16.msrb.mxu1 %v5998_v59  ;;  %v6923_v59 = vld [vmem:[%s10839_s4 + $0x42c] sm:$0xf0] }
 0x272   : > { %2290 = vmatpush.bf16.msra.mxu0 %v5934_v23  ;;  %v6175_v23 = vld [vmem:[%s10839_s4 + $0x3c0] sm:$0xf]  ;;  %v6224_v62 = vor.u32 %v6923_v59, %v6223_v57 }
 0x273   : > { %v6176_v48 = vor.u32 %v6911_v22, %v6175_v23  ;;  %v8967_v23 = vld [vmem:[%s10839_s4 + $0x4a8] sm:$0x33] }
 0x274   : > { %v2802_v22 = vunpack.c.l.b16 %v8967_v23 }
 0x275   : > { %2314 = vmatpush.bf16.msrb.mxu1 %v5982_v17 }
 0x276   : > { %2291 = vmatpush.bf16.msra.mxu0 %v5918_v21  ;;  %v6160_v21 = vor.u32 %v6907_v58, %v6159_v16 }
 0x279   : > { %1701 = vmatmul.bf16.gmra.mxu0 %v8790_v52 }
 0x27a   : > { %2292 = vmatpush.bf16.msra.mxu0 %v5902_v34  ;;  %v6111_v34 = vld [vmem:[%s10839_s4 + $0x340] sm:$0xf] }
 0x27b   : > { %v6112_v36 = vor.u32 %v6895_v35, %v6111_v34  ;;  %v6263_v34 = vld [vmem:[%s10839_s4 + $0x468] sm:$0xf]  ;;  %v6932_v35 = vld [vmem:[%s10839_s4 + $0x474] sm:$0xf0] }
 0x27d   : > { %5788 = vmatmul.msk.bf16.gmra.mxu2 %vm1665_vm8, %v8805_v27 }
 0x27e   : > { %2293 = vmatpush.bf16.msra.mxu0 %v5886_v39  ;;  %v8924_v39 = vld [vmem:[%s10839_s4 + $0x4a0] sm:$0x33] }
 0x27f   : > { %v2800_v44 = vunpack.c.l.b16 %v8924_v39 }
 0x280   : > { %1730 = vmatmul.bf16.gmra.mxu1 %v8814_v29 }
 0x281   : > { %v2852_v61 = vpack.c.b16 %v2800_v44, %v2800_v44  ;;  %v6928_v44 = vld [vmem:[%s10839_s4 + $0x454] sm:$0xf0] }
 0x282   : > { %2294 = vmatpush.bf16.msra.mxu0 %v5870_v18  ;;  %v6255_v18 = vld [vmem:[%s10839_s4 + $0x460] sm:$0xf] }
 0x283   : > { %v2905_v40 = vsel %vm1271_vm3, %v2852_v61, 0  ;;  %v6256_v46 = vor.u32 %v6931_v20, %v6255_v18  ;;  %v6232_v18 = vor.u32 %v6924_v26, %v6231_v43 }
 0x286   : > { %2295 = vmatpush.bf16.msra.mxu0 %v5854_v53  ;;  %v6927_v53 = vld [vmem:[%s10839_s4 + $0x44c] sm:$0xf0] }
 0x287   : > { %v6240_v55 = vor.u32 %v6927_v53, %v6239_v50 }
 0x289   : > { %2220 = vmatmul.bf16.vlgmr.msrb.gmra.mxu0 %v8235_v28 }
 0x28d   : > { %2258 = vmatmul.bf16.vlgmr.msra.gmra.mxu2 %v8235_v28 }
 0x290   : > { %6033 = vmatmul.msk.bf16.vlgmr.msra.gmra.mxu1 %vm1264_vm4, %v8306_v37 }
 0x291   : > { %2916 = vmatpush.bf16.msra.mxu1 %v6208_v13 }
 0x295   : > { %2917 = vmatpush.bf16.msra.mxu1 %v6192_v19 }
 0x299   : > { %2225 = vmatmul.bf16.gmra.mxu0 %v8325_v45  ;;  %2918 = vmatpush.bf16.msra.mxu1 %v6176_v48  ;;  %v2854_v48 = vpack.c.b16 %v2802_v22, %v2802_v22 }
 0x29b   : > { %v2911_v58 = vsel %vm1271_vm3, %v2854_v48, 0 }
 0x29d   : > { %2263 = vmatmul.bf16.gmra.mxu2 %v8325_v45  ;;  %2919 = vmatpush.bf16.msra.mxu1 %v6160_v21 }
 0x2a0   : > { %6034 = vmatmul.msk.bf16.gmra.mxu1 %vm1264_vm4, %v8358_v47 }
 0x2a1   : > { %2920 = vmatpush.bf16.msra.mxu1 %v6144_v63  ;;  %v6936_v63 = vld [vmem:[%s10839_s4 + $0x494] sm:$0xf0] }
 0x2a2   : > { %v6280_v32 = vor.u32 %v6936_v63, %v6279_v6 }
 0x2a5   : > { %2921 = vmatpush.bf16.msra.mxu1 %v6128_v33 }
 0x2a9   : > { %2296 = vmatmul.bf16.vlgmr.msra.gmra.mxu0 %v8235_v28  ;;  %2922 = vmatpush.bf16.msra.mxu1 %v6112_v36  ;;  %v6264_v36 = vor.u32 %v6932_v35, %v6263_v34 }
 0x2ad   : > { %2923 = vmatpush.bf16.msra.mxu1 %v6096_v14  ;;  %v6247_v14 = vld [vmem:[%s10839_s4 + $0x448] sm:$0xf] }
 0x2b0   : > { %6037 = vmatmul.msk.bf16.vlgmr.msrb.gmra.mxu1 %vm1264_vm4, %v8306_v37 }
 0x2b1   : > { %2938 = vmatpush.bf16.msrb.mxu1 %v2905_v40  ;;  %v6248_v40 = vor.u32 %v6928_v44, %v6247_v14 }
 0x2b5   : > { %2939 = vmatpush.bf16.msrb.mxu1 %v6272_v5  ;;  %v9004_v5 = vpop.f32.mrf.mxu3 }
 0x2b9   : > { %2301 = vmatmul.bf16.gmra.mxu0 %v8325_v45  ;;  %2940 = vmatpush.bf16.msrb.mxu1 %v6256_v46 }
 0x2bd   : > { %2941 = vmatpush.bf16.msrb.mxu1 %v6240_v55  ;;  %v2207_v57 = vpop.f32.mrf.mxu3 }
 0x2be   : > { %v9029_v44 = vadd.f32 %v2207_v57, %v8523_v25 }
 0x2c0   : > { %6038 = vmatmul.msk.bf16.gmra.mxu1 %vm1264_vm4, %v8358_v47 }
 0x2c1   : > { %2942 = vmatpush.bf16.msrb.mxu1 %v6224_v62 }
 0x2c6   : > { %v1687_v49 = vpop.f32.mrf.mxu0 }
 0x2cd   : > { %v1716_v10 = vpop.f32.mrf.mxu1 }
 0x2ce   : > { %v1717_v17 = vadd.f32 %v1716_v10, %v1687_v49  ;;  %v8955_v0 = vpop.f32.mrf.mxu0 }
 0x2d0   : > { %v1745_v30 = vpop.f32.mrf.mxu2  ;;  %2924 = vmatmul.bf16.vlgmr.msra.gmra.mxu1 %v8235_v28 }
 0x2d1   : > { %v8958_v13 = vadd.f32 %v1745_v30, %v1717_v17  ;;  %3014 = vmatpush.bf16.msra.mxu1 %v2911_v58 }
 0x2d5   : > { %v8960_v8 = vpop.f32.mrf.mxu1  ;;  %3015 = vmatpush.bf16.msra.mxu1 %v6280_v32 }
 0x2d6   : > { %v1692_v9 = vpop.f32.mrf.mxu0 }
 0x2d8   : > { %v8962_v19 = vpop.f32.mrf.mxu2 }
 0x2d9   : > { %3016 = vmatpush.bf16.msra.mxu1 %v6264_v36 }
 0x2dd   : > { %v1721_v16 = vpop.f32.mrf.mxu1  ;;  %3017 = vmatpush.bf16.msra.mxu1 %v6248_v40 }
 0x2de   : > { %v1722_v21 = vadd.f32 %v1721_v16, %v1692_v9  ;;  %v8971_v24 = vpop.f32.mrf.mxu0  ;;  %v2209_v9 = vpop.f32.mrf.mxu3 }
 0x2e0   : > { %v1750_v12 = vpop.f32.mrf.mxu2  ;;  %2929 = vmatmul.bf16.gmra.mxu1 %v8325_v45 }
 0x2e1   : > { %v8980_v33 = vadd.f32 %v1750_v12, %v1722_v21  ;;  %3018 = vmatpush.bf16.msra.mxu1 %v6232_v18 }
 0x2e3   : > { %10887 = vst [vmem:[#allocation3_spill] sm:$0xff] %v8980_v33 }
 0x2e5   : > { %v8988_v54 = vpop.f32.mrf.mxu1 }
 0x2e6   : > { %v1697_v38 = vpop.f32.mrf.mxu0  ;;  %v2278_v6 = vpop.f32.mrf.mxu3 }
 0x2e8   : > { %v8996_v61 = vpop.f32.mrf.mxu2 }
 0x2e9   : > { %10888 = vst [vmem:[#allocation4_spill] sm:$0xff] %v8996_v61 }
 0x2ed   : > { %v1726_v20 = vpop.f32.mrf.mxu1 }
 0x2ee   : > { %v1727_v46 = vadd.f32 %v1726_v20, %v1697_v38  ;;  %v9006_v49 = vpop.f32.mrf.mxu0  ;;  %v2280_v34 = vpop.f32.mrf.mxu3 }
 0x2ef   : > { %10889 = vst [vmem:[#allocation5_spill] sm:$0xff] %v9006_v49 }
 0x2f0   : > { %v1755_v50 = vpop.f32.mrf.mxu2  ;;  %6285 = vmatmul.msk.bf16.vlgmr.msrb.gmra.mxu1 %vm1264_vm4, %v8306_v37 }
 0x2f1   : > { %v9010_v53 = vadd.f32 %v1755_v50, %v1727_v46  ;;  %v9036_v50 = vadd.f32 %v2209_v9, %v8529_v7 }
 0x2f3   : > { %10890 = vst [vmem:[#allocation6_spill] sm:$0xff] %v9010_v53 }
 0x2f5   : > { %v9012_v55 = vpop.f32.mrf.mxu1 }
 0x2f6   : > { %10891 = vst [vmem:[#allocation7_spill] sm:$0xff] %v9012_v55  ;;  %v1702_v59 = vpop.f32.mrf.mxu0  ;;  %v2283_v40 = vpop.f32.mrf.mxu3 }
 0x2f8   : > { %v9014_v62 = vpop.f32.mrf.mxu2 }
 0x2f9   : > { %10892 = vst [vmem:[#allocation8_spill] sm:$0xff] %v9014_v62 }
 0x2fd   : > { %v1731_v10 = vpop.f32.mrf.mxu1 }
 0x2fe   : > { %v1732_v17 = vadd.f32 %v1731_v10, %v1702_v59  ;;  %v9016_v30 = vpop.f32.mrf.mxu0 }
 0x2ff   : > { %10893 = vst [vmem:[#allocation9_spill] sm:$0xff] %v9016_v30 }
 0x300   : > { %v1760_v22 = vpop.f32.mrf.mxu2  ;;  %6286 = vmatmul.msk.bf16.gmra.mxu1 %vm1264_vm4, %v8358_v47 }
 0x301   : > { %v9020_v48 = vadd.f32 %v1760_v22, %v1732_v17  ;;  %v2285_v17 = vpop.f32.mrf.mxu3 }
 0x303   : > { %10894 = vst [vmem:[#allocation10_spill] sm:$0xff] %v9020_v48 }
 0x305   : > { %v9022_v16 = vpop.f32.mrf.mxu1 }
 0x306   : > { %10895 = vst [vmem:[#allocation11_spill] sm:$0xff] %v9022_v16  ;;  %v2221_v58 = vpop.f32.mrf.mxu0 }
 0x308   : > { %v9024_v21 = vpop.f32.mrf.mxu2 }
 0x309   : > { %10896 = vst [vmem:[#allocation12_spill] sm:$0xff] %v9024_v21 }
 0x30d   : > { %v2240_v63 = vpop.f32.mrf.mxu1 }
 0x30e   : > { %v2223_v12 = vpop.f32.mrf.mxu0  ;;  %v2241_v7 = vadd.f32 %v2240_v63, %v2221_v58 }
 0x310   : > { %v2259_v32 = vpop.f32.mrf.mxu2  ;;  %6289 = vmatmul.msk.bf16.vlgmr.msra.gmra.mxu1 %vm1264_vm4, %v8306_v37 }
 0x311   : > { %v2279_v21 = vadd.f32 %v2278_v6, %v2259_v32 }
 0x315   : > { %v2242_v35 = vpop.f32.mrf.mxu1 }
 0x316   : > { %v2226_v36 = vpop.f32.mrf.mxu0  ;;  %v2243_v16 = vadd.f32 %v2242_v35, %v2223_v12  ;;  %v7245_v35 = vpack.i.bf16 %v9036_v50, %v9029_v44 }
 0x318   : > { %v2261_v38 = vpop.f32.mrf.mxu2 }
 0x31d   : > { %v2245_v14 = vpop.f32.mrf.mxu1 }
 0x31e   : > { %v2246_v43 = vadd.f32 %v2245_v14, %v2226_v36  ;;  %v2228_v26 = vpop.f32.mrf.mxu0 }
 0x320   : > { %v2264_v18 = vpop.f32.mrf.mxu2  ;;  %6290 = vmatmul.msk.bf16.gmra.mxu1 %vm1264_vm4, %v8358_v47  ;;  %v7185_v20 = vpack.i.bf16 %v2246_v43, %v9029_v44 }
 0x321   : > { %v2284_v22 = vadd.f32 %v2283_v40, %v2264_v18  ;;  %v2281_v40 = vadd.f32 %v2280_v34, %v2261_v38  ;;  %v7215_v34 = vpack.i.bf16 %v2241_v7, %v8534_v3 }
 0x322   : > { %7186 = vrot.lane.b32.xlu0 %v7185_v20, %s10869_s28 }
 0x323   : > { %v7230_v58 = vpack.i.bf16 %v2281_v40, %v2279_v21 }
 0x325   : > { %v2247_v46 = vpop.f32.mrf.mxu1 }
 0x326   : > { %v2248_v59 = vadd.f32 %v2247_v46, %v2228_v26  ;;  %v2297_v10 = vpop.f32.mrf.mxu0  ;;  %v7180_v26 = vpack.i.bf16 %v2243_v16, %v2241_v7 }
 0x328   : > { %v2266_v25 = vpop.f32.mrf.mxu2  ;;  %v7195_v57 = vpack.i.bf16 %v2248_v59, %v9036_v50 }
 0x329   : > { %v2286_v36 = vadd.f32 %v2285_v17, %v2266_v25 }
 0x32a   : > { %7196 = vrot.lane.b32.xlu1 %v7195_v57, %s10869_s28  ;;  %v7190_v57 = vpack.i.bf16 %v2248_v59, %v2246_v43 }
 0x32b   : > { %v7175_v14 = vpack.i.bf16 %v2286_v36, %v2284_v22 }
 0x32d   : > { %7176 = vrot.lane.b32.xlu2 %v7175_v14, %s10897_s30  ;;  %v2316_v4 = vpop.f32.mrf.mxu1 }
 0x32e   : > { %v2317_v20 = vadd.f32 %v2316_v4, %v2297_v10  ;;  %v2299_v9 = vpop.f32.mrf.mxu0  ;;  %v9055_v10 = vadd.f32 %v9004_v5, %v8515_v41 }
 0x330   : > { %v7200_v30 = vpack.i.bf16 %v2317_v20, %v2279_v21 }
 0x332   : > { %7201 = vrot.lane.b32.xlu0 %v7200_v30, %s10898_s18 }
 0x335   : > { %v2318_v46 = vpop.f32.mrf.mxu1  ;;  %7181 = vrot.lane.b32.xlu2 %v7180_v26, %s10899_s19 }
 0x336   : > { %v2319_v18 = vadd.f32 %v2318_v46, %v2299_v9  ;;  %v2302_v25 = vpop.f32.mrf.mxu0  ;;  %v7235_v9 = vpack.i.bf16 %v2284_v22, %v2246_v43  ;;  %v7225_v46 = vpack.i.bf16 %v2243_v16, %v9055_v10  ;;  %v7255_v43 = vpack.i.bf16 %v2281_v40, %v2243_v16 }
 0x338   : > { %v7205_v17 = vpack.i.bf16 %v2319_v18, %v2281_v40 }
 0x33a   : > { %7206 = vrot.lane.b32.xlu1 %v7205_v17, %s10898_s18  ;;  %v7260_v17 = vpack.i.bf16 %v9055_v10, %v8534_v3 }
 0x33d   : > { %v2321_v14 = vpop.f32.mrf.mxu1  ;;  %7191 = vrot.lane.b32.xlu2 %v7190_v57, %s10899_s19 }
 0x33e   : > { %v2322_v4 = vadd.f32 %v2321_v14, %v2302_v25  ;;  %v2304_v30 = vpop.f32.mrf.mxu0  ;;  %v7250_v14 = vpack.i.bf16 %v2279_v21, %v2241_v7 }
 0x340   : > { %v7210_v6 = vpack.i.bf16 %v2322_v4, %v2284_v22 }
 0x342   : > { %7211 = vrot.lane.b32.xlu0 %v7210_v6, %s10898_s18  ;;  %v7240_v6 = vpack.i.bf16 %v2286_v36, %v2248_v59 }
 0x345   : > { %v2323_v63 = vpop.f32.mrf.mxu1  ;;  %7231 = vrot.lane.b32.xlu2 %v7230_v58, %s10897_s30  ;;  %v7280_v58 = vpack.i.bf16 %v2319_v18, %v2317_v20 }
 0x346   : > { %v2324_v12 = vadd.f32 %v2323_v63, %v2304_v30 }
 0x348   : > { %v7220_v32 = vpack.i.bf16 %v2324_v12, %v2286_v36  ;;  %v7275_v41 = vpack.i.bf16 %v2324_v12, %v2322_v4 }
 0x34a   : > { %7216 = vrot.lane.b32.xlu0 %v7215_v34, %s10869_s28  ;;  %7221 = vrot.lane.b32.xlu1 %v7220_v32, %s10898_s18 }
 0x34d   : > { %v2925_v38 = vpop.f32.mrf.mxu1  ;;  %7246 = vrot.lane.b32.xlu2 %v7245_v35, %s10900_s20 }
 0x352   : > { %7236 = vrot.lane.b32.xlu0 %v7235_v9, %s10901_s21  ;;  %7226 = vrot.lane.b32.xlu1 %v7225_v46, %s10869_s28 }
 0x355   : > { %v9062_v25 = vpop.f32.mrf.mxu1  ;;  %7261 = vrot.lane.b32.xlu2 %v7260_v17, %s10900_s20 }
 0x35a   : > { %7251 = vrot.lane.b32.xlu0 %v7250_v14, %s10901_s21  ;;  %7241 = vrot.lane.b32.xlu1 %v7240_v6, %s10901_s21 }
 0x35d   : > { %v9067_v5 = vpop.f32.mrf.mxu1  ;;  %7276 = vrot.lane.b32.xlu2 %v7275_v41, %s10902_s1 }
 0x362   : > { %7266 = vrot.lane.b32.xlu0 %v7190_v57, %s10903_s23  ;;  %7256 = vrot.lane.b32.xlu1 %v7255_v43, %s10901_s21 }
 0x365   : > { %v9072_v22 = vpop.f32.mrf.mxu1 }
 0x36a   : > { %7281 = vrot.lane.b32.xlu0 %v7280_v58, %s10902_s1  ;;  %7271 = vrot.lane.b32.xlu1 %v7180_v26, %s10903_s23 }
 0x36d   : > { %v2944_v21 = vpop.f32.mrf.mxu1 }
 0x36e   : > { %v9076_v59 = vadd.f32 %v2944_v21, %v2925_v38 }
 0x387   : > { %v7177_v36 = vpop.permute.xlu2 %7176 }
 0x38f   : > { %v7182_v7 = vpop.permute.xlu2 %7181 }
 0x390   : > { %v7184_v16 = vunpack.i.h.bf16 %v7182_v7  ;;  %v7183_v40 = vunpack.i.l.bf16 %v7182_v7 }
 0x392   : > { %v2480_v9 = vpack.c.bf16 %v7184_v16, %v7183_v40 }
 0x394   : > { %v7187_v57 = vpop.permute.xlu0 %7186 }
 0x395   : > { %v7189_v34 = vunpack.i.h.bf16 %v7187_v57  ;;  %v7188_v20 = vunpack.i.l.bf16 %v7187_v57 }
 0x397   : > { %v7192_v4 = vpop.permute.xlu2 %7191  ;;  %v2364_v46 = vsel %vm1472_vm5, %v7188_v20, %v7189_v34 }
 0x398   : > { %v7194_v30 = vunpack.i.h.bf16 %v7192_v4  ;;  %v7193_v63 = vunpack.i.l.bf16 %v7192_v4 }
 0x39a   : > { %v2481_v12 = vpack.c.bf16 %v7194_v30, %v7193_v63 }
 0x39c   : > { %v7197_v32 = vpop.permute.xlu1 %7196  ;;  %2492 = vmatpush.bf16.msrb.mxu2 %v2481_v12 }
 0x39d   : > { %v7199_v18 = vunpack.i.h.bf16 %v7197_v32  ;;  %v7198_v35 = vunpack.i.l.bf16 %v7197_v32 }
 0x39f   : > { %v7232_v26 = vpop.permute.xlu2 %7231  ;;  %v2365_v38 = vsel %vm1472_vm5, %v7198_v35, %v7199_v18 }
 0x3a0   : > { %2493 = vmatpush.bf16.msrb.mxu2 %v2480_v9  ;;  %v2479_v17 = vpack.c.bf16 %v2365_v38, %v2364_v46 }
 0x3a4   : > { %2494 = vmatpush.bf16.msrb.mxu2 %v2479_v17  ;;  %v7202_v6 = vpop.permute.xlu0 %7201 }
 0x3a5   : > { %v7204_v20 = vunpack.i.h.bf16 %v7202_v6  ;;  %v7203_v35 = vunpack.i.l.bf16 %v7202_v6  ;;  %v7234_v6 = vunpack.i.h.bf16 %v7232_v26 }
 0x3a7   : > { %v7247_v14 = vpop.permute.xlu2 %7246 }
 0x3ac   : > { %v7207_v43 = vpop.permute.xlu1 %7206 }
 0x3ad   : > { %v7209_v12 = vunpack.i.h.bf16 %v7207_v43  ;;  %v7208_v32 = vunpack.i.l.bf16 %v7207_v43 }
 0x3af   : > { %v7262_v41 = vpop.permute.xlu2 %7261  ;;  %v2455_v17 = vsel %vm1566_vm6, %v7208_v32, %v7209_v12  ;;  %v7233_v12 = vunpack.i.l.bf16 %v7232_v26  ;;  %v7249_v32 = vunpack.i.h.bf16 %v7247_v14 }
 0x3b4   : > { %v7212_v58 = vpop.permute.xlu0 %7211 }
 0x3b5   : > { %v7214_v63 = vunpack.i.h.bf16 %v7212_v58  ;;  %v7213_v57 = vunpack.i.l.bf16 %v7212_v58 }
 0x3b7   : > { %v7277_v21 = vpop.permute.xlu2 %7276  ;;  %v2456_v9 = vsel %vm1566_vm6, %v7213_v57, %v7214_v63 }
 0x3b8   : > { %v7279_v7 = vunpack.i.h.bf16 %v7277_v21  ;;  %v7278_v4 = vunpack.i.l.bf16 %v7277_v21  ;;  %v7179_v21 = vunpack.i.h.bf16 %v7177_v36 }
 0x3ba   : > { %v2491_v30 = vpack.c.bf16 %v7279_v7, %v7278_v4  ;;  %v7178_v7 = vunpack.i.l.bf16 %v7177_v36 }
 0x3bc   : > { %v7217_v16 = vpop.permute.xlu0 %7216  ;;  %v7222_v40 = vpop.permute.xlu1 %7221  ;;  %2556 = vmatpush.bf16.msrb.mxu0 %v2491_v30  ;;  %v2454_v30 = vsel %vm1566_vm6, %v7203_v35, %v7204_v20  ;;  %v7264_v35 = vunpack.i.h.bf16 %v7262_v41 }
 0x3bd   : > { %v7224_v18 = vunpack.i.h.bf16 %v7222_v40  ;;  %v7223_v34 = vunpack.i.l.bf16 %v7222_v40  ;;  %v7219_v58 = vunpack.i.h.bf16 %v7217_v16  ;;  %v7218_v4 = vunpack.i.l.bf16 %v7217_v16 }
 0x3be   : > { %v2488_v55 = vpack.c.bf16 %v2455_v17, %v2454_v30 }
 0x3bf   : > { %v2457_v38 = vsel %vm1566_vm6, %v7223_v34, %v7224_v18  ;;  %v2362_v63 = vsel %vm1472_vm5, %v7218_v4, %v7219_v58  ;;  %v2487_v18 = vpack.c.bf16 %v7179_v21, %v7178_v7  ;;  %v7248_v34 = vunpack.i.l.bf16 %v7247_v14 }
 0x3c0   : > { %v2489_v46 = vpack.c.bf16 %v2457_v38, %v2456_v9  ;;  %v7263_v9 = vunpack.i.l.bf16 %v7262_v41  ;;  %v2475_v4 = vpack.c.bf16 %v9036_v50, %v9029_v44  ;;  %v6917_v44 = vld [vmem:[%s10839_s4 + $0x404] sm:$0xf]  ;;  %v6209_v50 = vld [vmem:[%s10839_s4 + $0x410] sm:$0xf0] }
 0x3c1   : > { %v2477_v17 = vpack.c.bf16 %v7249_v32, %v7248_v34  ;;  %v2474_v32 = vpack.c.bf16 %v9055_v10, %v8534_v3  ;;  %v6913_v3 = vld [vmem:[%s10839_s4 + $0x3e4] sm:$0xf]  ;;  %v6193_v10 = vld [vmem:[%s10839_s4 + $0x3f0] sm:$0xf0] }
 0x3c2   : > { %2521 = vmatpush.bf16.msra.mxu3 %v2489_v46  ;;  %v2476_v14 = vpack.c.bf16 %v7264_v35, %v7263_v9 }
 0x3c4   : > { %v7237_v62 = vpop.permute.xlu0 %7236  ;;  %v7227_v43 = vpop.permute.xlu1 %7226 }
 0x3c5   : > { %v7229_v40 = vunpack.i.h.bf16 %v7227_v43  ;;  %v7228_v49 = vunpack.i.l.bf16 %v7227_v43  ;;  %v7239_v16 = vunpack.i.h.bf16 %v7237_v62  ;;  %v7238_v20 = vunpack.i.l.bf16 %v7237_v62 }
 0x3c6   : > { %2522 = vmatpush.bf16.msra.mxu3 %v2488_v55  ;;  %v2486_v55 = vpack.c.bf16 %v7234_v6, %v7233_v12 }
 0x3c7   : > { %v2363_v57 = vsel %vm1472_vm5, %v7228_v49, %v7229_v40  ;;  %v2416_v49 = vsel %vm1525_vm7, %v7238_v20, %v7239_v16 }
 0x3c8   : > { %v2478_v36 = vpack.c.bf16 %v2363_v57, %v2362_v63 }
 0x3ca   : > { %2495 = vmatpush.bf16.msrb.mxu2 %v2478_v36  ;;  %2523 = vmatpush.bf16.msra.mxu3 %v2487_v18 }
 0x3cc   : > { %v7252_v38 = vpop.permute.xlu0 %7251  ;;  %v7242_v46 = vpop.permute.xlu1 %7241 }
 0x3cd   : > { %v7244_v30 = vunpack.i.h.bf16 %v7242_v46  ;;  %v7243_v43 = vunpack.i.l.bf16 %v7242_v46  ;;  %v7254_v7 = vunpack.i.h.bf16 %v7252_v38  ;;  %v7253_v62 = vunpack.i.l.bf16 %v7252_v38 }
 0x3ce   : > { %2496 = vmatpush.bf16.msrb.mxu2 %v2477_v17  ;;  %2524 = vmatpush.bf16.msra.mxu3 %v2486_v55  ;;  %v6212_v17 = vor.u32 %v6917_v44, %v6209_v50  ;;  %v6897_v44 = vld [vmem:[%s10839_s4 + $0x364] sm:$0xf]  ;;  %v2801_v50 = vunpack.c.h.b16 %v8924_v39  ;;  %v6904_v39 = vld [vmem:[%s10839_s4 + $0x394] sm:$0xf0] }
 0x3cf   : > { %v2417_v26 = vsel %vm1525_vm7, %v7243_v43, %v7244_v30  ;;  %v2414_v63 = vsel %vm1525_vm7, %v7253_v62, %v7254_v7  ;;  %v6196_v43 = vor.u32 %v6913_v3, %v6193_v10  ;;  %v6177_v7 = vld [vmem:[%s10839_s4 + $0x3d0] sm:$0xf0]  ;;  %v6151_v10 = vld [vmem:[%s10839_s4 + $0x388] sm:$0xf] }
 0x3d0   : > { %v2485_v21 = vpack.c.bf16 %v2417_v26, %v2416_v49  ;;  %v6215_v49 = vld [vmem:[%s10839_s4 + $0x408] sm:$0xf]  ;;  %v6920_v26 = vld [vmem:[%s10839_s4 + $0x414] sm:$0xf0] }
 0x3d2   : > { %2497 = vmatpush.bf16.msrb.mxu2 %v2476_v14  ;;  %2525 = vmatpush.bf16.msra.mxu3 %v2485_v21  ;;  %v6216_v14 = vor.u32 %v6920_v26, %v6215_v49  ;;  %v6909_v21 = vld [vmem:[%s10839_s4 + $0x3c4] sm:$0xf]  ;;  %v6273_v26 = vld [vmem:[%s10839_s4 + $0x490] sm:$0xf0] }
 0x3d3   : > { %v6180_v62 = vor.u32 %v6909_v21, %v6177_v7  ;;  %v6900_v21 = vld [vmem:[%s10839_s4 + $0x374] sm:$0xf0] }
 0x3d4   : > { %v7267_v58 = vpop.permute.xlu0 %7266  ;;  %v7257_v41 = vpop.permute.xlu1 %7256 }
 0x3d5   : > { %v7259_v40 = vunpack.i.h.bf16 %v7257_v41  ;;  %v7258_v6 = vunpack.i.l.bf16 %v7257_v41  ;;  %v7269_v18 = vunpack.i.h.bf16 %v7267_v58  ;;  %v7268_v12 = vunpack.i.l.bf16 %v7267_v58  ;;  %v6199_v58 = vld [vmem:[%s10839_s4 + $0x3e8] sm:$0xf]  ;;  %v6916_v41 = vld [vmem:[%s10839_s4 + $0x3f4] sm:$0xf0] }
 0x3d6   : > { %2498 = vmatpush.bf16.msrb.mxu2 %v2475_v4  ;;  %v6905_v4 = vld [vmem:[%s10839_s4 + $0x3a4] sm:$0xf] }
 0x3d7   : > { %v2415_v57 = vsel %vm1525_vm7, %v7258_v6, %v7259_v40  ;;  %v2483_v36 = vpack.c.bf16 %v7269_v18, %v7268_v12  ;;  %v6200_v40 = vor.u32 %v6916_v41, %v6199_v58  ;;  %v6161_v6 = vld [vmem:[%s10839_s4 + $0x3b0] sm:$0xf0]  ;;  %v6912_v18 = vld [vmem:[%s10839_s4 + $0x3d4] sm:$0xf0]  ;;  %v6889_v58 = vld [vmem:[%s10839_s4 + $0x324] sm:$0xf] }
 0x3d8   : > { %v2484_v34 = vpack.c.bf16 %v2415_v57, %v2414_v63  ;;  %v6164_v63 = vor.u32 %v6905_v4, %v6161_v6  ;;  %v6183_v57 = vld [vmem:[%s10839_s4 + $0x3c8] sm:$0xf]  ;;  %v6097_v41 = vld [vmem:[%s10839_s4 + $0x330] sm:$0xf0]  ;;  %v6929_v4 = vld [vmem:[%s10839_s4 + $0x464] sm:$0xf] }
 0x3d9   : > { %v6184_v12 = vor.u32 %v6912_v18, %v6183_v57  ;;  %v6100_v6 = vor.u32 %v6889_v58, %v6097_v41  ;;  %v6119_v57 = vld [vmem:[%s10839_s4 + $0x348] sm:$0xf]  ;;  %v6896_v18 = vld [vmem:[%s10839_s4 + $0x354] sm:$0xf0]  ;;  %v6898_v41 = vld [vmem:[%s10839_s4 + $0x36c] sm:$0xf] }
 0x3da   : > { %2499 = vmatpush.bf16.msrb.mxu2 %v2474_v32  ;;  %2526 = vmatpush.bf16.msra.mxu3 %v2484_v34  ;;  %v6901_v32 = vld [vmem:[%s10839_s4 + $0x384] sm:$0xf]  ;;  %v6145_v34 = vld [vmem:[%s10839_s4 + $0x390] sm:$0xf0] }
 0x3dc   : > { %v7282_v16 = vpop.permute.xlu0 %7281  ;;  %v7272_v20 = vpop.permute.xlu1 %7271 }
 0x3dd   : > { %v7284_v35 = vunpack.i.h.bf16 %v7282_v16  ;;  %v7283_v9 = vunpack.i.l.bf16 %v7282_v16  ;;  %v7274_v38 = vunpack.i.h.bf16 %v7272_v20  ;;  %v7273_v46 = vunpack.i.l.bf16 %v7272_v20  ;;  %2500 = vmatmul.bf16.vlgmr.msrb.gmra.mxu2 %v8557_v15  ;;  %v6167_v16 = vld [vmem:[%s10839_s4 + $0x3a8] sm:$0xf]  ;;  %v6908_v20 = vld [vmem:[%s10839_s4 + $0x3b4] sm:$0xf0] }
 0x3de   : > { %2527 = vmatpush.bf16.msra.mxu3 %v2483_v36  ;;  %2954 = vmatpush.bf16.msra.mxu2 %v6212_v17  ;;  %v6148_v36 = vor.u32 %v6901_v32, %v6145_v34  ;;  %v6152_v17 = vor.u32 %v6904_v39, %v6151_v10  ;;  %v6925_v32 = vld [vmem:[%s10839_s4 + $0x444] sm:$0xf]  ;;  %v6241_v34 = vld [vmem:[%s10839_s4 + $0x450] sm:$0xf0]  ;;  %v6201_v10 = vld [vmem:[%s10839_s4 + $0x3f8] sm:$0xf0] }
 0x3df   : > { %v2490_v55 = vpack.c.bf16 %v7284_v35, %v7283_v9  ;;  %v2482_v30 = vpack.c.bf16 %v7274_v38, %v7273_v46  ;;  %v6168_v35 = vor.u32 %v6908_v20, %v6167_v16  ;;  %v6129_v9 = vld [vmem:[%s10839_s4 + $0x370] sm:$0xf0]  ;;  %v2853_v38 = vpack.c.b16 %v2801_v50, %v2801_v50  ;;  %v6217_v20 = vld [vmem:[%s10839_s4 + $0x418] sm:$0xf0]  ;;  %v6892_v50 = vld [vmem:[%s10839_s4 + $0x334] sm:$0xf0] }
 0x3e0   : > { %v6132_v46 = vor.u32 %v6897_v44, %v6129_v9  ;;  %v6244_v16 = vor.u32 %v6925_v32, %v6241_v34  ;;  %v6103_v44 = vld [vmem:[%s10839_s4 + $0x328] sm:$0xf] }
 0x3e1   : > { %2557 = vmatpush.bf16.msrb.mxu0 %v2490_v55  ;;  %v2908_v3 = vsel %vm1271_vm3, %v2853_v38, 0  ;;  %v6893_v55 = vld [vmem:[%s10839_s4 + $0x344] sm:$0xf]  ;;  %v6104_v9 = vor.u32 %v6892_v50, %v6103_v44  ;;  %v6105_v44 = vld [vmem:[%s10839_s4 + $0x338] sm:$0xf0] }
 0x3e2   : > { %2528 = vmatpush.bf16.msra.mxu3 %v2482_v30  ;;  %2955 = vmatpush.bf16.msra.mxu2 %v6196_v43  ;;  %v6113_v30 = vld [vmem:[%s10839_s4 + $0x350] sm:$0xf0]  ;;  %v6933_v43 = vld [vmem:[%s10839_s4 + $0x484] sm:$0xf] }
 0x3e3   : > { %v6116_v49 = vor.u32 %v6893_v55, %v6113_v30  ;;  %v6276_v7 = vor.u32 %v6933_v43, %v6273_v26  ;;  %v6921_v38 = vld [vmem:[%s10839_s4 + $0x424] sm:$0xf]  ;;  %v6910_v55 = vld [vmem:[%s10839_s4 + $0x3cc] sm:$0xf]  ;;  %v6185_v30 = vld [vmem:[%s10839_s4 + $0x3d8] sm:$0xf0] }
 0x3e4   : > { %6039 = vmatmul.msk.bf16.vlgmr.msrb.gmra.mxu0 %vm1665_vm8, %v8575_v31  ;;  %v6188_v43 = vor.u32 %v6910_v55, %v6185_v30  ;;  %v6169_v26 = vld [vmem:[%s10839_s4 + $0x3b8] sm:$0xf0]  ;;  %v6967_v55 = vld [vmem:[%s10839_s4 + $0x59c] sm:$0xf0] }
 0x3e5   : > { %2529 = vmatmul.bf16.vlgmr.msra.gmra.mxu3 %v8583_v1  ;;  %2992 = vmatpush.bf16.msra.mxu0 %v6216_v14  ;;  %v6135_v14 = vld [vmem:[%s10839_s4 + $0x368] sm:$0xf] }
 0x3e6   : > { %2956 = vmatpush.bf16.msra.mxu2 %v6180_v62  ;;  %2976 = vmatpush.bf16.msrb.mxu3 %v2908_v3  ;;  %v6136_v62 = vor.u32 %v6900_v21, %v6135_v14  ;;  %v6914_v3 = vld [vmem:[%s10839_s4 + $0x3ec] sm:$0xf] }
 0x3e7   : > { %v6902_v21 = vld [vmem:[%s10839_s4 + $0x38c] sm:$0xf] }
 0x3e9   : > { %2993 = vmatpush.bf16.msra.mxu0 %v6200_v40  ;;  %v6257_v40 = vld [vmem:[%s10839_s4 + $0x470] sm:$0xf0] }
 0x3ea   : > { %2957 = vmatpush.bf16.msra.mxu2 %v6164_v63  ;;  %2977 = vmatpush.bf16.msrb.mxu3 %v6276_v7  ;;  %v6260_v63 = vor.u32 %v6929_v4, %v6257_v40  ;;  %v6153_v7 = vld [vmem:[%s10839_s4 + $0x398] sm:$0xf0] }
 0x3eb   : > { %v6156_v58 = vor.u32 %v6902_v21, %v6153_v7  ;;  %v6137_v4 = vld [vmem:[%s10839_s4 + $0x378] sm:$0xf0]  ;;  %v6959_v21 = vld [vmem:[%s10839_s4 + $0x55c] sm:$0xf0] }
 0x3ed   : > { %2505 = vmatmul.bf16.gmra.mxu2 %v8630_v51  ;;  %2994 = vmatpush.bf16.msra.mxu0 %v6184_v12  ;;  %v6120_v12 = vor.u32 %v6896_v18, %v6119_v57  ;;  %v6121_v57 = vld [vmem:[%s10839_s4 + $0x358] sm:$0xf0]  ;;  %v6934_v18 = vld [vmem:[%s10839_s4 + $0x48c] sm:$0xf] }
 0x3ee   : > { %2958 = vmatpush.bf16.msra.mxu2 %v6148_v36  ;;  %2978 = vmatpush.bf16.msrb.mxu3 %v6260_v63  ;;  %v6918_v36 = vld [vmem:[%s10839_s4 + $0x40c] sm:$0xf]  ;;  %v6140_v63 = vor.u32 %v6898_v41, %v6137_v4  ;;  %v6397_v4 = vld [vmem:[%s10839_s4 + $0x510] sm:$0xf] }
 0x3f1   : > { %2995 = vmatpush.bf16.msra.mxu0 %v6168_v35  ;;  %v6220_v35 = vor.u32 %v6918_v36, %v6217_v20  ;;  %v6930_v36 = vld [vmem:[%s10839_s4 + $0x46c] sm:$0xf] }
 0x3f2   : > { %2959 = vmatpush.bf16.msra.mxu2 %v6132_v46  ;;  %v6225_v46 = vld [vmem:[%s10839_s4 + $0x430] sm:$0xf0]  ;;  %2979 = vmatpush.bf16.msrb.mxu3 %v6244_v16  ;;  %v6265_v16 = vld [vmem:[%s10839_s4 + $0x478] sm:$0xf0]  ;;  %v6890_v20 = vld [vmem:[%s10839_s4 + $0x32c] sm:$0xf] }
 0x3f3   : > { %v6228_v39 = vor.u32 %v6921_v38, %v6225_v46  ;;  %v6268_v50 = vor.u32 %v6930_v36, %v6265_v16  ;;  %v6249_v38 = vld [vmem:[%s10839_s4 + $0x458] sm:$0xf0]  ;;  %v6939_v36 = vld [vmem:[%s10839_s4 + $0x4bc] sm:$0xf0] }
 0x3f4   : > { %6040 = vmatmul.msk.bf16.gmra.mxu0 %vm1665_vm8, %v8648_v60 }
 0x3f5   : > { %2534 = vmatmul.bf16.gmra.mxu3 %v8660_v2  ;;  %2996 = vmatpush.bf16.msra.mxu0 %v6152_v17  ;;  %v6204_v17 = vor.u32 %v6914_v3, %v6201_v10  ;;  %v6922_v3 = vld [vmem:[%s10839_s4 + $0x42c] sm:$0xf]  ;;  %v6233_v10 = vld [vmem:[%s10839_s4 + $0x438] sm:$0xf0] }
 0x3f6   : > { %2960 = vmatpush.bf16.msra.mxu2 %v6116_v49  ;;  %2980 = vmatpush.bf16.msrb.mxu3 %v6228_v39  ;;  %v6906_v49 = vld [vmem:[%s10839_s4 + $0x3ac] sm:$0xf]  ;;  %v6236_v39 = vor.u32 %v6922_v3, %v6233_v10  ;;  %v6509_v3 = vld [vmem:[%s10839_s4 + $0x5f0] sm:$0xf]  ;;  %v6979_v10 = vld [vmem:[%s10839_s4 + $0x5fc] sm:$0xf0] }
 0x3f7   : > { %v6172_v14 = vor.u32 %v6906_v49, %v6169_v26  ;;  %v6963_v49 = vld [vmem:[%s10839_s4 + $0x57c] sm:$0xf0] }
 0x3f9   : > { %2997 = vmatpush.bf16.msra.mxu0 %v6136_v62  ;;  %v2803_v62 = vunpack.c.h.b16 %v8967_v23  ;;  %v6894_v23 = vld [vmem:[%s10839_s4 + $0x34c] sm:$0xf] }
 0x3fa   : > { %2961 = vmatpush.bf16.msra.mxu2 %v6100_v6  ;;  %v6124_v32 = vor.u32 %v6894_v23, %v6121_v57  ;;  %v6947_v23 = vld [vmem:[%s10839_s4 + $0x4fc] sm:$0xf0] }
 0x3fb   : > { %v2855_v40 = vpack.c.b16 %v2803_v62, %v2803_v62  ;;  %v6413_v62 = vld [vmem:[%s10839_s4 + $0x530] sm:$0xf] }
 0x3fd   : > { %2510 = vmatmul.bf16.gmra.mxu2 %v8720_v42  ;;  %2998 = vmatpush.bf16.msra.mxu0 %v6120_v12  ;;  %v2914_v6 = vsel %vm1271_vm3, %v2855_v40, 0  ;;  %v6281_v12 = vld [vmem:[%s10839_s4 + $0x498] sm:$0xf0]  ;;  %v6951_v40 = vld [vmem:[%s10839_s4 + $0x51c] sm:$0xf0] }
 0x3fe   : > { %3030 = vmatpush.bf16.msrb.mxu2 %v6220_v35  ;;  %3052 = vmatpush.bf16.msra.mxu3 %v2914_v6  ;;  %v6284_v34 = vor.u32 %v6934_v18, %v6281_v12  ;;  %v6108_v35 = vor.u32 %v6890_v20, %v6105_v44  ;;  %v6398_v6 = vor.u32 %v6951_v40, %v6397_v4  ;;  %v6365_v18 = vld [vmem:[%s10839_s4 + $0x4d0] sm:$0xf]  ;;  %v6943_v12 = vld [vmem:[%s10839_s4 + $0x4dc] sm:$0xf0]  ;;  %v9409_v40 = vld [vmem:[%s10839_s4 + $0x638] sm:$0x33] }
 0x3ff   : > { %v9369_v20 = vld [vmem:[%s10839_s4 + $0x630] sm:$0x33] }
 0x400   : > { %v3542_v44 = vunpack.c.l.b16 %v9369_v20 }
 0x401   : > { %2999 = vmatpush.bf16.msra.mxu0 %v6104_v9  ;;  %v6926_v9 = vld [vmem:[%s10839_s4 + $0x44c] sm:$0xf] }
 0x402   : > { %3031 = vmatpush.bf16.msrb.mxu2 %v6204_v17  ;;  %3053 = vmatpush.bf16.msra.mxu3 %v6284_v34  ;;  %v6252_v46 = vor.u32 %v6926_v9, %v6249_v38  ;;  %v6461_v17 = vld [vmem:[%s10839_s4 + $0x590] sm:$0xf]  ;;  %v6983_v38 = vld [vmem:[%s10839_s4 + $0x61c] sm:$0xf0] }
 0x403   : > { %v6462_v30 = vor.u32 %v6967_v55, %v6461_v17  ;;  %v6349_v34 = vld [vmem:[%s10839_s4 + $0x4b0] sm:$0xf]  ;;  %v6975_v55 = vld [vmem:[%s10839_s4 + $0x5dc] sm:$0xf0] }
 0x404   : > { %6041 = vmatmul.msk.bf16.gmra.mxu0 %vm1665_vm8, %v8750_v56  ;;  %v6350_v16 = vor.u32 %v6939_v36, %v6349_v34  ;;  %v6525_v9 = vld [vmem:[%s10839_s4 + $0x610] sm:$0xf]  ;;  %v6984_v34 = vld [vmem:[%s10839_s4 + $0x624] sm:$0xf0] }
 0x405   : > { %2539 = vmatmul.bf16.gmra.mxu3 %v8761_v11  ;;  %v6493_v17 = vld [vmem:[%s10839_s4 + $0x5d0] sm:$0xf] }
 0x406   : > { %3032 = vmatpush.bf16.msrb.mxu2 %v6188_v43  ;;  %3054 = vmatpush.bf16.msra.mxu3 %v6268_v50  ;;  %v6445_v43 = vld [vmem:[%s10839_s4 + $0x570] sm:$0xf]  ;;  %v3594_v50 = vpack.c.b16 %v3542_v44, %v3542_v44 }
 0x407   : > { %v6446_v26 = vor.u32 %v6963_v49, %v6445_v43  ;;  %v6477_v49 = vld [vmem:[%s10839_s4 + $0x5b0] sm:$0xf] }
 0x40a   : > { %3033 = vmatpush.bf16.msrb.mxu2 %v6172_v14  ;;  %3055 = vmatpush.bf16.msra.mxu3 %v6252_v46  ;;  %v6429_v14 = vld [vmem:[%s10839_s4 + $0x550] sm:$0xf]  ;;  %v6526_v46 = vor.u32 %v6983_v38, %v6525_v9 }
 0x40b   : > { %v6430_v7 = vor.u32 %v6959_v21, %v6429_v14 }
 0x40d   : > { %2515 = vmatmul.bf16.gmra.mxu2 %v8790_v52 }
 0x40e   : > { %3034 = vmatpush.bf16.msrb.mxu2 %v6156_v58  ;;  %3056 = vmatpush.bf16.msra.mxu3 %v6236_v39  ;;  %v6955_v58 = vld [vmem:[%s10839_s4 + $0x53c] sm:$0xf0]  ;;  %v6510_v39 = vor.u32 %v6979_v10, %v6509_v3  ;;  %v6501_v10 = vld [vmem:[%s10839_s4 + $0x5d8] sm:$0xf] }
 0x40f   : > { %v6414_v41 = vor.u32 %v6955_v58, %v6413_v62 }
 0x412   : > { %3035 = vmatpush.bf16.msrb.mxu2 %v6140_v63  ;;  %v6381_v63 = vld [vmem:[%s10839_s4 + $0x4f0] sm:$0xf] }
 0x413   : > { %v6382_v57 = vor.u32 %v6947_v23, %v6381_v63 }
 0x414   : > { %6042 = vmatmul.msk.bf16.gmra.mxu0 %vm1665_vm8, %v8805_v27 }
 0x415   : > { %2544 = vmatmul.bf16.gmra.mxu3 %v8814_v29 }
 0x416   : > { %3036 = vmatpush.bf16.msrb.mxu2 %v6124_v32  ;;  %v6366_v32 = vor.u32 %v6943_v12, %v6365_v18 }
 0x41a   : > { %3037 = vmatpush.bf16.msrb.mxu2 %v6108_v35  ;;  %v3647_v35 = vsel %vm1271_vm3, %v3594_v50, 0  ;;  %v6517_v50 = vld [vmem:[%s10839_s4 + $0x5f8] sm:$0xf] }
 0x41d   : > { %2962 = vmatmul.bf16.vlgmr.msra.gmra.mxu2 %v8235_v28 }
 0x424   : > { %3000 = vmatmul.bf16.vlgmr.msra.gmra.mxu0 %v8235_v28 }
 0x425   : > { %6287 = vmatmul.msk.bf16.vlgmr.msrb.gmra.mxu3 %vm1264_vm4, %v8306_v37 }
 0x426   : > { %3658 = vmatpush.bf16.msrb.mxu3 %v6462_v30  ;;  %v6494_v30 = vor.u32 %v6975_v55, %v6493_v17  ;;  %v9440_v55 = vpop.f32.mrf.mxu1 }
 0x42a   : > { %3659 = vmatpush.bf16.msrb.mxu3 %v6446_v26  ;;  %v6971_v26 = vld [vmem:[%s10839_s4 + $0x5bc] sm:$0xf0] }
 0x42b   : > { %v6478_v21 = vor.u32 %v6971_v26, %v6477_v49  ;;  %v6485_v49 = vld [vmem:[%s10839_s4 + $0x5b8] sm:$0xf]  ;;  %v6972_v26 = vld [vmem:[%s10839_s4 + $0x5c4] sm:$0xf0] }
 0x42d   : > { %2967 = vmatmul.bf16.gmra.mxu2 %v8325_v45 }
 0x42e   : > { %3660 = vmatpush.bf16.msrb.mxu3 %v6430_v7 }
 0x432   : > { %3661 = vmatpush.bf16.msrb.mxu3 %v6414_v41 }
 0x434   : > { %3005 = vmatmul.bf16.gmra.mxu0 %v8325_v45 }
 0x435   : > { %6288 = vmatmul.msk.bf16.gmra.mxu3 %vm1264_vm4, %v8358_v47 }
 0x436   : > { %3662 = vmatpush.bf16.msrb.mxu3 %v6398_v6  ;;  %v3544_v6 = vunpack.c.l.b16 %v9409_v40 }
 0x43a   : > { %3663 = vmatpush.bf16.msrb.mxu3 %v6382_v57  ;;  %v3596_v57 = vpack.c.b16 %v3544_v6, %v3544_v6 }
 0x43c   : > { %v3653_v12 = vsel %vm1271_vm3, %v3596_v57, 0 }
 0x43d   : > { %3038 = vmatmul.bf16.vlgmr.msrb.gmra.mxu2 %v8235_v28 }
 0x43e   : > { %3664 = vmatpush.bf16.msrb.mxu3 %v6366_v32  ;;  %v6533_v32 = vld [vmem:[%s10839_s4 + $0x618] sm:$0xf] }
 0x43f   : > { %v6534_v36 = vor.u32 %v6984_v34, %v6533_v32 }
 0x442   : > { %3665 = vmatpush.bf16.msrb.mxu3 %v6350_v16 }
 0x445   : > { %6291 = vmatmul.msk.bf16.vlgmr.msra.gmra.mxu3 %vm1264_vm4, %v8306_v37 }
 0x446   : > { %3680 = vmatpush.bf16.msra.mxu3 %v3647_v35  ;;  %v6980_v35 = vld [vmem:[%s10839_s4 + $0x604] sm:$0xf0] }
 0x44a   : > { %3681 = vmatpush.bf16.msra.mxu3 %v6526_v46  ;;  %v6518_v46 = vor.u32 %v6980_v35, %v6517_v50 }
 0x44d   : > { %3043 = vmatmul.bf16.gmra.mxu2 %v8325_v45 }
 0x44e   : > { %3682 = vmatpush.bf16.msra.mxu3 %v6510_v39  ;;  %v6976_v39 = vld [vmem:[%s10839_s4 + $0x5e4] sm:$0xf0] }
 0x44f   : > { %v6502_v17 = vor.u32 %v6976_v39, %v6501_v10 }
 0x452   : > { %3683 = vmatpush.bf16.msra.mxu3 %v6494_v30 }
 0x455   : > { %6292 = vmatmul.msk.bf16.gmra.mxu3 %vm1264_vm4, %v8358_v47 }
 0x456   : > { %3684 = vmatpush.bf16.msra.mxu3 %v6478_v21  ;;  %v6486_v21 = vor.u32 %v6972_v26, %v6485_v49 }
 0x460   : > { %v2501_v43 = vpop.f32.mrf.mxu2 }
 0x461   : > { %v2559_v14 = vpop.f32.mrf.mxu0 }
 0x465   : > { %3666 = vmatmul.bf16.vlgmr.msrb.gmra.mxu3 %v8235_v28 }
 0x466   : > { %3756 = vmatpush.bf16.msrb.mxu3 %v3653_v12 }
 0x468   : > { %v9400_v7 = vpop.f32.mrf.mxu2  ;;  %v2530_v62 = vpop.f32.mrf.mxu3 }
 0x469   : > { %v2531_v58 = vadd.f32 %v2530_v62, %v2501_v43  ;;  %v9402_v41 = vpop.f32.mrf.mxu0  ;;  %v2949_v62 = vpop.f32.mrf.mxu1 }
 0x46a   : > { %10904 = vst [vmem:[#allocation13_spill] sm:$0xff] %v9402_v41  ;;  %3757 = vmatpush.bf16.msrb.mxu3 %v6534_v36 }
 0x46b   : > { %v9404_v4 = vadd.f32 %v2559_v14, %v2531_v58 }
 0x46e   : > { %3758 = vmatpush.bf16.msrb.mxu3 %v6518_v46 }
 0x470   : > { %v2506_v63 = vpop.f32.mrf.mxu2  ;;  %v9412_v23 = vpop.f32.mrf.mxu3 }
 0x471   : > { %v2564_v18 = vpop.f32.mrf.mxu0  ;;  %v2951_v34 = vpop.f32.mrf.mxu1 }
 0x472   : > { %3759 = vmatpush.bf16.msrb.mxu3 %v6502_v17 }
 0x475   : > { %3671 = vmatmul.bf16.gmra.mxu3 %v8325_v45 }
 0x476   : > { %3760 = vmatpush.bf16.msrb.mxu3 %v6486_v21 }
 0x478   : > { %v9422_v16 = vpop.f32.mrf.mxu2  ;;  %v2535_v44 = vpop.f32.mrf.mxu3 }
 0x479   : > { %v2536_v9 = vadd.f32 %v2535_v44, %v2506_v63  ;;  %v9430_v38 = vpop.f32.mrf.mxu0  ;;  %v3020_v46 = vpop.f32.mrf.mxu1 }
 0x47a   : > { %10905 = vst [vmem:[#allocation14_spill] sm:$0xff] %v9430_v38 }
 0x47b   : > { %v9432_v3 = vadd.f32 %v2564_v18, %v2536_v9 }
 0x47d   : > { %10906 = vst [vmem:[#allocation15_spill] sm:$0xff] %v9432_v3 }
 0x480   : > { %v2511_v30 = vpop.f32.mrf.mxu2  ;;  %v9442_v43 = vpop.f32.mrf.mxu3 }
 0x481   : > { %v2569_v14 = vpop.f32.mrf.mxu0  ;;  %v3022_v49 = vpop.f32.mrf.mxu1 }
 0x485   : > { %6539 = vmatmul.msk.bf16.vlgmr.msra.gmra.mxu3 %vm1264_vm4, %v8306_v37 }
 0x488   : > { %v9452_v58 = vpop.f32.mrf.mxu2  ;;  %v2540_v6 = vpop.f32.mrf.mxu3 }
 0x489   : > { %10907 = vst [vmem:[#allocation16_spill] sm:$0xff] %v9452_v58  ;;  %v2541_v63 = vadd.f32 %v2540_v6, %v2511_v30  ;;  %v9454_v57 = vpop.f32.mrf.mxu0  ;;  %v3025_v6 = vpop.f32.mrf.mxu1 }
 0x48a   : > { %10908 = vst [vmem:[#allocation17_spill] sm:$0xff] %v9454_v57  ;;  %v9483_v57 = vadd.f32 %v2949_v62, %v9067_v5 }
 0x48b   : > { %v9456_v18 = vadd.f32 %v2569_v14, %v2541_v63 }
 0x48d   : > { %10909 = vst [vmem:[#allocation18_spill] sm:$0xff] %v9456_v18  ;;  %v9489_v18 = vadd.f32 %v2951_v34, %v9072_v22 }
 0x490   : > { %v2516_v12 = vpop.f32.mrf.mxu2  ;;  %v9458_v32 = vpop.f32.mrf.mxu3 }
 0x491   : > { %10910 = vst [vmem:[#allocation19_spill] sm:$0xff] %v9458_v32  ;;  %v2574_v36 = vpop.f32.mrf.mxu0  ;;  %v3027_v32 = vpop.f32.mrf.mxu1 }
 0x495   : > { %6540 = vmatmul.msk.bf16.gmra.mxu3 %vm1264_vm4, %v8358_v47 }
 0x498   : > { %v9462_v44 = vpop.f32.mrf.mxu2  ;;  %v2545_v50 = vpop.f32.mrf.mxu3 }
 0x499   : > { %10911 = vst [vmem:[#allocation20_spill] sm:$0xff] %v9462_v44  ;;  %v2546_v35 = vadd.f32 %v2545_v50, %v2516_v12  ;;  %v9464_v9 = vpop.f32.mrf.mxu0 }
 0x49a   : > { %10912 = vst [vmem:[#allocation21_spill] sm:$0xff] %v9464_v9 }
 0x49b   : > { %v9466_v10 = vadd.f32 %v2574_v36, %v2546_v35 }
 0x49d   : > { %10913 = vst [vmem:[#allocation22_spill] sm:$0xff] %v9466_v10 }
 0x4a0   : > { %v9468_v39 = vpop.f32.mrf.mxu3  ;;  %v2963_v17 = vpop.f32.mrf.mxu2 }
 0x4a1   : > { %10914 = vst [vmem:[#allocation23_spill] sm:$0xff] %v9468_v39  ;;  %v3001_v30 = vpop.f32.mrf.mxu0 }
 0x4a5   : > { %6543 = vmatmul.msk.bf16.vlgmr.msrb.gmra.mxu3 %vm1264_vm4, %v8306_v37 }
 0x4a8   : > { %v2965_v26 = vpop.f32.mrf.mxu2  ;;  %v2982_v14 = vpop.f32.mrf.mxu3 }
 0x4a9   : > { %v3003_v21 = vpop.f32.mrf.mxu0  ;;  %v9472_v12 = vadd.f32 %v2982_v14, %v2963_v17 }
 0x4aa   : > { %v3023_v22 = vadd.f32 %v3022_v49, %v3003_v21  ;;  %v9505_v49 = vadd.f32 %v9440_v55, %v9062_v25 }
 0x4b0   : > { %v2968_v63 = vpop.f32.mrf.mxu2  ;;  %v2984_v44 = vpop.f32.mrf.mxu3 }
 0x4b1   : > { %v9474_v50 = vadd.f32 %v2984_v44, %v2965_v26  ;;  %v3006_v36 = vpop.f32.mrf.mxu0 }
 0x4b2   : > { %v3026_v17 = vadd.f32 %v3025_v6, %v3006_v36 }
 0x4b3   : > { %v9478_v35 = vpack.i.bf16 %v9474_v50, %v9472_v12  ;;  %v7335_v25 = vpack.i.bf16 %v9474_v50, %v9505_v49 }
 0x4b5   : > { %6544 = vmatmul.msk.bf16.gmra.mxu3 %vm1264_vm4, %v8358_v47 }
 0x4b8   : > { %v2970_v9 = vpop.f32.mrf.mxu2  ;;  %v2987_v39 = vpop.f32.mrf.mxu3 }
 0x4b9   : > { %v2988_v58 = vadd.f32 %v2987_v39, %v2968_v63  ;;  %v3008_v10 = vpop.f32.mrf.mxu0 }
 0x4ba   : > { %v3028_v14 = vadd.f32 %v3027_v32, %v3008_v10  ;;  %v3021_v32 = vadd.f32 %v3020_v46, %v3001_v30  ;;  %v7355_v30 = vpack.i.bf16 %v9489_v18, %v9483_v57 }
 0x4bb   : > { %v7295_v44 = vpack.i.bf16 %v2988_v58, %v9483_v57 }
 0x4bc   : > { %v7285_v26 = vpack.i.bf16 %v3028_v14, %v3026_v17  ;;  %v7340_v36 = vpack.i.bf16 %v3023_v22, %v3021_v32 }
 0x4bd   : > { %7296 = vrot.lane.b32.xlu1 %v7295_v44, %s10915_s26 }
 0x4be   : > { %7286 = vrot.lane.b32.xlu0 %v7285_v26, %s10897_s30 }
 0x4c0   : > { %v2989_v48 = vpop.f32.mrf.mxu3  ;;  %v3039_v3 = vpop.f32.mrf.mxu2 }
 0x4c1   : > { %v2990_v53 = vadd.f32 %v2989_v48, %v2970_v9 }
 0x4c3   : > { %v7305_v5 = vpack.i.bf16 %v2990_v53, %v9489_v18  ;;  %v7300_v63 = vpack.i.bf16 %v2990_v53, %v2988_v58 }
 0x4c5   : > { %7306 = vrot.lane.b32.xlu2 %v7305_v5, %s10915_s26 }
 0x4c6   : > { %7291 = vrot.lane.b32.xlu0 %v9478_v35, %s10899_s19 }
 0x4c8   : > { %v3058_v62 = vpop.f32.mrf.mxu3  ;;  %v3041_v6 = vpop.f32.mrf.mxu2 }
 0x4c9   : > { %v3059_v10 = vadd.f32 %v3058_v62, %v3039_v3 }
 0x4cb   : > { %v7310_v39 = vpack.i.bf16 %v3059_v10, %v3021_v32 }
 0x4cd   : > { %7311 = vrot.lane.b32.xlu1 %v7310_v39, %s10898_s18 }
 0x4ce   : > { %7301 = vrot.lane.b32.xlu0 %v7300_v63, %s10899_s19 }
 0x4d0   : > { %v3060_v48 = vpop.f32.mrf.mxu3  ;;  %v3044_v44 = vpop.f32.mrf.mxu2 }
 0x4d1   : > { %v3061_v34 = vadd.f32 %v3060_v48, %v3041_v6  ;;  %v7325_v6 = vpack.i.bf16 %v9472_v12, %v9076_v59  ;;  %v7370_v48 = vpack.i.bf16 %v9505_v49, %v9076_v59 }
 0x4d3   : > { %v7315_v9 = vpack.i.bf16 %v3061_v34, %v3023_v22 }
 0x4d5   : > { %7316 = vrot.lane.b32.xlu2 %v7315_v9, %s10898_s18 }
 0x4d6   : > { %7341 = vrot.lane.b32.xlu0 %v7340_v36, %s10897_s30  ;;  %v7345_v36 = vpack.i.bf16 %v3026_v17, %v2988_v58 }
 0x4d8   : > { %v3063_v26 = vpop.f32.mrf.mxu3  ;;  %v3046_v21 = vpop.f32.mrf.mxu2 }
 0x4d9   : > { %v3064_v46 = vadd.f32 %v3063_v26, %v3044_v44  ;;  %v7360_v26 = vpack.i.bf16 %v3021_v32, %v9472_v12 }
 0x4db   : > { %v7320_v3 = vpack.i.bf16 %v3064_v46, %v3026_v17  ;;  %v7365_v17 = vpack.i.bf16 %v3023_v22, %v9474_v50 }
 0x4dd   : > { %7321 = vrot.lane.b32.xlu1 %v7320_v3, %s10898_s18  ;;  %v7350_v3 = vpack.i.bf16 %v3028_v14, %v2990_v53 }
 0x4de   : > { %7356 = vrot.lane.b32.xlu0 %v7355_v30, %s10900_s20  ;;  %v7390_v30 = vpack.i.bf16 %v3061_v34, %v3059_v10 }
 0x4e0   : > { %v3065_v5 = vpop.f32.mrf.mxu3 }
 0x4e1   : > { %v3066_v62 = vadd.f32 %v3065_v5, %v3046_v21 }
 0x4e3   : > { %v7330_v39 = vpack.i.bf16 %v3066_v62, %v3028_v14  ;;  %v7385_v55 = vpack.i.bf16 %v3066_v62, %v3064_v46 }
 0x4e5   : > { %7326 = vrot.lane.b32.xlu1 %v7325_v6, %s10915_s26  ;;  %7331 = vrot.lane.b32.xlu2 %v7330_v39, %s10898_s18 }
 0x4e6   : > { %7371 = vrot.lane.b32.xlu0 %v7370_v48, %s10900_s20 }
 0x4e8   : > { %v3667_v9 = vpop.f32.mrf.mxu3 }
 0x4ed   : > { %7346 = vrot.lane.b32.xlu1 %v7345_v36, %s10901_s21  ;;  %7336 = vrot.lane.b32.xlu2 %v7335_v25, %s10915_s26 }
 0x4ee   : > { %7386 = vrot.lane.b32.xlu0 %v7385_v55, %s10902_s1 }
 0x4f0   : > { %v9519_v44 = vpop.f32.mrf.mxu3 }
 0x4f5   : > { %7361 = vrot.lane.b32.xlu1 %v7360_v26, %s10901_s21  ;;  %7351 = vrot.lane.b32.xlu2 %v7350_v3, %s10901_s21 }
 0x4f8   : > { %v9524_v58 = vpop.f32.mrf.mxu3 }
 0x4fd   : > { %7376 = vrot.lane.b32.xlu1 %v7300_v63, %s10903_s23  ;;  %7366 = vrot.lane.b32.xlu2 %v7365_v17, %s10901_s21 }
 0x500   : > { %v9529_v46 = vpop.f32.mrf.mxu3 }
 0x505   : > { %7391 = vrot.lane.b32.xlu1 %v7390_v30, %s10902_s1  ;;  %7381 = vrot.lane.b32.xlu2 %v9478_v35, %s10903_s23 }
 0x508   : > { %v3686_v53 = vpop.f32.mrf.mxu3 }
 0x509   : > { %v9534_v12 = vadd.f32 %v3686_v53, %v3667_v9 }
 0x51f   : > { %v7307_v32 = vpop.permute.xlu2 %7306 }
 0x520   : > { %v7309_v25 = vunpack.i.h.bf16 %v7307_v32  ;;  %v7308_v35 = vunpack.i.l.bf16 %v7307_v32 }
 0x522   : > { %v3107_v17 = vsel %vm1472_vm5, %v7308_v35, %v7309_v25 }
 0x52f   : > { %v7317_v5 = vpop.permute.xlu2 %7316  ;;  %v7297_v50 = vpop.permute.xlu1 %7296 }
 0x530   : > { %v7287_v14 = vpop.permute.xlu0 %7286  ;;  %v7299_v10 = vunpack.i.h.bf16 %v7297_v50  ;;  %v7298_v34 = vunpack.i.l.bf16 %v7297_v50  ;;  %v7319_v32 = vunpack.i.h.bf16 %v7317_v5 }
 0x531   : > { %v7289_v35 = vunpack.i.h.bf16 %v7287_v14 }
 0x532   : > { %v3106_v3 = vsel %vm1472_vm5, %v7298_v34, %v7299_v10 }
 0x533   : > { %v3221_v30 = vpack.c.bf16 %v3107_v17, %v3106_v3 }
 0x538   : > { %v7292_v21 = vpop.permute.xlu0 %7291 }
 0x539   : > { %v7294_v39 = vunpack.i.h.bf16 %v7292_v21  ;;  %v7293_v6 = vunpack.i.l.bf16 %v7292_v21 }
 0x53b   : > { %v3222_v55 = vpack.c.bf16 %v7294_v39, %v7293_v6  ;;  %v7318_v39 = vunpack.i.l.bf16 %v7317_v5 }
 0x53d   : > { %v3197_v17 = vsel %vm1566_vm6, %v7318_v39, %v7319_v32 }
 0x53f   : > { %v7332_v36 = vpop.permute.xlu2 %7331  ;;  %v7312_v9 = vpop.permute.xlu1 %7311 }
 0x540   : > { %v7302_v22 = vpop.permute.xlu0 %7301  ;;  %v7334_v53 = vunpack.i.h.bf16 %v7332_v36  ;;  %v7313_v50 = vunpack.i.l.bf16 %v7312_v9 }
 0x541   : > { %v7304_v63 = vunpack.i.h.bf16 %v7302_v22  ;;  %v7303_v62 = vunpack.i.l.bf16 %v7302_v22  ;;  %v7333_v22 = vunpack.i.l.bf16 %v7332_v36 }
 0x543   : > { %v3223_v48 = vpack.c.bf16 %v7304_v63, %v7303_v62  ;;  %v7314_v62 = vunpack.i.h.bf16 %v7312_v9  ;;  %v3199_v6 = vsel %vm1566_vm6, %v7333_v22, %v7334_v53 }
 0x545   : > { %3234 = vmatpush.bf16.msrb.mxu0 %v3223_v48  ;;  %v3196_v25 = vsel %vm1566_vm6, %v7313_v50, %v7314_v62 }
 0x547   : > { %v7337_v21 = vpop.permute.xlu2 %7336 }
 0x548   : > { %v7342_v26 = vpop.permute.xlu0 %7341  ;;  %v7339_v36 = vunpack.i.h.bf16 %v7337_v21  ;;  %v7338_v3 = vunpack.i.l.bf16 %v7337_v21 }
 0x549   : > { %3235 = vmatpush.bf16.msrb.mxu0 %v3222_v55  ;;  %v7288_v55 = vunpack.i.l.bf16 %v7287_v14  ;;  %v7344_v22 = vunpack.i.h.bf16 %v7342_v26  ;;  %v7343_v50 = vunpack.i.l.bf16 %v7342_v26 }
 0x54a   : > { %v3105_v62 = vsel %vm1472_vm5, %v7338_v3, %v7339_v36 }
 0x54b   : > { %v3229_v53 = vpack.c.bf16 %v7289_v35, %v7288_v55  ;;  %v3228_v39 = vpack.c.bf16 %v7344_v22, %v7343_v50 }
 0x54d   : > { %3236 = vmatpush.bf16.msrb.mxu0 %v3221_v30  ;;  %v3230_v30 = vpack.c.bf16 %v3197_v17, %v3196_v25 }
 0x54f   : > { %v7322_v63 = vpop.permute.xlu1 %7321  ;;  %v7352_v5 = vpop.permute.xlu2 %7351 }
 0x550   : > { %v7324_v33 = vunpack.i.h.bf16 %v7322_v63  ;;  %v7323_v48 = vunpack.i.l.bf16 %v7322_v63  ;;  %v7357_v38 = vpop.permute.xlu0 %7356  ;;  %v7354_v21 = vunpack.i.h.bf16 %v7352_v5  ;;  %v7353_v32 = vunpack.i.l.bf16 %v7352_v5 }
 0x551   : > { %v7358_v14 = vunpack.i.l.bf16 %v7357_v38 }
 0x552   : > { %v3198_v10 = vsel %vm1566_vm6, %v7323_v48, %v7324_v33  ;;  %v7359_v48 = vunpack.i.h.bf16 %v7357_v38  ;;  %v3159_v38 = vsel %vm1525_vm7, %v7353_v32, %v7354_v21 }
 0x553   : > { %v3231_v34 = vpack.c.bf16 %v3199_v6, %v3198_v10 }
 0x554   : > { %v3219_v10 = vpack.c.bf16 %v7359_v48, %v7358_v14 }
 0x555   : > { %3263 = vmatpush.bf16.msrb.mxu1 %v3231_v34 }
 0x557   : > { %v7327_v9 = vpop.permute.xlu1 %7326  ;;  %v7367_v36 = vpop.permute.xlu2 %7366 }
 0x558   : > { %v7329_v63 = vunpack.i.h.bf16 %v7327_v9  ;;  %v7328_v61 = vunpack.i.l.bf16 %v7327_v9  ;;  %v7372_v41 = vpop.permute.xlu0 %7371 }
 0x559   : > { %3264 = vmatpush.bf16.msrb.mxu1 %v3230_v30  ;;  %v7374_v34 = vunpack.i.h.bf16 %v7372_v41  ;;  %v7373_v25 = vunpack.i.l.bf16 %v7372_v41  ;;  %v7368_v41 = vunpack.i.l.bf16 %v7367_v36 }
 0x55a   : > { %v3104_v33 = vsel %vm1472_vm5, %v7328_v61, %v7329_v63 }
 0x55b   : > { %v3220_v6 = vpack.c.bf16 %v3105_v62, %v3104_v33  ;;  %v3218_v3 = vpack.c.bf16 %v7374_v34, %v7373_v25  ;;  %v3217_v33 = vpack.c.bf16 %v9489_v18, %v9483_v57  ;;  %v6463_v57 = vld [vmem:[%s10839_s4 + $0x5a0] sm:$0xf0] }
 0x55d   : > { %3237 = vmatpush.bf16.msrb.mxu0 %v3220_v6  ;;  %3265 = vmatpush.bf16.msrb.mxu1 %v3229_v53  ;;  %v7369_v53 = vunpack.i.h.bf16 %v7367_v36  ;;  %v3216_v6 = vpack.c.bf16 %v9505_v49, %v9076_v59  ;;  %v6961_v59 = vld [vmem:[%s10839_s4 + $0x574] sm:$0xf]  ;;  %v6447_v49 = vld [vmem:[%s10839_s4 + $0x580] sm:$0xf0] }
 0x55f   : > { %v7347_v17 = vpop.permute.xlu1 %7346  ;;  %v3157_v14 = vsel %vm1525_vm7, %v7368_v41, %v7369_v53  ;;  %v7382_v32 = vpop.permute.xlu2 %7381  ;;  %v6953_v53 = vld [vmem:[%s10839_s4 + $0x534] sm:$0xf]  ;;  %v6415_v41 = vld [vmem:[%s10839_s4 + $0x540] sm:$0xf0] }
 0x560   : > { %v7349_v9 = vunpack.i.h.bf16 %v7347_v17  ;;  %v7348_v35 = vunpack.i.l.bf16 %v7347_v17  ;;  %v7387_v55 = vpop.permute.xlu0 %7386  ;;  %v7384_v17 = vunpack.i.h.bf16 %v7382_v32 }
 0x561   : > { %v7389_v30 = vunpack.i.h.bf16 %v7387_v55  ;;  %v7388_v61 = vunpack.i.l.bf16 %v7387_v55  ;;  %3238 = vmatpush.bf16.msrb.mxu0 %v3219_v10  ;;  %3266 = vmatpush.bf16.msrb.mxu1 %v3228_v39  ;;  %v6965_v10 = vld [vmem:[%s10839_s4 + $0x594] sm:$0xf]  ;;  %v6450_v55 = vor.u32 %v6961_v59, %v6447_v49  ;;  %v6437_v59 = vld [vmem:[%s10839_s4 + $0x558] sm:$0xf]  ;;  %v6960_v49 = vld [vmem:[%s10839_s4 + $0x564] sm:$0xf0] }
 0x562   : > { %v3158_v26 = vsel %vm1525_vm7, %v7348_v35, %v7349_v9  ;;  %v6466_v25 = vor.u32 %v6965_v10, %v6463_v57  ;;  %v7383_v9 = vunpack.i.l.bf16 %v7382_v32  ;;  %v6964_v32 = vld [vmem:[%s10839_s4 + $0x584] sm:$0xf0]  ;;  %v3543_v10 = vunpack.c.h.b16 %v9369_v20  ;;  %v6941_v20 = vld [vmem:[%s10839_s4 + $0x4d4] sm:$0xf] }
 0x563   : > { %v3233_v63 = vpack.c.bf16 %v7389_v30, %v7388_v61  ;;  %v3227_v5 = vpack.c.bf16 %v3159_v38, %v3158_v26  ;;  %v6957_v30 = vld [vmem:[%s10839_s4 + $0x554] sm:$0xf]  ;;  %v6431_v61 = vld [vmem:[%s10839_s4 + $0x560] sm:$0xf0] }
 0x564   : > { %v3224_v26 = vpack.c.bf16 %v7384_v17, %v7383_v9  ;;  %v6434_v38 = vor.u32 %v6957_v30, %v6431_v61  ;;  %v6367_v17 = vld [vmem:[%s10839_s4 + $0x4e0] sm:$0xf0]  ;;  %v6981_v30 = vld [vmem:[%s10839_s4 + $0x614] sm:$0xf] }
 0x565   : > { %3239 = vmatpush.bf16.msrb.mxu0 %v3218_v3  ;;  %3267 = vmatpush.bf16.msrb.mxu1 %v3227_v5  ;;  %v6527_v61 = vld [vmem:[%s10839_s4 + $0x620] sm:$0xf0] }
 0x566   : > { %3298 = vmatpush.bf16.msra.mxu2 %v3233_v63 }
 0x567   : > { %v7362_v22 = vpop.permute.xlu1 %7361 }
 0x568   : > { %v7364_v62 = vunpack.i.h.bf16 %v7362_v22  ;;  %v7363_v50 = vunpack.i.l.bf16 %v7362_v22  ;;  %v6418_v22 = vor.u32 %v6953_v53, %v6415_v41  ;;  %v6977_v41 = vld [vmem:[%s10839_s4 + $0x5f4] sm:$0xf] }
 0x569   : > { %3240 = vmatpush.bf16.msrb.mxu0 %v3217_v33  ;;  %v6469_v33 = vld [vmem:[%s10839_s4 + $0x598] sm:$0xf] }
 0x56a   : > { %v3156_v48 = vsel %vm1525_vm7, %v7363_v50, %v7364_v62  ;;  %v6968_v62 = vld [vmem:[%s10839_s4 + $0x5a4] sm:$0xf0] }
 0x56b   : > { %v3226_v21 = vpack.c.bf16 %v3157_v14, %v3156_v48  ;;  %v6470_v50 = vor.u32 %v6968_v62, %v6469_v33  ;;  %v6949_v48 = vld [vmem:[%s10839_s4 + $0x514] sm:$0xf]  ;;  %v6399_v14 = vld [vmem:[%s10839_s4 + $0x520] sm:$0xf0]  ;;  %v6405_v33 = vld [vmem:[%s10839_s4 + $0x518] sm:$0xf] }
 0x56d   : > { %3241 = vmatpush.bf16.msrb.mxu0 %v3216_v6  ;;  %3268 = vmatpush.bf16.msrb.mxu1 %v3226_v21  ;;  %v6402_v6 = vor.u32 %v6949_v48, %v6399_v14  ;;  %v6453_v21 = vld [vmem:[%s10839_s4 + $0x578] sm:$0xf]  ;;  %v6966_v48 = vld [vmem:[%s10839_s4 + $0x59c] sm:$0xf]  ;;  %v6471_v14 = vld [vmem:[%s10839_s4 + $0x5a8] sm:$0xf0] }
 0x56e   : > { %v6454_v57 = vor.u32 %v6964_v32, %v6453_v21  ;;  %v6474_v21 = vor.u32 %v6966_v48, %v6471_v14  ;;  %v6973_v32 = vld [vmem:[%s10839_s4 + $0x5d4] sm:$0xf]  ;;  %v6391_v48 = vld [vmem:[%s10839_s4 + $0x508] sm:$0xf0]  ;;  %v3545_v14 = vunpack.c.h.b16 %v9409_v40  ;;  %v6982_v40 = vld [vmem:[%s10839_s4 + $0x61c] sm:$0xf] }
 0x56f   : > { %v7377_v39 = vpop.permute.xlu1 %7376 }
 0x570   : > { %v7379_v18 = vunpack.i.h.bf16 %v7377_v39  ;;  %v7378_v34 = vunpack.i.l.bf16 %v7377_v39  ;;  %3242 = vmatmul.bf16.vlgmr.msrb.gmra.mxu0 %v8557_v15  ;;  %v6945_v39 = vld [vmem:[%s10839_s4 + $0x4f4] sm:$0xf] }
 0x571   : > { %3696 = vmatpush.bf16.msra.mxu0 %v6466_v25  ;;  %v3595_v25 = vpack.c.b16 %v3543_v10, %v3543_v10  ;;  %v6389_v10 = vld [vmem:[%s10839_s4 + $0x4f8] sm:$0xf] }
 0x572   : > { %v3225_v35 = vpack.c.bf16 %v7379_v18, %v7378_v34  ;;  %v6383_v18 = vld [vmem:[%s10839_s4 + $0x500] sm:$0xf0] }
 0x573   : > { %v6386_v34 = vor.u32 %v6945_v39, %v6383_v18  ;;  %v3650_v9 = vsel %vm1271_vm3, %v3595_v25, 0  ;;  %v6495_v39 = vld [vmem:[%s10839_s4 + $0x5e0] sm:$0xf0]  ;;  %v6948_v18 = vld [vmem:[%s10839_s4 + $0x504] sm:$0xf0] }
 0x574   : > { %3269 = vmatpush.bf16.msrb.mxu1 %v3225_v35  ;;  %v6438_v35 = vor.u32 %v6960_v49, %v6437_v59  ;;  %v6455_v25 = vld [vmem:[%s10839_s4 + $0x588] sm:$0xf0]  ;;  %v6390_v59 = vor.u32 %v6948_v18, %v6389_v10 }
 0x575   : > { %3697 = vmatpush.bf16.msra.mxu0 %v6450_v55  ;;  %v6370_v55 = vor.u32 %v6941_v20, %v6367_v17  ;;  %v6969_v20 = vld [vmem:[%s10839_s4 + $0x5b4] sm:$0xf]  ;;  %v6479_v17 = vld [vmem:[%s10839_s4 + $0x5c0] sm:$0xf0]  ;;  %v6535_v18 = vld [vmem:[%s10839_s4 + $0x628] sm:$0xf0] }
 0x577   : > { %v7392_v36 = vpop.permute.xlu1 %7391 }
 0x578   : > { %v7394_v3 = vunpack.i.h.bf16 %v7392_v36  ;;  %v7393_v63 = vunpack.i.l.bf16 %v7392_v36  ;;  %3270 = vmatpush.bf16.msrb.mxu1 %v3224_v26  ;;  %v6421_v26 = vld [vmem:[%s10839_s4 + $0x538] sm:$0xf]  ;;  %v6956_v36 = vld [vmem:[%s10839_s4 + $0x544] sm:$0xf0] }
 0x579   : > { %3698 = vmatpush.bf16.msra.mxu0 %v6434_v38  ;;  %v6530_v38 = vor.u32 %v6981_v30, %v6527_v61  ;;  %v6439_v30 = vld [vmem:[%s10839_s4 + $0x568] sm:$0xf0]  ;;  %v6482_v61 = vor.u32 %v6969_v20, %v6479_v17  ;;  %v6978_v20 = vld [vmem:[%s10839_s4 + $0x5fc] sm:$0xf] }
 0x57a   : > { %v3232_v5 = vpack.c.bf16 %v7394_v3, %v7393_v63  ;;  %v6937_v3 = vld [vmem:[%s10839_s4 + $0x4b4] sm:$0xf]  ;;  %v6351_v63 = vld [vmem:[%s10839_s4 + $0x4c0] sm:$0xf0]  ;;  %v6519_v17 = vld [vmem:[%s10839_s4 + $0x608] sm:$0xf0] }
 0x57b   : > { %3271 = vmatmul.bf16.vlgmr.msrb.gmra.mxu1 %v8583_v1  ;;  %v6354_v53 = vor.u32 %v6937_v3, %v6351_v63  ;;  %v6940_v3 = vld [vmem:[%s10839_s4 + $0x4c4] sm:$0xf0] }
 0x57c   : > { %3299 = vmatpush.bf16.msra.mxu2 %v3232_v5  ;;  %3718 = vmatpush.bf16.msra.mxu1 %v3650_v9  ;;  %v6422_v5 = vor.u32 %v6956_v36, %v6421_v26  ;;  %v6373_v9 = vld [vmem:[%s10839_s4 + $0x4d8] sm:$0xf] }
 0x57d   : > { %3699 = vmatpush.bf16.msra.mxu0 %v6418_v22  ;;  %v6511_v22 = vld [vmem:[%s10839_s4 + $0x600] sm:$0xf0]  ;;  %v6357_v36 = vld [vmem:[%s10839_s4 + $0x4b8] sm:$0xf] }
 0x57e   : > { %v6514_v62 = vor.u32 %v6977_v41, %v6511_v22  ;;  %v6358_v63 = vor.u32 %v6940_v3, %v6357_v36  ;;  %v6950_v22 = vld [vmem:[%s10839_s4 + $0x51c] sm:$0xf] }
 0x57f   : > { %6293 = vmatmul.msk.bf16.vlgmr.msra.gmra.mxu2 %vm1665_vm8, %v8575_v31 }
 0x580   : > { %3247 = vmatmul.bf16.gmra.mxu0 %v8630_v51  ;;  %3734 = vmatpush.bf16.msrb.mxu2 %v6470_v50  ;;  %v6952_v50 = vld [vmem:[%s10839_s4 + $0x524] sm:$0xf0] }
 0x581   : > { %3700 = vmatpush.bf16.msra.mxu0 %v6402_v6  ;;  %3719 = vmatpush.bf16.msra.mxu1 %v6530_v38  ;;  %v6406_v6 = vor.u32 %v6952_v50, %v6405_v33  ;;  %v6407_v33 = vld [vmem:[%s10839_s4 + $0x528] sm:$0xf0]  ;;  %v6946_v50 = vld [vmem:[%s10839_s4 + $0x4fc] sm:$0xf] }
 0x584   : > { %3735 = vmatpush.bf16.msrb.mxu2 %v6454_v57  ;;  %v6498_v57 = vor.u32 %v6973_v32, %v6495_v39  ;;  %v6942_v32 = vld [vmem:[%s10839_s4 + $0x4dc] sm:$0xf]  ;;  %v6375_v39 = vld [vmem:[%s10839_s4 + $0x4e8] sm:$0xf0] }
 0x585   : > { %3701 = vmatpush.bf16.msra.mxu0 %v6386_v34  ;;  %3720 = vmatpush.bf16.msra.mxu1 %v6514_v62  ;;  %v6962_v34 = vld [vmem:[%s10839_s4 + $0x57c] sm:$0xf]  ;;  %v6410_v62 = vor.u32 %v6950_v22, %v6407_v33 }
 0x586   : > { %v6458_v49 = vor.u32 %v6962_v34, %v6455_v25  ;;  %v6538_v34 = vor.u32 %v6982_v40, %v6535_v18  ;;  %v6938_v25 = vld [vmem:[%s10839_s4 + $0x4bc] sm:$0xf] }
 0x588   : > { %3736 = vmatpush.bf16.msrb.mxu2 %v6438_v35  ;;  %v6944_v35 = vld [vmem:[%s10839_s4 + $0x4e4] sm:$0xf0] }
 0x589   : > { %3702 = vmatpush.bf16.msra.mxu0 %v6370_v55  ;;  %v6958_v55 = vld [vmem:[%s10839_s4 + $0x55c] sm:$0xf]  ;;  %3721 = vmatpush.bf16.msra.mxu1 %v6498_v57  ;;  %v6374_v26 = vor.u32 %v6944_v35, %v6373_v9  ;;  %v6378_v57 = vor.u32 %v6942_v32, %v6375_v39  ;;  %v6522_v9 = vor.u32 %v6978_v20, %v6519_v17 }
 0x58a   : > { %v6442_v38 = vor.u32 %v6958_v55, %v6439_v30  ;;  %v6974_v35 = vld [vmem:[%s10839_s4 + $0x5dc] sm:$0xf]  ;;  %v6503_v55 = vld [vmem:[%s10839_s4 + $0x5e8] sm:$0xf0] }
 0x58b   : > { %3276 = vmatmul.bf16.gmra.mxu1 %v8660_v2  ;;  %v6506_v30 = vor.u32 %v6974_v35, %v6503_v55 }
 0x58c   : > { %3737 = vmatpush.bf16.msrb.mxu2 %v6422_v5  ;;  %v6954_v5 = vld [vmem:[%s10839_s4 + $0x53c] sm:$0xf] }
 0x58d   : > { %3703 = vmatpush.bf16.msra.mxu0 %v6354_v53  ;;  %3722 = vmatpush.bf16.msra.mxu1 %v6482_v61  ;;  %v6423_v53 = vld [vmem:[%s10839_s4 + $0x548] sm:$0xf0]  ;;  %v6970_v61 = vld [vmem:[%s10839_s4 + $0x5bc] sm:$0xf] }
 0x58e   : > { %v6426_v41 = vor.u32 %v6954_v5, %v6423_v53 }
 0x58f   : > { %6294 = vmatmul.msk.bf16.gmra.mxu2 %vm1665_vm8, %v8648_v60 }
 0x590   : > { %3252 = vmatmul.bf16.gmra.mxu0 %v8720_v42  ;;  %3738 = vmatpush.bf16.msrb.mxu2 %v6406_v6  ;;  %v6394_v6 = vor.u32 %v6946_v50, %v6391_v48 }
 0x591   : > { %3772 = vmatpush.bf16.msrb.mxu0 %v6474_v21  ;;  %v3597_v21 = vpack.c.b16 %v3545_v14, %v3545_v14 }
 0x593   : > { %v3656_v10 = vsel %vm1271_vm3, %v3597_v21, 0 }
 0x594   : > { %3739 = vmatpush.bf16.msrb.mxu2 %v6390_v59  ;;  %3794 = vmatpush.bf16.msrb.mxu1 %v3656_v10  ;;  %v6359_v59 = vld [vmem:[%s10839_s4 + $0x4c8] sm:$0xf0] }
 0x595   : > { %3773 = vmatpush.bf16.msrb.mxu0 %v6458_v49  ;;  %v6362_v49 = vor.u32 %v6938_v25, %v6359_v59 }
 0x598   : > { %3740 = vmatpush.bf16.msrb.mxu2 %v6374_v26  ;;  %3795 = vmatpush.bf16.msrb.mxu1 %v6538_v34  ;;  %v6487_v26 = vld [vmem:[%s10839_s4 + $0x5c8] sm:$0xf0] }
 0x599   : > { %3774 = vmatpush.bf16.msrb.mxu0 %v6442_v38  ;;  %v6490_v38 = vor.u32 %v6970_v61, %v6487_v26 }
 0x59b   : > { %3281 = vmatmul.bf16.gmra.mxu1 %v8761_v11 }
 0x59c   : > { %3741 = vmatpush.bf16.msrb.mxu2 %v6358_v63  ;;  %3796 = vmatpush.bf16.msrb.mxu1 %v6522_v9 }
 0x59d   : > { %3775 = vmatpush.bf16.msrb.mxu0 %v6426_v41 }
 0x59f   : > { %6295 = vmatmul.msk.bf16.gmra.mxu2 %vm1665_vm8, %v8750_v56 }
 0x5a0   : > { %3257 = vmatmul.bf16.gmra.mxu0 %v8790_v52  ;;  %3797 = vmatpush.bf16.msrb.mxu1 %v6506_v30 }
 0x5a1   : > { %3776 = vmatpush.bf16.msrb.mxu0 %v6410_v62 }
 0x5a4   : > { %3798 = vmatpush.bf16.msrb.mxu1 %v6490_v38 }
 0x5a5   : > { %3777 = vmatpush.bf16.msrb.mxu0 %v6394_v6 }
 0x5a9   : > { %3778 = vmatpush.bf16.msrb.mxu0 %v6378_v57  ;;  %v9796_v57 = vpop.f32.mrf.mxu3 }
 0x5ab   : > { %3286 = vmatmul.bf16.gmra.mxu1 %v8814_v29 }
 0x5ad   : > { %3779 = vmatpush.bf16.msrb.mxu0 %v6362_v49 }
 0x5af   : > { %6296 = vmatmul.msk.bf16.gmra.mxu2 %vm1665_vm8, %v8805_v27 }
 0x5b0   : > { %3704 = vmatmul.bf16.vlgmr.msra.gmra.mxu0 %v8235_v28 }
 0x5b1   : > { %v3691_v59 = vpop.f32.mrf.mxu3 }
 0x5b9   : > { %v3693_v55 = vpop.f32.mrf.mxu3 }
 0x5bb   : > { %6541 = vmatmul.msk.bf16.vlgmr.msra.gmra.mxu1 %vm1264_vm4, %v8306_v37 }
 0x5bf   : > { %3742 = vmatmul.bf16.vlgmr.msrb.gmra.mxu2 %v8235_v28 }
 0x5c0   : > { %3709 = vmatmul.bf16.gmra.mxu0 %v8325_v45 }
 0x5cb   : > { %6542 = vmatmul.msk.bf16.gmra.mxu1 %vm1264_vm4, %v8358_v47 }
 0x5cf   : > { %3747 = vmatmul.bf16.gmra.mxu2 %v8325_v45 }
 0x5d0   : > { %3780 = vmatmul.bf16.vlgmr.msrb.gmra.mxu0 %v8235_v28 }
 0x5db   : > { %6545 = vmatmul.msk.bf16.vlgmr.msrb.gmra.mxu1 %vm1264_vm4, %v8306_v37 }
 0x5e0   : > { %3785 = vmatmul.bf16.gmra.mxu0 %v8325_v45 }
 0x5eb   : > { %6546 = vmatmul.msk.bf16.gmra.mxu1 %vm1264_vm4, %v8358_v47 }
 0x5ed   : > { %v3243_v36 = vpop.f32.mrf.mxu0 }
 0x5f5   : > { %v9778_v3 = vpop.f32.mrf.mxu0 }
 0x5f8   : > { %v3272_v63 = vpop.f32.mrf.mxu1 }
 0x5f9   : > { %v3273_v5 = vadd.f32 %v3272_v63, %v3243_v36  ;;  %v3762_v63 = vpop.f32.mrf.mxu3 }
 0x5fd   : > { %v3248_v53 = vpop.f32.mrf.mxu0 }
 0x600   : > { %v9780_v41 = vpop.f32.mrf.mxu1 }
 0x602   : > { %v3301_v22 = vpop.f32.mrf.mxu2 }
 0x603   : > { %v9782_v33 = vadd.f32 %v3301_v22, %v3273_v5 }
 0x605   : > { %v9784_v28 = vpop.f32.mrf.mxu0 }
 0x606   : > { %10916 = vst [vmem:[#allocation24_spill] sm:$0xff] %v9784_v28 }
 0x608   : > { %v3277_v62 = vpop.f32.mrf.mxu1 }
 0x609   : > { %v3278_v37 = vadd.f32 %v3277_v62, %v3248_v53  ;;  %v3764_v62 = vpop.f32.mrf.mxu3 }
 0x60a   : > { %v9786_v50 = vpop.f32.mrf.mxu2 }
 0x60d   : > { %v3253_v45 = vpop.f32.mrf.mxu0 }
 0x610   : > { %v9788_v48 = vpop.f32.mrf.mxu1 }
 0x611   : > { %10917 = vst [vmem:[#allocation25_spill] sm:$0xff] %v9788_v48 }
 0x612   : > { %v3306_v47 = vpop.f32.mrf.mxu2 }
 0x613   : > { %v9790_v14 = vadd.f32 %v3306_v47, %v3278_v37  ;;  %v9813_v47 = vadd.f32 %v3691_v59, %v9524_v58 }
 0x615   : > { %v9792_v6 = vpop.f32.mrf.mxu0 }
 0x616   : > { %10918 = vst [vmem:[#allocation26_spill] sm:$0xff] %v9792_v6 }
 0x618   : > { %v3282_v21 = vpop.f32.mrf.mxu1 }
 0x619   : > { %v3283_v32 = vadd.f32 %v3282_v21, %v3253_v45 }
 0x61a   : > { %v9794_v39 = vpop.f32.mrf.mxu2 }
 0x61b   : > { %10919 = vst [vmem:[#allocation27_spill] sm:$0xff] %v9794_v39 }
 0x61d   : > { %v3258_v10 = vpop.f32.mrf.mxu0 }
 0x620   : > { %v9798_v40 = vpop.f32.mrf.mxu1 }
 0x621   : > { %10920 = vst [vmem:[#allocation28_spill] sm:$0xff] %v9798_v40 }
 0x622   : > { %v3311_v18 = vpop.f32.mrf.mxu2 }
 0x623   : > { %v9800_v34 = vadd.f32 %v3311_v18, %v3283_v32  ;;  %v3767_v18 = vpop.f32.mrf.mxu3 }
 0x625   : > { %v9802_v25 = vpop.f32.mrf.mxu0 }
 0x626   : > { %10921 = vst [vmem:[#allocation29_spill] sm:$0xff] %v9802_v25 }
 0x628   : > { %v3287_v49 = vpop.f32.mrf.mxu1 }
 0x629   : > { %v3288_v20 = vadd.f32 %v3287_v49, %v3258_v10 }
 0x62a   : > { %v9804_v17 = vpop.f32.mrf.mxu2 }
 0x62b   : > { %10922 = vst [vmem:[#allocation30_spill] sm:$0xff] %v9804_v17 }
 0x62d   : > { %v3705_v9 = vpop.f32.mrf.mxu0 }
 0x630   : > { %v9806_v35 = vpop.f32.mrf.mxu1 }
 0x631   : > { %10923 = vst [vmem:[#allocation31_spill] sm:$0xff] %v9806_v35 }
 0x632   : > { %v3316_v30 = vpop.f32.mrf.mxu2 }
 0x633   : > { %v9808_v61 = vadd.f32 %v3316_v30, %v3288_v20  ;;  %v9818_v20 = vadd.f32 %v3693_v55, %v9529_v46 }
 0x635   : > { %v3707_v26 = vpop.f32.mrf.mxu0 }
 0x638   : > { %v3724_v38 = vpop.f32.mrf.mxu1 }
 0x639   : > { %v3725_v28 = vadd.f32 %v3724_v38, %v3705_v9 }
 0x63a   : > { %v9810_v36 = vpop.f32.mrf.mxu2 }
 0x63b   : > { %10924 = vst [vmem:[#allocation32_spill] sm:$0xff] %v9810_v36  ;;  %v7435_v9 = vpack.i.bf16 %v3725_v28, %v9534_v12 }
 0x63d   : > { %v3710_v5 = vpop.f32.mrf.mxu0 }
 0x640   : > { %v3726_v53 = vpop.f32.mrf.mxu1 }
 0x642   : > { %v3743_v22 = vpop.f32.mrf.mxu2 }
 0x643   : > { %v3763_v59 = vadd.f32 %v3762_v63, %v3743_v22 }
 0x645   : > { %v3712_v37 = vpop.f32.mrf.mxu0 }
 0x648   : > { %v3729_v45 = vpop.f32.mrf.mxu1 }
 0x649   : > { %v3730_v21 = vadd.f32 %v3729_v45, %v3710_v5  ;;  %v3769_v45 = vpop.f32.mrf.mxu3 }
 0x64a   : > { %v3745_v32 = vpop.f32.mrf.mxu2 }
 0x64b   : > { %v7405_v10 = vpack.i.bf16 %v3730_v21, %v9813_v47 }
 0x64d   : > { %7406 = vrot.lane.b32.xlu2 %v7405_v10, %s10915_s26  ;;  %v3781_v36 = vpop.f32.mrf.mxu0 }
 0x650   : > { %v3731_v49 = vpop.f32.mrf.mxu1 }
 0x651   : > { %v3732_v30 = vadd.f32 %v3731_v49, %v3712_v37  ;;  %v3727_v37 = vadd.f32 %v3726_v53, %v3707_v26  ;;  %v3765_v49 = vadd.f32 %v3764_v62, %v3745_v32  ;;  %v9834_v62 = vadd.f32 %v9796_v57, %v9519_v44 }
 0x652   : > { %v3748_v35 = vpop.f32.mrf.mxu2 }
 0x653   : > { %v7415_v25 = vpack.i.bf16 %v3732_v30, %v9818_v20  ;;  %v3768_v40 = vadd.f32 %v3767_v18, %v3748_v35  ;;  %v7450_v38 = vpack.i.bf16 %v3765_v49, %v3763_v59  ;;  %v7480_v44 = vpack.i.bf16 %v9834_v62, %v9534_v12 }
 0x654   : > { %v7475_v57 = vpack.i.bf16 %v3765_v49, %v3727_v37 }
 0x655   : > { %7416 = vrot.lane.b32.xlu0 %v7415_v25, %s10915_s26  ;;  %v3783_v39 = vpop.f32.mrf.mxu0  ;;  %v7455_v32 = vpack.i.bf16 %v3768_v40, %v3730_v21 }
 0x658   : > { %v3800_v58 = vpop.f32.mrf.mxu1 }
 0x659   : > { %v3801_v5 = vadd.f32 %v3800_v58, %v3781_v36  ;;  %v7400_v36 = vpack.i.bf16 %v3727_v37, %v3725_v28  ;;  %v7445_v58 = vpack.i.bf16 %v3727_v37, %v9834_v62  ;;  %v959_v37 = vld [vmem:[%s10842_s7 + $0x18] sm:$0xff] }
 0x65a   : > { %v3750_v17 = vpop.f32.mrf.mxu2 }
 0x65b   : > { %v7420_v6 = vpack.i.bf16 %v3801_v5, %v3763_v59  ;;  %v3770_v10 = vadd.f32 %v3769_v45, %v3750_v17  ;;  %v7465_v45 = vpack.i.bf16 %v9818_v20, %v9813_v47 }
 0x65d   : > { %7421 = vrot.lane.b32.xlu2 %v7420_v6, %s10898_s18  ;;  %v7395_v46 = vpack.i.bf16 %v3770_v10, %v3768_v40  ;;  %v3786_v63 = vpop.f32.mrf.mxu0  ;;  %v7410_v6 = vpack.i.bf16 %v3732_v30, %v3730_v21 }
 0x65f   : > { %7396 = vrot.lane.b32.xlu1 %v7395_v46, %s10897_s30  ;;  %v7470_v46 = vpack.i.bf16 %v3763_v59, %v3725_v28  ;;  %v949_v28 = vld [vmem:[%s10841_s6 + $0x8] sm:$0xff]  ;;  %v948_v59 = vld [vmem:[%s10841_s6] sm:$0xff] }
 0x660   : > { %v3802_v55 = vpop.f32.mrf.mxu1 }
 0x661   : > { %v3803_v48 = vadd.f32 %v3802_v55, %v3783_v39  ;;  %v7460_v55 = vpack.i.bf16 %v3770_v10, %v3732_v30  ;;  %v956_v30 = vld [vmem:[%s10842_s7] sm:$0xff] }
 0x663   : > { %v7425_v25 = vpack.i.bf16 %v3803_v48, %v3765_v49  ;;  %v7500_v21 = vpack.i.bf16 %v3803_v48, %v3801_v5  ;;  %v950_v48 = vld [vmem:[%s10841_s6 + $0x10] sm:$0xff]  ;;  %v951_v5 = vld [vmem:[%s10841_s6 + $0x18] sm:$0xff]  ;;  %v952_v49 = vld [vmem:[%s10841_s6 + $0x20] sm:$0xff] }
 0x665   : > { %7426 = vrot.lane.b32.xlu0 %v7425_v25, %s10898_s18  ;;  %v3788_v18 = vpop.f32.mrf.mxu0  ;;  %v958_v25 = vld [vmem:[%s10842_s7 + $0x10] sm:$0xff] }
 0x667   : > { %7401 = vrot.lane.b32.xlu1 %v7400_v36, %s10899_s19 }
 0x668   : > { %v3805_v35 = vpop.f32.mrf.mxu1 }
 0x669   : > { %v3806_v17 = vadd.f32 %v3805_v35, %v3786_v63  ;;  %v961_v63 = vld [vmem:[%s10842_s7 + $0x28] sm:$0xff] }
 0x66a   : > { %v953_v35 = vld [vmem:[%s10841_s6 + $0x28] sm:$0xff] }
 0x66b   : > { %v7430_v22 = vpack.i.bf16 %v3806_v17, %v3768_v40 }
 0x66d   : > { %7431 = vrot.lane.b32.xlu2 %v7430_v22, %s10898_s18  ;;  %v962_v22 = vld [vmem:[%s10842_s7 + $0x30] sm:$0xff] }
 0x66f   : > { %7411 = vrot.lane.b32.xlu1 %v7410_v6, %s10899_s19  ;;  %s7707_s19 = smov 56  }
 0x670   : > { %v3807_v26 = vpop.f32.mrf.mxu1 }
 0x671   : > { %v3808_v53 = vadd.f32 %v3807_v26, %v3788_v18  ;;  %v963_v26 = vld [vmem:[%s10842_s7 + $0x38] sm:$0xff] }
 0x673   : > { %v7440_v39 = vpack.i.bf16 %v3808_v53, %v3770_v10  ;;  %v7495_v40 = vpack.i.bf16 %v3808_v53, %v3806_v17  ;;  %v957_v10 = vld [vmem:[%s10842_s7 + $0x8] sm:$0xff]  ;;  %v955_v17 = vld [vmem:[%s10841_s6 + $0x38] sm:$0xff] }
 0x675   : > { %7436 = vrot.lane.b32.xlu2 %v7435_v9, %s10915_s26  ;;  %7441 = vrot.lane.b32.xlu0 %v7440_v39, %s10898_s18  ;;  %s7706_s18 = smov 53  }
 0x677   : > { %7451 = vrot.lane.b32.xlu1 %v7450_v38, %s10897_s30  ;;  %s7705_s30 = smov 3  }
 0x67d   : > { %7456 = vrot.lane.b32.xlu2 %v7455_v32, %s10901_s21  ;;  %7446 = vrot.lane.b32.xlu0 %v7445_v58, %s10915_s26  ;;  %s7709_s26 = smov 28  }
 0x67f   : > { %7466 = vrot.lane.b32.xlu1 %v7465_v45, %s10900_s20 }
 0x685   : > { %7471 = vrot.lane.b32.xlu2 %v7470_v46, %s10901_s21  ;;  %7461 = vrot.lane.b32.xlu0 %v7460_v55, %s10901_s21 }
 0x687   : > { %7481 = vrot.lane.b32.xlu1 %v7480_v44, %s10900_s20  ;;  %s7708_s20 = smov 78  }
 0x68d   : > { %7486 = vrot.lane.b32.xlu2 %v7410_v6, %s10903_s23  ;;  %7476 = vrot.lane.b32.xlu0 %v7475_v57, %s10901_s21  ;;  %v954_v6 = vld [vmem:[%s10841_s6 + $0x30] sm:$0xff] }
 0x68f   : > { %7496 = vrot.lane.b32.xlu1 %v7495_v40, %s10902_s1 }
 0x695   : > { %7501 = vrot.lane.b32.xlu2 %v7500_v21, %s10902_s1  ;;  %7491 = vrot.lane.b32.xlu0 %v7400_v36, %s10903_s23  ;;  %v960_v36 = vld [vmem:[%s10842_s7 + $0x20] sm:$0xff] }
 0x697   : > { %1772 = vperm.xlu1 %7063, %v949_v28  }
 0x69d   : > { %1815 = vperm.xlu2 %7064, %v956_v30   ;;  %1767 = vperm.xlu0 %7062, %v948_v59  }
 0x69f   : > { %1777 = vperm.xlu1 %7063, %v950_v48  }
 0x6a5   : > { %1782 = vperm.xlu2 %7064, %v951_v5   ;;  %1820 = vperm.xlu0 %7062, %v957_v10  }
 0x6a7   : > { %1830 = vperm.xlu1 %7063, %v959_v37   ;;  %v7407_v18 = vpop.permute.xlu2 %7406 }
 0x6a8   : > { %v7409_v10 = vunpack.i.h.bf16 %v7407_v18  ;;  %v7408_v37 = vunpack.i.l.bf16 %v7407_v18 }
 0x6aa   : > { %v3848_v18 = vsel %vm1472_vm5, %v7408_v37, %v7409_v10 }
 0x6ad   : > { %1787 = vperm.xlu2 %7064, %v952_v49   ;;  %1825 = vperm.xlu0 %7062, %v958_v25  }
 0x6af   : > { %1835 = vperm.xlu1 %7063, %v960_v36  }
 0x6b5   : > { %1840 = vperm.xlu2 %7064, %v961_v63   ;;  %1792 = vperm.xlu0 %7062, %v953_v35  }
 0x6b7   : > { %1802 = vperm.xlu1 %7063, %v955_v17   ;;  %v7422_v53 = vpop.permute.xlu2 %7421 }
 0x6bd   : > { %1845 = vperm.xlu2 %7064, %v962_v22   ;;  %1797 = vperm.xlu0 %7062, %v954_v6   ;;  %v7424_v22 = vunpack.i.h.bf16 %v7422_v53  ;;  %v7423_v6 = vunpack.i.l.bf16 %v7422_v53 }
 0x6c5   : > { %1850 = vperm.xlu0 %7062, %v963_v26  }
 0x6c7   : > { %v7432_v39 = vpop.permute.xlu2 %7431  ;;  %v7417_v32 = vpop.permute.xlu0 %7416 }
 0x6c8   : > { %v7419_v30 = vunpack.i.h.bf16 %v7417_v32  ;;  %v7418_v59 = vunpack.i.l.bf16 %v7417_v32  ;;  %v7434_v48 = vunpack.i.h.bf16 %v7432_v39  ;;  %v7433_v5 = vunpack.i.l.bf16 %v7432_v39 }
 0x6cf   : > { %v7437_v38 = vpop.permute.xlu2 %7436 }
 0x6d0   : > { %v7438_v53 = vunpack.i.l.bf16 %v7437_v38 }
 0x6d1   : > { %v7397_v9 = vpop.permute.xlu1 %7396 }
 0x6d7   : > { %v7427_v45 = vpop.permute.xlu0 %7426  ;;  %v9900_v46 = vpop.permute.xlu2 %7456 }
 0x6d8   : > { %v7429_v49 = vunpack.i.h.bf16 %v7427_v45  ;;  %v7428_v36 = vunpack.i.l.bf16 %v7427_v45 }
 0x6d9   : > { %v7402_v58 = vpop.permute.xlu1 %7401 }
 0x6da   : > { %v7404_v40 = vunpack.i.h.bf16 %v7402_v58  ;;  %v7403_v21 = vunpack.i.l.bf16 %v7402_v58  ;;  %v3940_v58 = vsel %vm1566_vm6, %v7433_v5, %v7434_v48  ;;  %v3939_v45 = vsel %vm1566_vm6, %v7428_v36, %v7429_v49 }
 0x6dc   : > { %v3964_v63 = vpack.c.bf16 %v7404_v40, %v7403_v21  ;;  %v3938_v40 = vsel %vm1566_vm6, %v7423_v6, %v7424_v22  ;;  %v7439_v21 = vunpack.i.h.bf16 %v7437_v38 }
 0x6de   : > { %v3846_v10 = vsel %vm1472_vm5, %v7438_v53, %v7439_v21 }
 0x6e1   : > { %v7412_v55 = vpop.permute.xlu1 %7411 }
 0x6e2   : > { %v7414_v44 = vunpack.i.h.bf16 %v7412_v55  ;;  %v7413_v57 = vunpack.i.l.bf16 %v7412_v55  ;;  %v3849_v55 = vsel %vm1472_vm5, %v7418_v59, %v7419_v30  ;;  %v3972_v59 = vpack.c.bf16 %v3939_v45, %v3938_v40 }
 0x6e4   : > { %v3965_v28 = vpack.c.bf16 %v7414_v44, %v7413_v57  ;;  %v7472_v44 = vpop.permute.xlu2 %7471  ;;  %v3963_v57 = vpack.c.bf16 %v3849_v55, %v3848_v18  ;;  %v7458_v55 = vunpack.i.l.bf16 %v9900_v46 }
 0x6e6   : > { %3976 = vmatpush.bf16.msra.mxu2 %v3965_v28  ;;  %v7399_v28 = vunpack.i.h.bf16 %v7397_v9 }
 0x6e7   : > { %v7442_v25 = vpop.permute.xlu0 %7441 }
 0x6e8   : > { %v7444_v35 = vunpack.i.h.bf16 %v7442_v25  ;;  %v7443_v17 = vunpack.i.l.bf16 %v7442_v25  ;;  %v7398_v25 = vunpack.i.l.bf16 %v7397_v9  ;;  %v7459_v9 = vunpack.i.h.bf16 %v9900_v46 }
 0x6e9   : > { %v7452_v26 = vpop.permute.xlu1 %7451  ;;  %v7474_v46 = vunpack.i.h.bf16 %v7472_v44 }
 0x6ea   : > { %v3941_v32 = vsel %vm1566_vm6, %v7443_v17, %v7444_v35  ;;  %3977 = vmatpush.bf16.msra.mxu2 %v3964_v63  ;;  %v3971_v35 = vpack.c.bf16 %v7399_v28, %v7398_v25  ;;  %v7454_v17 = vunpack.i.h.bf16 %v7452_v26  ;;  %v7453_v49 = vunpack.i.l.bf16 %v7452_v26 }
 0x6eb   : > { %v3973_v39 = vpack.c.bf16 %v3941_v32, %v3940_v58  ;;  %v3900_v21 = vsel %vm1525_vm7, %v7458_v55, %v7459_v9 }
 0x6ec   : > { %v7487_v38 = vpop.permute.xlu2 %7486  ;;  %v3970_v58 = vpack.c.bf16 %v7454_v17, %v7453_v49 }
 0x6ed   : > { %4005 = vmatpush.bf16.msra.mxu3 %v3973_v39  ;;  %v7488_v9 = vunpack.i.l.bf16 %v7487_v38 }
 0x6ee   : > { %3978 = vmatpush.bf16.msra.mxu2 %v3963_v57 }
 0x6ef   : > { %v7447_v30 = vpop.permute.xlu0 %7446 }
 0x6f0   : > { %v7449_v48 = vunpack.i.h.bf16 %v7447_v30  ;;  %v7448_v5 = vunpack.i.l.bf16 %v7447_v30 }
 0x6f1   : > { %4006 = vmatpush.bf16.msra.mxu3 %v3972_v59  ;;  %v7467_v63 = vpop.permute.xlu1 %7466  ;;  %v7473_v59 = vunpack.i.l.bf16 %v7472_v44 }
 0x6f2   : > { %v3847_v37 = vsel %vm1472_vm5, %v7448_v5, %v7449_v48  ;;  %v7469_v36 = vunpack.i.h.bf16 %v7467_v63  ;;  %v7468_v22 = vunpack.i.l.bf16 %v7467_v63  ;;  %v3959_v63 = vpack.c.bf16 %v9818_v20, %v9813_v47 }
 0x6f3   : > { %v3962_v6 = vpack.c.bf16 %v3847_v37, %v3846_v10  ;;  %v3898_v49 = vsel %vm1525_vm7, %v7473_v59, %v7474_v46 }
 0x6f4   : > { %v3961_v32 = vpack.c.bf16 %v7469_v36, %v7468_v22  ;;  %v7502_v30 = vpop.permute.xlu2 %7501  ;;  %v3958_v22 = vpack.c.bf16 %v9834_v62, %v9534_v12  ;;  %v1719_v62 = vadd.f32 %v8960_v8, %v8955_v0  ;;  %v2538_v8 = vadd.f32 %v9442_v43, %v9422_v16 }
 0x6f5   : > { %3979 = vmatpush.bf16.msra.mxu2 %v3962_v6  ;;  %4007 = vmatpush.bf16.msra.mxu3 %v3971_v35  ;;  %v7489_v6 = vunpack.i.h.bf16 %v7487_v38 }
 0x6f7   : > { %v7462_v39 = vpop.permute.xlu0 %7461  ;;  %v3967_v20 = vpack.c.bf16 %v7489_v6, %v7488_v9  ;;  %v10928_v6 = vld [vmem:[#allocation3_spill] sm:$0xff] }
 0x6f8   : > { %v7464_v18 = vunpack.i.h.bf16 %v7462_v39  ;;  %v7463_v57 = vunpack.i.l.bf16 %v7462_v39 }
 0x6f9   : > { %v7482_v45 = vpop.permute.xlu1 %7481  ;;  %3980 = vmatpush.bf16.msra.mxu2 %v3961_v32  ;;  %4008 = vmatpush.bf16.msra.mxu3 %v3970_v58  ;;  %v7504_v58 = vunpack.i.h.bf16 %v7502_v30  ;;  %v7503_v32 = vunpack.i.l.bf16 %v7502_v30  ;;  %v10927_v30 = vld [vmem:[#allocation14_spill] sm:$0xff] }
 0x6fa   : > { %v7484_v40 = vunpack.i.h.bf16 %v7482_v45  ;;  %v7483_v26 = vunpack.i.l.bf16 %v7482_v45  ;;  %v3901_v53 = vsel %vm1525_vm7, %v7463_v57, %v7464_v18  ;;  %v2567_v46 = vadd.f32 %v10927_v30, %v2538_v8 }
 0x6fb   : > { %v3969_v28 = vpack.c.bf16 %v3901_v53, %v3900_v21  ;;  %v3974_v57 = vpack.c.bf16 %v7504_v58, %v7503_v32 }
 0x6fc   : > { %v3960_v25 = vpack.c.bf16 %v7484_v40, %v7483_v26  ;;  %v9920_v39 = vpop.permute.xlu2 %1815  ;;  %v2533_v26 = vadd.f32 %v9412_v23, %v9400_v7 }
 0x6fd   : > { %4009 = vmatpush.bf16.msra.mxu3 %v3969_v28  ;;  %v10925_v28 = vld [vmem:[#allocation13_spill] sm:$0xff] }
 0x6fe   : > { %3981 = vmatpush.bf16.msra.mxu2 %v3960_v25 }
 0x6ff   : > { %v7477_v48 = vpop.permute.xlu0 %7476 }
 0x700   : > { %v7479_v5 = vunpack.i.h.bf16 %v7477_v48  ;;  %v7478_v35 = vunpack.i.l.bf16 %v7477_v48 }
 0x701   : > { %v7497_v17 = vpop.permute.xlu1 %7496 }
 0x702   : > { %v7499_v10 = vunpack.i.h.bf16 %v7497_v17  ;;  %v7498_v37 = vunpack.i.l.bf16 %v7497_v17  ;;  %3982 = vmatpush.bf16.msra.mxu2 %v3959_v63  ;;  %v3899_v36 = vsel %vm1525_vm7, %v7478_v35, %v7479_v5 }
 0x703   : > { %v3968_v55 = vpack.c.bf16 %v3899_v36, %v3898_v49 }
 0x704   : > { %v3975_v44 = vpack.c.bf16 %v7499_v10, %v7498_v37  ;;  %v9946_v7 = vpop.permute.xlu2 %1782 }
 0x705   : > { %4010 = vmatpush.bf16.msra.mxu3 %v3968_v55  ;;  %v10930_v55 = vld [vmem:[#allocation6_spill] sm:$0xff] }
 0x706   : > { %3983 = vmatpush.bf16.msra.mxu2 %v3958_v22  ;;  %4040 = vmatpush.bf16.msra.mxu0 %v3975_v44  ;;  %v10929_v44 = vld [vmem:[#allocation15_spill] sm:$0xff] }
 0x707   : > { %v7492_v47 = vpop.permute.xlu0 %7491 }
 0x708   : > { %v7494_v18 = vunpack.i.h.bf16 %v7492_v47  ;;  %v7493_v45 = vunpack.i.l.bf16 %v7492_v47  ;;  %v10931_v47 = vld [vmem:[#allocation18_spill] sm:$0xff] }
 0x709   : > { %v9922_v40 = vpop.permute.xlu1 %1772  ;;  %3984 = vmatmul.bf16.vlgmr.msra.gmra.mxu2 %v8557_v15  ;;  %4011 = vmatpush.bf16.msra.mxu3 %v3967_v20 }
 0x70a   : > { %v3966_v12 = vpack.c.bf16 %v7494_v18, %v7493_v45  ;;  %4041 = vmatpush.bf16.msra.mxu0 %v3974_v57 }
 0x70c   : > { %v9980_v36 = vpop.permute.xlu2 %1787 }
 0x70d   : > { %4012 = vmatpush.bf16.msra.mxu3 %v3966_v12  ;;  %6547 = vmatmul.msk.bf16.vlgmr.msra.gmra.mxu0 %vm1665_vm8, %v8575_v31  ;;  %v1724_v31 = vadd.f32 %v8988_v54, %v8971_v24  ;;  %v10926_v54 = vld [vmem:[#allocation4_spill] sm:$0xff]  ;;  %v1809_v58 = vmul.f32 %v9980_v36, %v10930_v55  ;;  %v2583_v20 = vmul.f32 %v10931_v47, %v9980_v36  ;;  %v6988_v47 = vld [vmem:[%s10843_s8 + $0x14] sm:$0xf0] }
 0x70e   : > { %v3325_v12 = vmul.f32 %v9800_v34, %v9980_v36 }
 0x70f   : > { %v9929_v38 = vpop.permute.xlu0 %1767 }
 0x710   : > { %v1805_v21 = vmul.f32 %v9929_v38, %v8958_v13  ;;  %v2579_v15 = vmul.f32 %v9404_v4, %v9929_v38  ;;  %v3321_v53 = vmul.f32 %v9782_v33, %v9929_v38  ;;  %4013 = vmatmul.bf16.vlgmr.msra.gmra.mxu3 %v8583_v1  ;;  %v1748_v4 = vadd.f32 %v8962_v19, %v1719_v62 }
 0x711   : > { %v9942_v0 = vpop.permute.xlu1 %1777  ;;  %v2562_v33 = vadd.f32 %v10925_v28, %v2533_v26  ;;  %v1753_v1 = vadd.f32 %v10926_v54, %v1724_v31  ;;  %v2582_v19 = vmul.f32 %v2567_v46, %v9946_v7  ;;  %v10933_v28 = vld [vmem:[#allocation22_spill] sm:$0xff] }
 0x712   : > { %v1853_v13 = vadd.f32 %v9920_v39, %v1805_v21  ;;  %v2587_v23 = vadd.f32 %v2579_v15, %v9920_v39  ;;  %v3329_v24 = vadd.f32 %v3321_v53, %v9920_v39  ;;  %v1806_v59 = vmul.f32 %v9922_v40, %v1748_v4 }
 0x713   : > { %v2580_v16 = vmul.f32 %v2562_v33, %v9922_v40  ;;  %v1808_v5 = vmul.f32 %v9946_v7, %v1753_v1  ;;  %v1807_v9 = vmul.f32 %v9942_v0, %v10928_v6  ;;  %v3323_v18 = vmul.f32 %v9790_v14, %v9942_v0 }
 0x714   : > { %v2595_v25 = vmax.f32 %v1853_v13, %v2587_v23  ;;  %v10013_v13 = vpop.permute.xlu2 %1840  ;;  %v10932_v23 = vld [vmem:[#allocation10_spill] sm:$0xff] }
 0x716   : > { %v9957_v43 = vmax.f32 %v2595_v25, %v3329_v24 }
 0x717   : > { %v9959_v48 = vpop.permute.xlu0 %1820 }
 0x718   : > { %v9964_v63 = vadd.f32 %v9959_v48, %v1806_v59  ;;  %v9967_v35 = vadd.f32 %v2580_v16, %v9959_v48  ;;  %v10934_v59 = vmov 0  }
 0x719   : > { %v9969_v17 = vpop.permute.xlu1 %1830  ;;  %3989 = vmatmul.bf16.gmra.mxu2 %v8630_v51  ;;  %v2581_v51 = vmul.f32 %v10929_v44, %v9942_v0  ;;  %v4148_v16 = vsel %vm4146_vm9, 65535, %v10934_v59 }
 0x71a   : > { %v2596_v10 = vmax.f32 %v9964_v63, %v9967_v35  ;;  %v9975_v37 = vadd.f32 %v9969_v17, %v1808_v5  ;;  %v9978_v49 = vadd.f32 %v2582_v19, %v9969_v17 }
 0x71c   : > { %v2598_v22 = vmax.f32 %v9975_v37, %v9978_v49  ;;  %v10028_v24 = vpop.permute.xlu2 %1845  ;;  %v10945_v37 = vld [vmem:[#allocation28_spill] sm:$0xff] }
 0x71d   : > { %6548 = vmatmul.msk.bf16.gmra.mxu0 %vm1665_vm8, %v8648_v60 }
 0x71f   : > { %v9992_v32 = vpop.permute.xlu0 %1825 }
 0x720   : > { %v1855_v57 = vadd.f32 %v9992_v32, %v1807_v9  ;;  %v2589_v45 = vadd.f32 %v2581_v51, %v9992_v32  ;;  %4018 = vmatmul.bf16.gmra.mxu3 %v8660_v2  ;;  %v3331_v26 = vadd.f32 %v3323_v18, %v9992_v32  ;;  %v6571_v51 = vld [vmem:[%s10843_s8 + $0x28] sm:$0xf0] }
 0x721   : > { %v10003_v60 = vpop.permute.xlu1 %1835 }
 0x722   : > { %v2597_v62 = vmax.f32 %v1855_v57, %v2589_v45  ;;  %v1857_v21 = vadd.f32 %v10003_v60, %v1809_v58  ;;  %v2591_v15 = vadd.f32 %v2583_v20, %v10003_v60  ;;  %v3333_v31 = vadd.f32 %v3325_v12, %v10003_v60  ;;  %v6561_v58 = vld [vmem:[%s10843_s8 + $0x10] sm:$0xf]  ;;  %v6987_v20 = vld [vmem:[%s10843_s8 + $0x14] sm:$0xf]  ;;  %v6563_v57 = vld [vmem:[%s10843_s8 + $0x18] sm:$0xf0] }
 0x723   : > { %v6562_v18 = vor.u32 %v6988_v47, %v6561_v58  ;;  %v6566_v45 = vor.u32 %v6987_v20, %v6563_v57  ;;  %v6553_v12 = vld [vmem:[%s10843_s8] sm:$0xf]  ;;  %v10938_v57 = vld [vmem:[#allocation5_spill] sm:$0xff] }
 0x724   : > { %v10008_v53 = vmax.f32 %v2597_v62, %v3331_v26  ;;  %v2599_v14 = vmax.f32 %v1857_v21, %v2591_v15  ;;  %v6986_v62 = vld [vmem:[%s10843_s8 + $0x4] sm:$0xf0]  ;;  %v6985_v26 = vld [vmem:[%s10843_s8 + $0x4] sm:$0xf]  ;;  %v6555_v15 = vld [vmem:[%s10843_s8 + $0x8] sm:$0xf0] }
 0x725   : > { %v6554_v21 = vor.u32 %v6986_v62, %v6553_v12 }
 0x726   : > { %v10011_v8 = vmax.f32 %v2599_v14, %v3333_v31  ;;  %v6558_v14 = vor.u32 %v6985_v26, %v6555_v15  ;;  %v10940_v26 = vld [vmem:[#allocation16_spill] sm:$0xff] }
 0x727   : > { %v10015_v34 = vpop.permute.xlu0 %1792 }
 0x729   : > { %3994 = vmatmul.bf16.gmra.mxu2 %v8720_v42 }
 0x72d   : > { %6549 = vmatmul.msk.bf16.gmra.mxu0 %vm1665_vm8, %v8750_v56 }
 0x72f   : > { %v10020_v2 = vpop.permute.xlu0 %1797 }
 0x730   : > { %v1811_v4 = vmul.f32 %v10020_v2, %v10932_v23  ;;  %v2585_v33 = vmul.f32 %v10933_v28, %v10020_v2  ;;  %v3327_v25 = vmul.f32 %v9808_v61, %v10020_v2  ;;  %4023 = vmatmul.bf16.gmra.mxu3 %v8761_v11  ;;  %v4097_v11 = vld [vmem:[%s10843_s8 + $0x30] sm:$0x11] }
 0x731   : > { %v4117_v61 = vunpack.c.l.b16 %v4097_v11  ;;  %v4118_v46 = vunpack.c.h.b16 %v4097_v11 }
 0x732   : > { %v1859_v42 = vadd.f32 %v10028_v24, %v1811_v4  ;;  %v2593_v54 = vadd.f32 %v2585_v33, %v10028_v24  ;;  %v3335_v1 = vadd.f32 %v3327_v25, %v10028_v24 }
 0x733   : > { %v4125_v5 = vpack.c.b16 %v4117_v61, %v4117_v61  ;;  %v4126_v19 = vpack.c.b16 %v4118_v46, %v4118_v46 }
 0x734   : > { %v2601_v56 = vmax.f32 %v1859_v42, %v2593_v54  ;;  %v3275_v54 = vadd.f32 %v9780_v41, %v9778_v3 }
 0x735   : > { %v4150_v6 = vand.u32 %v4148_v16, %v4125_v5  ;;  %v4153_v9 = vand.u32 %v4148_v16, %v4126_v19 }
 0x736   : > { %v10034_v30 = vmax.f32 %v2601_v56, %v3335_v1  ;;  %v3304_v61 = vadd.f32 %v9786_v50, %v3275_v54 }
 0x737   : > { %4159 = vmatpush.bf16.msra.mxu1 %v4150_v6  ;;  %4188 = vmatpush.bf16.msrb.mxu2 %v4153_v9 }
 0x738   : > { %v3322_v16 = vmul.f32 %v3304_v61, %v9922_v40 }
 0x739   : > { %3999 = vmatmul.bf16.gmra.mxu2 %v8790_v52  ;;  %v6569_v52 = vld [vmem:[%s10843_s8 + $0x20] sm:$0xf] }
 0x73a   : > { %v3330_v19 = vadd.f32 %v3322_v16, %v9959_v48  ;;  %v10946_v16 = vld [vmem:[#allocation30_spill] sm:$0xff] }
 0x73c   : > { %v3338_v3 = vmax.f32 %v2596_v10, %v3330_v19  ;;  %v10937_v10 = vld [vmem:[#allocation27_spill] sm:$0xff] }
 0x73d   : > { %6550 = vmatmul.msk.bf16.gmra.mxu0 %vm1665_vm8, %v8805_v27  ;;  %v6990_v27 = vld [vmem:[%s10843_s8 + $0x24] sm:$0xf0] }
 0x73e   : > { %v6570_v44 = vor.u32 %v6990_v27, %v6569_v52 }
 0x740   : > { %4028 = vmatmul.bf16.gmra.mxu3 %v8814_v29  ;;  %v6989_v29 = vld [vmem:[%s10843_s8 + $0x24] sm:$0xf]  ;;  %4160 = vmatpush.bf16.msra.mxu1 %v6570_v44 }
 0x741   : > { %v6574_v55 = vor.u32 %v6989_v29, %v6571_v51 }
 0x743   : > { %4189 = vmatpush.bf16.msrb.mxu2 %v6574_v55 }
 0x744   : > { %4161 = vmatpush.bf16.msra.mxu1 %v6562_v18 }
 0x747   : > { %4190 = vmatpush.bf16.msrb.mxu2 %v6566_v45  ;;  %v10939_v45 = vld [vmem:[#allocation7_spill] sm:$0xff] }
 0x748   : > { %4162 = vmatpush.bf16.msra.mxu1 %v6554_v21  ;;  %v1729_v12 = vadd.f32 %v10939_v45, %v10938_v57  ;;  %v10941_v21 = vld [vmem:[#allocation19_spill] sm:$0xff] }
 0x749   : > { %v2543_v15 = vadd.f32 %v10941_v21, %v10940_v26 }
 0x74b   : > { %4191 = vmatpush.bf16.msrb.mxu2 %v6558_v14 }
 0x78a   : > { %v4043_v31 = vpop.f32.mrf.mxu0 }
 0x78c   : > { %v3985_v23 = vpop.f32.mrf.mxu2 }
 0x792   : > { %v4045_v4 = vpop.f32.mrf.mxu0 }
 0x793   : > { %v4014_v28 = vpop.f32.mrf.mxu3 }
 0x794   : > { %v3987_v33 = vpop.f32.mrf.mxu2  ;;  %v4015_v25 = vadd.f32 %v4014_v28, %v3985_v23  ;;  %v10942_v28 = vld [vmem:[#allocation8_spill] sm:$0xff] }
 0x796   : > { %v4044_v42 = vadd.f32 %v4043_v31, %v4015_v25 }
 0x798   : > { %v4063_v46 = vmul.f32 %v4044_v42, %v9929_v38  ;;  %v10943_v42 = vld [vmem:[#allocation17_spill] sm:$0xff] }
 0x799   : > { %v2572_v54 = vadd.f32 %v10943_v42, %v2543_v15 }
 0x79a   : > { %v4048_v56 = vpop.f32.mrf.mxu0  ;;  %v4071_v6 = vadd.f32 %v4063_v46, %v9920_v39  ;;  %v10935_v39 = vld [vmem:[#allocation24_spill] sm:$0xff] }
 0x79b   : > { %v4016_v1 = vpop.f32.mrf.mxu3 }
 0x79c   : > { %v3990_v11 = vpop.f32.mrf.mxu2  ;;  %v4017_v59 = vadd.f32 %v4016_v1, %v3987_v33  ;;  %v4079_v38 = vmax.f32 %v9957_v43, %v4071_v6  ;;  %v1758_v33 = vadd.f32 %v10942_v28, %v1729_v12  ;;  %v10955_v28 = vld [vmem:[#allocation32_spill] sm:$0xff] }
 0x79e   : > { %v4046_v5 = vadd.f32 %v4045_v4, %v4017_v59  ;;  %v1810_v61 = vmul.f32 %v10015_v34, %v1758_v33  ;;  %v10944_v59 = vld [vmem:[#allocation26_spill] sm:$0xff] }
 0x79f   : > { %v3285_v49 = vadd.f32 %v10945_v37, %v10944_v59 }
 0x7a0   : > { %v4064_v9 = vmul.f32 %v4046_v5, %v9922_v40  ;;  %v10936_v40 = vld [vmem:[#allocation25_spill] sm:$0xff] }
 0x7a1   : > { %v3280_v63 = vadd.f32 %v10936_v40, %v10935_v39  ;;  %v3314_v5 = vadd.f32 %v10946_v16, %v3285_v49  ;;  %v10949_v40 = vld [vmem:[#allocation20_spill] sm:$0xff] }
 0x7a2   : > { %v4072_v41 = vadd.f32 %v4064_v9, %v9959_v48  ;;  %v4050_v44 = vpop.f32.mrf.mxu0 }
 0x7a3   : > { %v4019_v52 = vpop.f32.mrf.mxu3  ;;  %v3309_v48 = vadd.f32 %v10937_v10, %v3280_v63  ;;  %v3326_v9 = vmul.f32 %v3314_v5, %v10015_v34  ;;  %v10950_v63 = vld [vmem:[#allocation23_spill] sm:$0xff] }
 0x7a4   : > { %v3992_v50 = vpop.f32.mrf.mxu2  ;;  %v4080_v27 = vmax.f32 %v3338_v3, %v4072_v41  ;;  %v4020_v29 = vadd.f32 %v4019_v52, %v3990_v11 }
 0x7a5   : > { %v3324_v20 = vmul.f32 %v3309_v48, %v9946_v7 }
 0x7a6   : > { %v4087_v51 = vpack.c.bf16 %v4080_v27, %v4079_v38  ;;  %v4049_v55 = vadd.f32 %v4048_v56, %v4020_v29  ;;  %v3334_v38 = vadd.f32 %v3326_v9, %v10013_v13 }
 0x7a7   : > { %v3332_v14 = vadd.f32 %v3324_v20, %v9969_v17 }
 0x7a8   : > { %6575 = vmatmul.msk.bf16.vlgmr.msra.gmra.mxu1 %vm4133_vm10, %v4087_v51  ;;  %6579 = vmatmul.msk.bf16.vlgmr.msrb.gmra.mxu2 %vm4133_vm10, %v4087_v51  ;;  %v4065_v58 = vmul.f32 %v4049_v55, %v9942_v0  ;;  %v10947_v51 = vld [vmem:[#allocation9_spill] sm:$0xff]  ;;  %v10948_v55 = vld [vmem:[#allocation11_spill] sm:$0xff] }
 0x7a9   : > { %v3340_v0 = vmax.f32 %v2598_v22, %v3332_v14  ;;  %v1734_v39 = vadd.f32 %v10948_v55, %v10947_v51  ;;  %v10954_v14 = vld [vmem:[#allocation31_spill] sm:$0xff] }
 0x7aa   : > { %v4053_v62 = vpop.f32.mrf.mxu0  ;;  %v4073_v31 = vadd.f32 %v4065_v58, %v9992_v32  ;;  %v2584_v32 = vmul.f32 %v2572_v54, %v10015_v34 }
 0x7ab   : > { %v4021_v35 = vpop.f32.mrf.mxu3 }
 0x7ac   : > { %v4022_v47 = vadd.f32 %v4021_v35, %v3992_v50  ;;  %v3995_v43 = vpop.f32.mrf.mxu2  ;;  %v4081_v56 = vmax.f32 %v10008_v53, %v4073_v31  ;;  %v1858_v53 = vadd.f32 %v10013_v13, %v1810_v61  ;;  %v2592_v19 = vadd.f32 %v2584_v32, %v10013_v13 }
 0x7ad   : > { %v2548_v35 = vadd.f32 %v10950_v63, %v10949_v40 }
 0x7ae   : > { %v4051_v18 = vadd.f32 %v4050_v44, %v4022_v47  ;;  %v2600_v52 = vmax.f32 %v1858_v53, %v2592_v19 }
 0x7b0   : > { %v4066_v23 = vmul.f32 %v4051_v18, %v9946_v7  ;;  %v3342_v10 = vmax.f32 %v2600_v52, %v3334_v38  ;;  %v1803_v18 = vpop.permute.xlu1 %1802 }
 0x7b2   : > { %v4074_v4 = vadd.f32 %v4066_v23, %v9969_v17  ;;  %v4055_v17 = vpop.f32.mrf.mxu0 }
 0x7b3   : > { %v4024_v25 = vpop.f32.mrf.mxu3 }
 0x7b4   : > { %v4025_v1 = vadd.f32 %v4024_v25, %v3995_v43  ;;  %v4082_v11 = vmax.f32 %v3340_v0, %v4074_v4  ;;  %v3997_v46 = vpop.f32.mrf.mxu2 }
 0x7b6   : > { %v4088_v7 = vpack.c.bf16 %v4082_v11, %v4081_v56  ;;  %v4054_v22 = vadd.f32 %v4053_v62, %v4025_v1  ;;  %v1851_v62 = vpop.permute.xlu0 %1850 }
 0x7b8   : > { %6576 = vmatmul.msk.bf16.gmra.mxu1 %vm4133_vm10, %v4088_v7  ;;  %6580 = vmatmul.msk.bf16.gmra.mxu2 %vm4133_vm10, %v4088_v7  ;;  %v4067_v3 = vmul.f32 %v4054_v22, %v9980_v36 }
 0x7ba   : > { %v4075_v27 = vadd.f32 %v4067_v3, %v10003_v60  ;;  %v4058_v36 = vpop.f32.mrf.mxu0  ;;  %v10951_v60 = vld [vmem:[#allocation12_spill] sm:$0xff] }
 0x7bb   : > { %v4026_v6 = vpop.f32.mrf.mxu3  ;;  %v1763_v57 = vadd.f32 %v10951_v60, %v1734_v39 }
 0x7bc   : > { %v4027_v41 = vadd.f32 %v4026_v6, %v3997_v46  ;;  %v4000_v44 = vpop.f32.mrf.mxu2  ;;  %v4083_v47 = vmax.f32 %v10011_v8, %v4075_v27 }
 0x7bd   : > { %v1812_v26 = vmul.f32 %v1803_v18, %v1763_v57 }
 0x7be   : > { %v4056_v50 = vadd.f32 %v4055_v17, %v4027_v41 }
 0x7bf   : > { %v1860_v8 = vadd.f32 %v1851_v62, %v1812_v26  ;;  %v5013_v26 = vld [vmem:[%s10845_s10 + $0x68] sm:$0xff] }
 0x7c0   : > { %v4068_v29 = vmul.f32 %v4056_v50, %v10015_v34  ;;  %v10952_v34 = vld [vmem:[#allocation21_spill] sm:$0xff] }
 0x7c1   : > { %v2577_v45 = vadd.f32 %v10952_v34, %v2548_v35 }
 0x7c2   : > { %v4076_v48 = vadd.f32 %v4068_v29, %v10013_v13  ;;  %v10953_v13 = vld [vmem:[#allocation29_spill] sm:$0xff]  ;;  %v4060_v54 = vpop.f32.mrf.mxu0 }
 0x7c3   : > { %v4029_v58 = vpop.f32.mrf.mxu3  ;;  %v2586_v21 = vmul.f32 %v2577_v45, %v1803_v18  ;;  %v3290_v31 = vadd.f32 %v10954_v14, %v10953_v13  ;;  %v5126_v45 = vld [vmem:[%s10846_s11 + $0x70] sm:$0xff]  ;;  %v5125_v14 = vld [vmem:[%s10846_s11 + $0x68] sm:$0xff] }
 0x7c4   : > { %v4030_v43 = vadd.f32 %v4029_v58, %v4000_v44  ;;  %v4084_v20 = vmax.f32 %v3342_v10, %v4076_v48  ;;  %v4002_v0 = vpop.f32.mrf.mxu2  ;;  %v5010_v13 = vld [vmem:[%s10845_s10 + $0x50] sm:$0xff] }
 0x7c5   : > { %v2594_v23 = vadd.f32 %v2586_v21, %v1851_v62  ;;  %v3319_v33 = vadd.f32 %v10955_v28, %v3290_v31  ;;  %v5012_v21 = vld [vmem:[%s10845_s10 + $0x60] sm:$0xff]  ;;  %v5014_v31 = vld [vmem:[%s10845_s10 + $0x70] sm:$0xff]  ;;  %v5127_v28 = vld [vmem:[%s10846_s11 + $0x78] sm:$0xff] }
 0x7c6   : > { %v4089_v12 = vpack.c.bf16 %v4084_v20, %v4083_v47  ;;  %v4059_v15 = vadd.f32 %v4058_v36, %v4030_v43 }
 0x7c7   : > { %v3328_v56 = vmul.f32 %v3319_v33, %v1803_v18  ;;  %v2602_v1 = vmax.f32 %v1860_v8, %v2594_v23 }
 0x7c8   : > { %6577 = vmatmul.msk.bf16.gmra.mxu1 %vm4133_vm10, %v4089_v12  ;;  %6581 = vmatmul.msk.bf16.gmra.mxu2 %vm4133_vm10, %v4089_v12  ;;  %v4069_v25 = vmul.f32 %v4059_v15, %v10020_v2  ;;  %v5015_v12 = vld [vmem:[%s10845_s10 + $0x78] sm:$0xff] }
 0x7c9   : > { %v3336_v61 = vadd.f32 %v3328_v56, %v1851_v62  ;;  %v5124_v56 = vld [vmem:[%s10846_s11 + $0x60] sm:$0xff] }
 0x7ca   : > { %v4077_v32 = vadd.f32 %v4069_v25, %v10028_v24 }
 0x7cb   : > { %v4031_v4 = vpop.f32.mrf.mxu3  ;;  %v3344_v46 = vmax.f32 %v2602_v1, %v3336_v61 }
 0x7cc   : > { %v4032_v42 = vadd.f32 %v4031_v4, %v4002_v0  ;;  %v4085_v37 = vmax.f32 %v10034_v30, %v4077_v32  ;;  %v5123_v0 = vld [vmem:[%s10846_s11 + $0x58] sm:$0xff]  ;;  %v5122_v4 = vld [vmem:[%s10846_s11 + $0x50] sm:$0xff] }
 0x7ce   : > { %v4061_v11 = vadd.f32 %v4060_v54, %v4032_v42  ;;  %v5120_v42 = vld [vmem:[%s10846_s11 + $0x40] sm:$0xff]  ;;  %v5009_v54 = vld [vmem:[%s10845_s10 + $0x48] sm:$0xff] }
 0x7d0   : > { %v4070_v7 = vmul.f32 %v4061_v11, %v1803_v18 }
 0x7d2   : > { %v4078_v59 = vadd.f32 %v4070_v7, %v1851_v62 }
 0x7d4   : > { %v4086_v49 = vmax.f32 %v3344_v46, %v4078_v59  ;;  %v5007_v46 = vld [vmem:[%s10845_s10 + $0x38] sm:$0xff] }
 0x7d6   : > { %v4090_v22 = vpack.c.bf16 %v4086_v49, %v4085_v37 }
 0x7d8   : > { %6578 = vmatmul.msk.bf16.gmra.mxu1 %vm4133_vm10, %v4090_v22  ;;  %6582 = vmatmul.msk.bf16.gmra.mxu2 %vm4133_vm10, %v4090_v22  ;;  %v5006_v22 = vld [vmem:[%s10845_s10 + $0x30] sm:$0xff] }
 0x825   : > { %v10146_v2 = vpop.f32.mrf.mxu1 }
 0x82b   : > { %v10148_v17 = vpop.f32.mrf.mxu2 }
 0x82c   : > { %v7580_v16 = vpack.i.bf16 %v10148_v17, %v10146_v2 }
 0x82d   : > { %v10152_v5 = vpop.f32.mrf.mxu1 }
 0x82e   : > { %v7520_v58 = vpack.i.bf16 %v10152_v5, %v10146_v2 }
 0x833   : > { %v4195_v24 = vpop.f32.mrf.mxu2 }
 0x834   : > { %v10155_v53 = vpack.i.bf16 %v4195_v24, %v10148_v17  ;;  %v7585_v43 = vpack.i.bf16 %v4195_v24, %v10152_v5  ;;  %v5011_v17 = vld [vmem:[%s10845_s10 + $0x58] sm:$0xff] }
 0x835   : > { %v10157_v30 = vpop.f32.mrf.mxu1 }
 0x83b   : > { %v4198_v19 = vpop.f32.mrf.mxu2 }
 0x83c   : > { %v7560_v36 = vpack.i.bf16 %v4198_v19, %v10157_v30 }
 0x83d   : > { %v10159_v6 = vpop.f32.mrf.mxu1 }
 0x83e   : > { %v7515_v9 = vpack.i.bf16 %v10159_v6, %v10157_v30  ;;  %v4495_v3 = vpack.c.bf16 %v10159_v6, %v10157_v30 }
 0x840   : > { %7516 = vrot.lane.b32.xlu0 %v7515_v9, %s7703_s29 }
 0x843   : > { %v4200_v41 = vpop.f32.mrf.mxu2 }
 0x844   : > { %v7565_v52 = vpack.i.bf16 %v4200_v41, %v10159_v6  ;;  %v10167_v50 = vpack.i.bf16 %v4200_v41, %v4198_v19 }
 0x845   : > { %v10169_v38 = vpop.f32.mrf.mxu1 }
 0x84b   : > { %v4203_v27 = vpop.f32.mrf.mxu2 }
 0x84c   : > { %v7540_v63 = vpack.i.bf16 %v4203_v27, %v10169_v38 }
 0x84d   : > { %v10171_v29 = vpop.f32.mrf.mxu1 }
 0x84e   : > { %v7510_v44 = vpack.i.bf16 %v10171_v29, %v10169_v38  ;;  %v4496_v51 = vpack.c.bf16 %v10171_v29, %v10169_v38  ;;  %v6585_v38 = vld [vmem:[%s10844_s9] sm:$0xf] }
 0x850   : > { %7511 = vrot.lane.b32.xlu2 %v7510_v44, %s7703_s29 }
 0x853   : > { %v4205_v55 = vpop.f32.mrf.mxu2 }
 0x854   : > { %v7530_v39 = vpack.i.bf16 %v4205_v55, %v4203_v27  ;;  %v7545_v35 = vpack.i.bf16 %v4205_v55, %v10171_v29  ;;  %v5004_v27 = vld [vmem:[%s10845_s10 + $0x20] sm:$0xff]  ;;  %v6993_v29 = vld [vmem:[%s10844_s9 + $0x10] sm:$0xf0] }
 0x855   : > { %v10178_v40 = vpop.f32.mrf.mxu1 }
 0x856   : > { %7531 = vrot.lane.b32.xlu0 %v7530_v39, %s7704_s24 }
 0x858   : > { %7541 = vrot.lane.b32.xlu2 %v7540_v63, %s7705_s30 }
 0x85b   : > { %v4208_v47 = vpop.f32.mrf.mxu2 }
 0x85c   : > { %v7525_v20 = vpack.i.bf16 %v4208_v47, %v10178_v40 }
 0x85d   : > { %v10184_v10 = vpop.f32.mrf.mxu1 }
 0x85e   : > { %7546 = vrot.lane.b32.xlu0 %v7545_v35, %s7705_s30  ;;  %v7505_v48 = vpack.i.bf16 %v10184_v10, %v10178_v40 }
 0x860   : > { %7556 = vrot.lane.b32.xlu2 %v7515_v9, %s7706_s18  ;;  %7506 = vrot.lane.b32.xlu1 %v7505_v48, %s7703_s29 }
 0x863   : > { %v4210_v18 = vpop.f32.mrf.mxu2 }
 0x864   : > { %v7625_v60 = vpack.i.bf16 %v4210_v18, %v4208_v47  ;;  %v7630_v57 = vpack.i.bf16 %v4210_v18, %v10184_v10 }
 0x866   : > { %7561 = vrot.lane.b32.xlu0 %v7560_v36, %s7705_s30  ;;  %v5119_v36 = vld [vmem:[%s10846_s11 + $0x38] sm:$0xff] }
 0x868   : > { %7571 = vrot.lane.b32.xlu2 %v10155_v53, %s7704_s24  ;;  %7521 = vrot.lane.b32.xlu1 %v7520_v58, %s7703_s29 }
 0x86e   : > { %7576 = vrot.lane.b32.xlu0 %v7520_v58, %s7706_s18 }
 0x870   : > { %7586 = vrot.lane.b32.xlu2 %v7585_v43, %s7705_s30  ;;  %7526 = vrot.lane.b32.xlu1 %v7525_v20, %s7705_s30 }
 0x876   : > { %7601 = vrot.lane.b32.xlu0 %v7530_v39, %s7707_s19 }
 0x878   : > { %7596 = vrot.lane.b32.xlu2 %v7510_v44, %s7708_s20  ;;  %7536 = vrot.lane.b32.xlu1 %v7510_v44, %s7706_s18 }
 0x87e   : > { %7611 = vrot.lane.b32.xlu0 %v7505_v48, %s7706_s18 }
 0x880   : > { %7626 = vrot.lane.b32.xlu2 %v7625_v60, %s7704_s24  ;;  %7551 = vrot.lane.b32.xlu1 %v10167_v50, %s7704_s24  ;;  %s10958_s24 = sld [smem:[#allocation40_spill]] }
 0x886   : > { %7621 = vrot.lane.b32.xlu0 %v7505_v48, %s7709_s26 }
 0x888   : > { %7631 = vrot.lane.b32.xlu2 %v7630_v57, %s7705_s30  ;;  %7566 = vrot.lane.b32.xlu1 %v7565_v52, %s7705_s30 }
 0x88e   : > { %7641 = vrot.lane.b32.xlu0 %v7515_v9, %s7708_s20 }
 0x890   : > { %7636 = vrot.lane.b32.xlu2 %v10167_v50, %s7710_s15  ;;  %7581 = vrot.lane.b32.xlu1 %v7580_v16, %s7705_s30  ;;  %s546_s30 = scalar_lea.vmem %s10958_s24, %s5474_s2 }
 0x896   : > { %7651 = vrot.lane.b32.xlu0 %v7625_v60, %s7710_s15 }
 0x898   : > { %7656 = vrot.lane.b32.xlu2 %v7625_v60, %s7707_s19  ;;  %7591 = vrot.lane.b32.xlu1 %v7530_v39, %s7710_s15 }
 0x89e   : > { %7666 = vrot.lane.b32.xlu0 %v10155_v53, %s7710_s15 }
 0x8a0   : > { %7661 = vrot.lane.b32.xlu2 %v7515_v9, %s7709_s26  ;;  %7606 = vrot.lane.b32.xlu1 %v7510_v44, %s7709_s26 }
 0x8a6   : > { %7681 = vrot.lane.b32.xlu0 %v7520_v58, %s7709_s26 }
 0x8a8   : > { %7676 = vrot.lane.b32.xlu2 %v10155_v53, %s7707_s19  ;;  %7616 = vrot.lane.b32.xlu1 %v7505_v48, %s7708_s20 }
 0x8aa   : > { %v7512_v34 = vpop.permute.xlu2 %7511 }
 0x8ab   : > { %v7514_v59 = vunpack.i.h.bf16 %v7512_v34  ;;  %v7513_v37 = vunpack.i.l.bf16 %v7512_v34 }
 0x8ad   : > { %v4500_v19 = vpack.c.bf16 %v7514_v59, %v7513_v37  ;;  %v4494_v37 = vpack.c.bf16 %v10152_v5, %v10146_v2  ;;  %v5000_v2 = vld [vmem:[%s10845_s10] sm:$0xff] }
 0x8ae   : > { %5200 = vperm.xlu0 %7062, %v5126_v45  }
 0x8b0   : > { %5093 = vperm.xlu2 %7064, %v5015_v12   ;;  %7646 = vrot.lane.b32.xlu1 %v10167_v50, %s7707_s19  ;;  %v5117_v12 = vld [vmem:[%s10846_s11 + $0x28] sm:$0xff] }
 0x8b2   : > { %v10228_v62 = vpop.permute.xlu2 %7541  ;;  %v7517_v8 = vpop.permute.xlu0 %7516 }
 0x8b3   : > { %v7519_v16 = vunpack.i.h.bf16 %v7517_v8  ;;  %v7518_v24 = vunpack.i.l.bf16 %v7517_v8  ;;  %v5116_v8 = vld [vmem:[%s10846_s11 + $0x20] sm:$0xff] }
 0x8b5   : > { %v4499_v44 = vpack.c.bf16 %v7519_v16, %v7518_v24 }
 0x8b6   : > { %5083 = vperm.xlu0 %7062, %v5013_v26  }
 0x8b8   : > { %5078 = vperm.xlu2 %7064, %v5012_v21   ;;  %7671 = vrot.lane.b32.xlu1 %v7520_v58, %s7708_s20  ;;  %v5008_v58 = vld [vmem:[%s10845_s10 + $0x40] sm:$0xff] }
 0x8ba   : > { %v10237_v15 = vpop.permute.xlu2 %7556 }
 0x8be   : > { %5068 = vperm.xlu0 %7062, %v5010_v13  }
 0x8c0   : > { %5195 = vperm.xlu2 %7064, %v5125_v14   ;;  %5088 = vperm.xlu1 %7063, %v5014_v31   ;;  %v4497_v31 = vpack.c.bf16 %v10184_v10, %v10178_v40 }
 0x8c2   : > { %v10248_v23 = vpop.permute.xlu2 %7571 }
 0x8c3   : > { %v7574_v5 = vunpack.i.h.bf16 %v10248_v23 }
 0x8c6   : > { %5185 = vperm.xlu0 %7062, %v5123_v0   ;;  %v5121_v0 = vld [vmem:[%s10846_s11 + $0x48] sm:$0xff] }
 0x8c8   : > { %v7532_v33 = vpop.permute.xlu0 %7531  ;;  %5180 = vperm.xlu2 %7064, %v5122_v4   ;;  %5205 = vperm.xlu1 %7063, %v5127_v28   ;;  %v7544_v4 = vunpack.i.h.bf16 %v10228_v62  ;;  %v7543_v28 = vunpack.i.l.bf16 %v10228_v62 }
 0x8c9   : > { %v7534_v55 = vunpack.i.h.bf16 %v7532_v33  ;;  %v7533_v39 = vunpack.i.l.bf16 %v7532_v33 }
 0x8ca   : > { %v10259_v25 = vpop.permute.xlu2 %7586 }
 0x8cb   : > { %v4524_v43 = vpack.c.bf16 %v7534_v55, %v7533_v39  ;;  %v5005_v39 = vld [vmem:[%s10845_s10 + $0x28] sm:$0xff] }
 0x8ce   : > { %5170 = vperm.xlu0 %7062, %v5120_v42  }
 0x8d0   : > { %v10270_v1 = vpop.permute.xlu0 %7546  ;;  %5063 = vperm.xlu2 %7064, %v5009_v54   ;;  %5190 = vperm.xlu1 %7063, %v5124_v56  }
 0x8d1   : > { %v7549_v26 = vunpack.i.h.bf16 %v10270_v1  ;;  %v7548_v21 = vunpack.i.l.bf16 %v10270_v1  ;;  %v4362_v1 = vsel %vm4357_vm11, %v7543_v28, %v7544_v4  ;;  %v7588_v4 = vunpack.i.l.bf16 %v10259_v25 }
 0x8d2   : > { %v10272_v11 = vpop.permute.xlu2 %7596  ;;  %v7507_v61 = vpop.permute.xlu1 %7506 }
 0x8d3   : > { %v7509_v32 = vunpack.i.h.bf16 %v7507_v61  ;;  %v7508_v7 = vunpack.i.l.bf16 %v7507_v61  ;;  %v4363_v40 = vsel %vm4357_vm11, %v7548_v21, %v7549_v26  ;;  %v5114_v61 = vld [vmem:[%s10846_s11 + $0x10] sm:$0xff] }
 0x8d4   : > { %v4516_v62 = vpack.c.bf16 %v4363_v40, %v4362_v1  ;;  %v5002_v26 = vld [vmem:[%s10845_s10 + $0x10] sm:$0xff]  ;;  %v5115_v40 = vld [vmem:[%s10846_s11 + $0x18] sm:$0xff] }
 0x8d5   : > { %v4501_v49 = vpack.c.bf16 %v7509_v32, %v7508_v7  ;;  %v5003_v32 = vld [vmem:[%s10845_s10 + $0x18] sm:$0xff]  ;;  %v5118_v7 = vld [vmem:[%s10846_s11 + $0x30] sm:$0xff] }
 0x8d6   : > { %5053 = vperm.xlu0 %7062, %v5007_v46  }
 0x8d7   : > { %4755 = vmatpush.bf16.msrb.mxu3 %v4501_v49 }
 0x8d8   : > { %v10283_v53 = vpop.permute.xlu0 %7561  ;;  %5048 = vperm.xlu2 %7064, %v5006_v22   ;;  %5073 = vperm.xlu1 %7063, %v5011_v17  }
 0x8da   : > { %v7627_v9 = vpop.permute.xlu2 %7626  ;;  %v7522_v41 = vpop.permute.xlu1 %7521 }
 0x8db   : > { %v7629_v52 = vunpack.i.h.bf16 %v7627_v9  ;;  %v7628_v50 = vunpack.i.l.bf16 %v7627_v9  ;;  %4756 = vmatpush.bf16.msrb.mxu3 %v4500_v19  ;;  %v7524_v35 = vunpack.i.h.bf16 %v7522_v41  ;;  %v7523_v48 = vunpack.i.l.bf16 %v7522_v41  ;;  %v5001_v9 = vld [vmem:[%s10845_s10 + $0x8] sm:$0xff] }
 0x8dd   : > { %v4525_v63 = vpack.c.bf16 %v7629_v52, %v7628_v50  ;;  %v4498_v20 = vpack.c.bf16 %v7524_v35, %v7523_v48  ;;  %v7558_v35 = vunpack.i.l.bf16 %v10237_v15 }
 0x8de   : > { %5038 = vperm.xlu0 %7062, %v5004_v27  }
 0x8df   : > { %4757 = vmatpush.bf16.msrb.mxu3 %v4499_v44  ;;  %4902 = vmatpush.bf16.msra.mxu2 %v4525_v63  ;;  %v7573_v44 = vunpack.i.l.bf16 %v10248_v23  ;;  %v7559_v63 = vunpack.i.h.bf16 %v10237_v15 }
 0x8e0   : > { %v10294_v47 = vpop.permute.xlu0 %7576  ;;  %5165 = vperm.xlu2 %7064, %v5119_v36   ;;  %5058 = vperm.xlu1 %7063, %v5008_v58  }
 0x8e1   : > { %v4522_v23 = vpack.c.bf16 %v7574_v5, %v7573_v44  ;;  %v7578_v15 = vunpack.i.l.bf16 %v10294_v47 }
 0x8e2   : > { %v7632_v18 = vpop.permute.xlu2 %7631  ;;  %v7527_v60 = vpop.permute.xlu1 %7526 }
 0x8e3   : > { %v7634_v57 = vunpack.i.h.bf16 %v7632_v18  ;;  %v7633_v34 = vunpack.i.l.bf16 %v7632_v18  ;;  %v7529_v45 = vunpack.i.h.bf16 %v7527_v60  ;;  %4758 = vmatpush.bf16.msrb.mxu3 %v4498_v20  ;;  %4903 = vmatpush.bf16.msra.mxu2 %v4524_v43  ;;  %v7528_v13 = vunpack.i.l.bf16 %v7527_v60 }
 0x8e4   : > { %v7564_v43 = vunpack.i.h.bf16 %v10283_v53  ;;  %v7563_v20 = vunpack.i.l.bf16 %v10283_v53  ;;  %v4507_v60 = vpack.c.bf16 %v7559_v63, %v7558_v35 }
 0x8e5   : > { %v4365_v14 = vsel %vm4357_vm11, %v7633_v34, %v7634_v57  ;;  %v4364_v33 = vsel %vm4357_vm11, %v7528_v13, %v7529_v45  ;;  %v7579_v34 = vunpack.i.h.bf16 %v10294_v47  ;;  %v6605_v47 = vld [vmem:[%s10844_s9 + $0x28] sm:$0xf] }
 0x8e6   : > { %5155 = vperm.xlu0 %7062, %v5117_v12   ;;  %v4517_v42 = vpack.c.bf16 %v4365_v14, %v4364_v33  ;;  %v5113_v12 = vld [vmem:[%s10846_s11 + $0x8] sm:$0xff]  ;;  %v4360_v53 = vsel %vm4357_vm11, %v7563_v20, %v7564_v43  ;;  %v6998_v14 = vld [vmem:[%s10844_s9 + $0x38] sm:$0xf0] }
 0x8e7   : > { %4759 = vmatpush.bf16.msrb.mxu3 %v4497_v31  ;;  %v4506_v31 = vpack.c.bf16 %v7579_v34, %v7578_v15  ;;  %v6606_v33 = vor.u32 %v6998_v14, %v6605_v47  ;;  %v7599_v34 = vunpack.i.h.bf16 %v10272_v11  ;;  %v7598_v15 = vunpack.i.l.bf16 %v10272_v11 }
 0x8e8   : > { %v7602_v54 = vpop.permute.xlu0 %7601  ;;  %5150 = vperm.xlu2 %7064, %v5116_v8   ;;  %5175 = vperm.xlu1 %7063, %v5121_v0   ;;  %v7589_v0 = vunpack.i.h.bf16 %v10259_v25 }
 0x8e9   : > { %4853 = vmatpush.bf16.msrb.mxu1 %v4517_v42  ;;  %v7604_v52 = vunpack.i.h.bf16 %v7602_v54  ;;  %v7603_v50 = vunpack.i.l.bf16 %v7602_v54 }
 0x8ea   : > { %v10314_v10 = vpop.permute.xlu2 %7636  ;;  %v7537_v56 = vpop.permute.xlu1 %7536  ;;  %v4359_v1 = vsel %vm4357_vm11, %v7588_v4, %v7589_v0 }
 0x8eb   : > { %4760 = vmatpush.bf16.msrb.mxu3 %v4496_v51  ;;  %v7539_v49 = vunpack.i.h.bf16 %v7537_v56  ;;  %v7538_v22 = vunpack.i.l.bf16 %v7537_v56  ;;  %v4528_v58 = vpack.c.bf16 %v7604_v52, %v7603_v50 }
 0x8ed   : > { %4854 = vmatpush.bf16.msrb.mxu1 %v4516_v62  ;;  %v4508_v48 = vpack.c.bf16 %v7539_v49, %v7538_v22  ;;  %v7639_v49 = vunpack.i.h.bf16 %v10314_v10  ;;  %v7638_v22 = vunpack.i.l.bf16 %v10314_v10 }
 0x8ee   : > { %5140 = vperm.xlu0 %7062, %v5114_v61  }
 0x8ef   : > { %4761 = vmatpush.bf16.msrb.mxu3 %v4495_v3  ;;  %v6586_v3 = vor.u32 %v6993_v29, %v6585_v38 }
 0x8f0   : > { %5033 = vperm.xlu2 %7064, %v5003_v32   ;;  %v7612_v51 = vpop.permute.xlu0 %7611  ;;  %5160 = vperm.xlu1 %7063, %v5118_v7  }
 0x8f1   : > { %v7614_v46 = vunpack.i.h.bf16 %v7612_v51  ;;  %v7613_v59 = vunpack.i.l.bf16 %v7612_v51 }
 0x8f2   : > { %v7657_v30 = vpop.permute.xlu2 %7656  ;;  %v7552_v6 = vpop.permute.xlu1 %7551 }
 0x8f3   : > { %v4509_v17 = vpack.c.bf16 %v7614_v46, %v7613_v59  ;;  %v7659_v16 = vunpack.i.h.bf16 %v7657_v30  ;;  %v7658_v24 = vunpack.i.l.bf16 %v7657_v30  ;;  %v7554_v19 = vunpack.i.h.bf16 %v7552_v6  ;;  %4762 = vmatpush.bf16.msrb.mxu3 %v4494_v37  ;;  %v5112_v30 = vld [vmem:[%s10846_s11] sm:$0xff] }
 0x8f4   : > { %v7553_v41 = vunpack.i.l.bf16 %v7552_v6 }
 0x8f5   : > { %v4529_v27 = vpack.c.bf16 %v7659_v16, %v7658_v24  ;;  %4804 = vmatpush.bf16.msrb.mxu0 %v4509_v17  ;;  %v7003_v17 = vld [vmem:[%s10844_s9 + $0x60] sm:$0xf0]  ;;  %v4519_v24 = vpack.c.bf16 %v7639_v49, %v7638_v22  ;;  %v6665_v49 = vld [vmem:[%s10844_s9 + $0xa0] sm:$0xf]  ;;  %v7013_v22 = vld [vmem:[%s10844_s9 + $0xb0] sm:$0xf0] }
 0x8f6   : > { %v4523_v55 = vpack.c.bf16 %v7554_v19, %v7553_v41  ;;  %5023 = vperm.xlu0 %7062, %v5001_v9   ;;  %4763 = vmatmul.bf16.vlgmr.msrb.gmra.mxu3 %v6586_v3  ;;  %v6625_v3 = vld [vmem:[%s10844_s9 + $0x50] sm:$0xf] }
 0x8f7   : > { %4955 = vmatpush.bf16.msra.mxu3 %v4529_v27  ;;  %v6626_v10 = vor.u32 %v7003_v17, %v6625_v3  ;;  %v6635_v3 = vld [vmem:[%s10844_s9 + $0x6c] sm:$0xf0] }
 0x8f8   : > { %4904 = vmatpush.bf16.msra.mxu2 %v4523_v55  ;;  %5018 = vperm.xlu2 %7064, %v5000_v2   ;;  %v7622_v36 = vpop.permute.xlu0 %7621  ;;  %v6992_v55 = vld [vmem:[%s10844_s9 + $0xc] sm:$0xf] }
 0x8f9   : > { %5043 = vperm.xlu1 %7063, %v5005_v39   ;;  %4805 = vmatpush.bf16.msrb.mxu0 %v4508_v48  ;;  %v7624_v62 = vunpack.i.h.bf16 %v7622_v36  ;;  %v7623_v61 = vunpack.i.l.bf16 %v7622_v36  ;;  %v6595_v39 = vld [vmem:[%s10844_s9 + $0x1c] sm:$0xf0] }
 0x8fa   : > { %v7567_v18 = vpop.permute.xlu1 %7566  ;;  %v7662_v19 = vpop.permute.xlu2 %7661  ;;  %v6598_v48 = vor.u32 %v6992_v55, %v6595_v39  ;;  %v7001_v55 = vld [vmem:[%s10844_s9 + $0x54] sm:$0xf]  ;;  %v6627_v39 = vld [vmem:[%s10844_s9 + $0x64] sm:$0xf0] }
 0x8fb   : > { %v7569_v57 = vunpack.i.h.bf16 %v7567_v18  ;;  %4956 = vmatpush.bf16.msra.mxu3 %v4528_v58  ;;  %v7568_v45 = vunpack.i.l.bf16 %v7567_v18  ;;  %v4513_v51 = vpack.c.bf16 %v7624_v62, %v7623_v61  ;;  %v7664_v2 = vunpack.i.h.bf16 %v7662_v19 }
 0x8fc   : > { %4905 = vmatpush.bf16.msra.mxu2 %v4522_v23  ;;  %v7663_v5 = vunpack.i.l.bf16 %v7662_v19  ;;  %v6633_v19 = vld [vmem:[%s10844_s9 + $0x58] sm:$0xf] }
 0x8fd   : > { %4806 = vmatpush.bf16.msrb.mxu0 %v4507_v60  ;;  %v4361_v21 = vsel %vm4357_vm11, %v7568_v45, %v7569_v57  ;;  %v6593_v60 = vld [vmem:[%s10844_s9 + $0x8] sm:$0xf]  ;;  %v6994_v57 = vld [vmem:[%s10844_s9 + $0x18] sm:$0xf0] }
 0x8fe   : > { %v4515_v13 = vpack.c.bf16 %v4361_v21, %v4360_v53  ;;  %v4511_v36 = vpack.c.bf16 %v7664_v2, %v7663_v5  ;;  %v6645_v53 = vld [vmem:[%s10844_s9 + $0x78] sm:$0xf]  ;;  %v7008_v21 = vld [vmem:[%s10844_s9 + $0x88] sm:$0xf0]  ;;  %v7007_v2 = vld [vmem:[%s10844_s9 + $0x84] sm:$0xf] }
 0x8ff   : > { %v6646_v0 = vor.u32 %v7008_v21, %v6645_v53  ;;  %v6655_v5 = vld [vmem:[%s10844_s9 + $0x94] sm:$0xf0]  ;;  %v7028_v21 = vld [vmem:[%s10844_s9 + $0x128] sm:$0xf0] }
 0x900   : > { %5135 = vperm.xlu2 %7064, %v5113_v12   ;;  %v10371_v8 = vpop.permute.xlu0 %7641  ;;  %4855 = vmatpush.bf16.msrb.mxu1 %v4515_v13  ;;  %v4504_v13 = vpack.c.bf16 %v7599_v34, %v7598_v15  ;;  %v6647_v34 = vld [vmem:[%s10844_s9 + $0x8c] sm:$0xf0]  ;;  %v6673_v15 = vld [vmem:[%s10844_s9 + $0xa8] sm:$0xf]  ;;  %v6725_v53 = vld [vmem:[%s10844_s9 + $0x118] sm:$0xf] }
 0x901   : > { %5028 = vperm.xlu1 %7063, %v5002_v26   ;;  %4807 = vmatpush.bf16.msrb.mxu0 %v4506_v31  ;;  %v6594_v26 = vor.u32 %v6994_v57, %v6593_v60  ;;  %v7644_v47 = vunpack.i.h.bf16 %v10371_v8  ;;  %v7643_v14 = vunpack.i.l.bf16 %v10371_v8  ;;  %v7006_v57 = vld [vmem:[%s10844_s9 + $0x7c] sm:$0xf] }
 0x902   : > { %v7582_v28 = vpop.permute.xlu1 %7581  ;;  %v7677_v31 = vpop.permute.xlu2 %7676 }
 0x903   : > { %v7584_v42 = vunpack.i.h.bf16 %v7582_v28  ;;  %v7583_v54 = vunpack.i.l.bf16 %v7582_v28 }
 0x905   : > { %v4358_v56 = vsel %vm4357_vm11, %v7583_v54, %v7584_v42  ;;  %v7679_v42 = vunpack.i.h.bf16 %v7677_v31  ;;  %v7678_v54 = vunpack.i.l.bf16 %v7677_v31 }
 0x906   : > { %4768 = vmatmul.bf16.gmra.mxu3 %v6606_v33  ;;  %v4514_v32 = vpack.c.bf16 %v4359_v1, %v4358_v56  ;;  %v4503_v33 = vpack.c.bf16 %v7644_v47, %v7643_v14  ;;  %v6997_v56 = vld [vmem:[%s10844_s9 + $0x34] sm:$0xf]  ;;  %v6615_v1 = vld [vmem:[%s10844_s9 + $0x44] sm:$0xf0] }
 0x907   : > { %v6618_v8 = vor.u32 %v6997_v56, %v6615_v1  ;;  %v4526_v62 = vpack.c.bf16 %v7679_v42, %v7678_v54  ;;  %v7017_v47 = vld [vmem:[%s10844_s9 + $0xd4] sm:$0xf]  ;;  %v6695_v14 = vld [vmem:[%s10844_s9 + $0xe4] sm:$0xf0]  ;;  %v6601_v54 = vld [vmem:[%s10844_s9 + $0x10] sm:$0xf] }
 0x908   : > { %v7652_v7 = vpop.permute.xlu0 %7651  ;;  %4856 = vmatpush.bf16.msrb.mxu1 %v4514_v32  ;;  %v6991_v32 = vld [vmem:[%s10844_s9 + $0x4] sm:$0xf]  ;;  %v6698_v31 = vor.u32 %v7017_v47, %v6695_v14  ;;  %v7022_v1 = vld [vmem:[%s10844_s9 + $0xfc] sm:$0xf] }
 0x909   : > { %v7654_v38 = vunpack.i.h.bf16 %v7652_v7  ;;  %v7653_v25 = vunpack.i.l.bf16 %v7652_v7  ;;  %5145 = vperm.xlu1 %7063, %v5115_v40  }
 0x90a   : > { %v7592_v29 = vpop.permute.xlu1 %7591 }
 0x90b   : > { %v4521_v46 = vpack.c.bf16 %v7654_v38, %v7653_v25  ;;  %v7594_v59 = vunpack.i.h.bf16 %v7592_v29  ;;  %v7593_v37 = vunpack.i.l.bf16 %v7592_v29  ;;  %v6587_v25 = vld [vmem:[%s10844_s9 + $0x14] sm:$0xf0]  ;;  %v6613_v29 = vld [vmem:[%s10844_s9 + $0x30] sm:$0xf] }
 0x90c   : > { %4857 = vmatpush.bf16.msrb.mxu1 %v4513_v51  ;;  %v6999_v51 = vld [vmem:[%s10844_s9 + $0x40] sm:$0xf0] }
 0x90d   : > { %4906 = vmatpush.bf16.msra.mxu2 %v4521_v46  ;;  %v4520_v6 = vpack.c.bf16 %v7594_v59, %v7593_v37  ;;  %v6590_v59 = vor.u32 %v6991_v32, %v6587_v25  ;;  %v6614_v37 = vor.u32 %v6999_v51, %v6613_v29  ;;  %v7016_v32 = vld [vmem:[%s10844_s9 + $0xcc] sm:$0xf] }
 0x90e   : > { %v7024_v25 = vld [vmem:[%s10844_s9 + $0x108] sm:$0xf0] }
 0x910   : > { %v7667_v16 = vpop.permute.xlu0 %7666 }
 0x911   : > { %5130 = vperm.xlu1 %7063, %v5112_v30   ;;  %4907 = vmatpush.bf16.msra.mxu2 %v4520_v6  ;;  %v7669_v41 = vunpack.i.h.bf16 %v7667_v16  ;;  %v7668_v52 = vunpack.i.l.bf16 %v7667_v16  ;;  %v6666_v30 = vor.u32 %v7013_v22, %v6665_v49  ;;  %v7002_v6 = vld [vmem:[%s10844_s9 + $0x5c] sm:$0xf]  ;;  %v6996_v16 = vld [vmem:[%s10844_s9 + $0x2c] sm:$0xf]  ;;  %v7027_v22 = vld [vmem:[%s10844_s9 + $0x124] sm:$0xf] }
 0x912   : > { %v7607_v9 = vpop.permute.xlu1 %7606  ;;  %v6638_v17 = vor.u32 %v7002_v6, %v6635_v3 }
 0x913   : > { %v7609_v50 = vunpack.i.h.bf16 %v7607_v9  ;;  %v7608_v27 = vunpack.i.l.bf16 %v7607_v9  ;;  %v4518_v63 = vpack.c.bf16 %v7669_v41, %v7668_v52  ;;  %v7004_v9 = vld [vmem:[%s10844_s9 + $0x68] sm:$0xf0]  ;;  %v6685_v52 = vld [vmem:[%s10844_s9 + $0xc8] sm:$0xf] }
 0x914   : > { %v6634_v41 = vor.u32 %v7004_v9, %v6633_v19  ;;  %v7029_v19 = vld [vmem:[%s10844_s9 + $0x130] sm:$0xf0] }
 0x915   : > { %v4512_v44 = vpack.c.bf16 %v7609_v50, %v7608_v27  ;;  %4908 = vmatpush.bf16.msra.mxu2 %v4519_v24  ;;  %v6607_v24 = vld [vmem:[%s10844_s9 + $0x3c] sm:$0xf0]  ;;  %v7018_v50 = vld [vmem:[%s10844_s9 + $0xd8] sm:$0xf0] }
 0x916   : > { %4773 = vmatmul.bf16.gmra.mxu3 %v6626_v10  ;;  %v6610_v10 = vor.u32 %v6996_v16, %v6607_v24  ;;  %v6686_v27 = vor.u32 %v7018_v50, %v6685_v52  ;;  %v6707_v16 = vld [vmem:[%s10844_s9 + $0x104] sm:$0xf0]  ;;  %v6733_v24 = vld [vmem:[%s10844_s9 + $0x120] sm:$0xf]  ;;  %v7005_v52 = vld [vmem:[%s10844_s9 + $0x70] sm:$0xf0] }
 0x917   : > { %4858 = vmatpush.bf16.msrb.mxu1 %v4512_v44  ;;  %v6658_v44 = vor.u32 %v7007_v2, %v6655_v5  ;;  %v7026_v5 = vld [vmem:[%s10844_s9 + $0x11c] sm:$0xf] }
 0x918   : > { %v7682_v35 = vpop.permute.xlu0 %7681 }
 0x919   : > { %v7684_v58 = vunpack.i.h.bf16 %v7682_v35  ;;  %v7683_v23 = vunpack.i.l.bf16 %v7682_v35  ;;  %4909 = vmatpush.bf16.msra.mxu2 %v4518_v63  ;;  %v6653_v63 = vld [vmem:[%s10844_s9 + $0x80] sm:$0xf]  ;;  %v7009_v35 = vld [vmem:[%s10844_s9 + $0x90] sm:$0xf0] }
 0x91a   : > { %v7617_v43 = vpop.permute.xlu1 %7616 }
 0x91b   : > { %v7619_v20 = vunpack.i.h.bf16 %v7617_v43  ;;  %v7618_v18 = vunpack.i.l.bf16 %v7617_v43  ;;  %4859 = vmatpush.bf16.msrb.mxu1 %v4511_v36  ;;  %v4510_v45 = vpack.c.bf16 %v7684_v58, %v7683_v23  ;;  %v6654_v36 = vor.u32 %v7009_v35, %v6653_v63  ;;  %v6705_v58 = vld [vmem:[%s10844_s9 + $0xf0] sm:$0xf]  ;;  %v7023_v23 = vld [vmem:[%s10844_s9 + $0x100] sm:$0xf0]  ;;  %v7010_v63 = vld [vmem:[%s10844_s9 + $0x98] sm:$0xf0] }
 0x91c   : > { %4910 = vmatmul.bf16.vlgmr.msra.gmra.mxu2 %v6598_v48  ;;  %v6630_v48 = vor.u32 %v7001_v55, %v6627_v39  ;;  %v6706_v43 = vor.u32 %v7023_v23, %v6705_v58  ;;  %v6661_v39 = vld [vmem:[%s10844_s9 + $0x88] sm:$0xf] }
 0x91d   : > { %v4505_v12 = vpack.c.bf16 %v7619_v20, %v7618_v18  ;;  %v7012_v20 = vld [vmem:[%s10844_s9 + $0xac] sm:$0xf]  ;;  %v6675_v18 = vld [vmem:[%s10844_s9 + $0xbc] sm:$0xf0] }
 0x91e   : > { %v6678_v60 = vor.u32 %v7012_v20, %v6675_v18 }
 0x91f   : > { %4808 = vmatpush.bf16.msrb.mxu0 %v4505_v12  ;;  %4860 = vmatpush.bf16.msrb.mxu1 %v4510_v45  ;;  %v7014_v45 = vld [vmem:[%s10844_s9 + $0xb8] sm:$0xf0]  ;;  %v6650_v12 = vor.u32 %v7006_v57, %v6647_v34  ;;  %v7015_v57 = vld [vmem:[%s10844_s9 + $0xc0] sm:$0xf0] }
 0x922   : > { %v7647_v11 = vpop.permute.xlu1 %7646  ;;  %4861 = vmatmul.bf16.vlgmr.msrb.gmra.mxu1 %v6594_v26  ;;  %v6674_v26 = vor.u32 %v7014_v45, %v6673_v15 }
 0x923   : > { %v7649_v4 = vunpack.i.h.bf16 %v7647_v11  ;;  %v7648_v28 = vunpack.i.l.bf16 %v7647_v11  ;;  %4809 = vmatpush.bf16.msrb.mxu0 %v4504_v13  ;;  %v6726_v13 = vor.u32 %v7028_v21, %v6725_v53  ;;  %v7011_v11 = vld [vmem:[%s10844_s9 + $0xa4] sm:$0xf] }
 0x925   : > { %v4527_v40 = vpack.c.bf16 %v7649_v4, %v7648_v28  ;;  %v6693_v4 = vld [vmem:[%s10844_s9 + $0xd0] sm:$0xf]  ;;  %v7019_v28 = vld [vmem:[%s10844_s9 + $0xe0] sm:$0xf0] }
 0x926   : > { %4778 = vmatmul.bf16.gmra.mxu3 %v6646_v0  ;;  %v6667_v0 = vld [vmem:[%s10844_s9 + $0xb4] sm:$0xf0]  ;;  %v6694_v42 = vor.u32 %v7019_v28, %v6693_v4  ;;  %v7020_v28 = vld [vmem:[%s10844_s9 + $0xe8] sm:$0xf0] }
 0x927   : > { %4810 = vmatpush.bf16.msrb.mxu0 %v4503_v33  ;;  %4957 = vmatpush.bf16.msra.mxu3 %v4527_v40  ;;  %v6670_v33 = vor.u32 %v7011_v11, %v6667_v0  ;;  %v6995_v40 = vld [vmem:[%s10844_s9 + $0x20] sm:$0xf0]  ;;  %v6701_v4 = vld [vmem:[%s10844_s9 + $0xd8] sm:$0xf] }
 0x928   : > { %v6602_v56 = vor.u32 %v6995_v40, %v6601_v54 }
 0x92a   : > { %v7672_v61 = vpop.permute.xlu1 %7671 }
 0x92b   : > { %v7674_v7 = vunpack.i.h.bf16 %v7672_v61  ;;  %v7673_v38 = vunpack.i.l.bf16 %v7672_v61  ;;  %4958 = vmatpush.bf16.msra.mxu3 %v4526_v62 }
 0x92c   : > { %4915 = vmatmul.bf16.gmra.mxu2 %v6618_v8  ;;  %v6715_v8 = vld [vmem:[%s10844_s9 + $0x10c] sm:$0xf0] }
 0x92d   : > { %v4502_v46 = vpack.c.bf16 %v7674_v7, %v7673_v38  ;;  %v6718_v62 = vor.u32 %v7022_v1, %v6715_v8  ;;  %v6687_v7 = vld [vmem:[%s10844_s9 + $0xdc] sm:$0xf0]  ;;  %v6713_v38 = vld [vmem:[%s10844_s9 + $0xf8] sm:$0xf]  ;;  %v6702_v1 = vor.u32 %v7020_v28, %v6701_v4 }
 0x92e   : > { %v6690_v29 = vor.u32 %v7016_v32, %v6687_v7  ;;  %v6714_v51 = vor.u32 %v7024_v25, %v6713_v38 }
 0x92f   : > { %4811 = vmatpush.bf16.msrb.mxu0 %v4502_v46  ;;  %v6621_v46 = vld [vmem:[%s10844_s9 + $0x38] sm:$0xf] }
 0x932   : > { %4812 = vmatmul.bf16.vlgmr.msrb.gmra.mxu0 %v6590_v59  ;;  %4866 = vmatmul.bf16.gmra.mxu1 %v6614_v37  ;;  %v7000_v59 = vld [vmem:[%s10844_s9 + $0x48] sm:$0xf0] }
 0x933   : > { %v6622_v49 = vor.u32 %v7000_v59, %v6621_v46  ;;  %v6721_v46 = vld [vmem:[%s10844_s9 + $0x100] sm:$0xf]  ;;  %v7025_v59 = vld [vmem:[%s10844_s9 + $0x110] sm:$0xf0] }
 0x936   : > { %4783 = vmatmul.bf16.gmra.mxu3 %v6666_v30  ;;  %v6735_v30 = vld [vmem:[%s10844_s9 + $0x134] sm:$0xf0] }
 0x937   : > { %v6738_v6 = vor.u32 %v7027_v22, %v6735_v30  ;;  %v6722_v30 = vor.u32 %v7025_v59, %v6721_v46 }
 0x93c   : > { %4920 = vmatmul.bf16.gmra.mxu2 %v6638_v17  ;;  %v7021_v17 = vld [vmem:[%s10844_s9 + $0xf4] sm:$0xf] }
 0x93d   : > { %v6710_v9 = vor.u32 %v7021_v17, %v6707_v16 }
 0x942   : > { %4817 = vmatmul.bf16.gmra.mxu0 %v6610_v10  ;;  %4871 = vmatmul.bf16.gmra.mxu1 %v6634_v41  ;;  %v6734_v10 = vor.u32 %v7029_v19, %v6733_v24  ;;  %v6641_v41 = vld [vmem:[%s10844_s9 + $0x60] sm:$0xf] }
 0x946   : > { %4788 = vmatmul.bf16.gmra.mxu3 %v6686_v27  ;;  %v6642_v27 = vor.u32 %v7005_v52, %v6641_v41 }
 0x94c   : > { %4925 = vmatmul.bf16.gmra.mxu2 %v6658_v44  ;;  %v6727_v44 = vld [vmem:[%s10844_s9 + $0x12c] sm:$0xf0] }
 0x94d   : > { %v6730_v55 = vor.u32 %v7026_v5, %v6727_v44 }
 0x952   : > { %4822 = vmatmul.bf16.gmra.mxu0 %v6630_v48  ;;  %4876 = vmatmul.bf16.gmra.mxu1 %v6654_v36  ;;  %v6662_v36 = vor.u32 %v7010_v63, %v6661_v39 }
 0x956   : > { %4793 = vmatmul.bf16.gmra.mxu3 %v6706_v43 }
 0x95c   : > { %4930 = vmatmul.bf16.gmra.mxu2 %v6678_v60  ;;  %v6681_v60 = vld [vmem:[%s10844_s9 + $0xb0] sm:$0xf] }
 0x962   : > { %4827 = vmatmul.bf16.gmra.mxu0 %v6650_v12  ;;  %4881 = vmatmul.bf16.gmra.mxu1 %v6674_v26  ;;  %v6682_v12 = vor.u32 %v7015_v57, %v6681_v60 }
 0x966   : > { %4798 = vmatmul.bf16.gmra.mxu3 %v6726_v13 }
 0x96c   : > { %4935 = vmatmul.bf16.gmra.mxu2 %v6698_v31 }
 0x972   : > { %4832 = vmatmul.bf16.gmra.mxu0 %v6670_v33  ;;  %4886 = vmatmul.bf16.gmra.mxu1 %v6694_v42 }
 0x976   : > { %6743 = vmatmul.msk.bf16.vlgmr.msra.gmra.mxu3 %vm4730_vm12, %v6602_v56 }
 0x979   : > { %v4764_v61 = vpop.f32.mrf.mxu3 }
 0x97c   : > { %4940 = vmatmul.bf16.gmra.mxu2 %v6718_v62 }
 0x981   : > { %v4766_v37 = vpop.f32.mrf.mxu3 }
 0x982   : > { %4837 = vmatmul.bf16.gmra.mxu0 %v6690_v29  ;;  %4891 = vmatmul.bf16.gmra.mxu1 %v6714_v51 }
 0x986   : > { %6744 = vmatmul.msk.bf16.gmra.mxu3 %vm4730_vm12, %v6622_v49 }
 0x989   : > { %v4769_v3 = vpop.f32.mrf.mxu3 }
 0x98c   : > { %4945 = vmatmul.bf16.gmra.mxu2 %v6738_v6 }
 0x991   : > { %v4771_v50 = vpop.f32.mrf.mxu3 }
 0x992   : > { %4842 = vmatmul.bf16.gmra.mxu0 %v6710_v9  ;;  %4896 = vmatmul.bf16.gmra.mxu1 %v6734_v10 }
 0x996   : > { %6745 = vmatmul.msk.bf16.gmra.mxu3 %vm4730_vm12, %v6642_v27  ;;  %v6741_v27 = vld [vmem:[%s10844_s9 + $0x128] sm:$0xf] }
 0x999   : > { %v4774_v2 = vpop.f32.mrf.mxu3 }
 0x99f   : > { %v4862_v48 = vpop.f32.mrf.mxu1  ;;  %v4911_v58 = vpop.f32.mrf.mxu2 }
 0x9a1   : > { %v4776_v35 = vpop.f32.mrf.mxu3 }
 0x9a2   : > { %4847 = vmatmul.bf16.gmra.mxu0 %v6730_v55 }
 0x9a6   : > { %6746 = vmatmul.msk.bf16.gmra.mxu3 %vm4730_vm12, %v6662_v36 }
 0x9a7   : > { %v4864_v43 = vpop.f32.mrf.mxu1  ;;  %v4913_v20 = vpop.f32.mrf.mxu2 }
 0x9a9   : > { %v4779_v23 = vpop.f32.mrf.mxu3 }
 0x9af   : > { %v4813_v18 = vpop.f32.mrf.mxu0  ;;  %v4867_v53 = vpop.f32.mrf.mxu1 }
 0x9b0   : > { %v4814_v34 = vadd.f32 %v4813_v18, %v4764_v61  ;;  %v4916_v13 = vpop.f32.mrf.mxu2 }
 0x9b1   : > { %v4781_v15 = vpop.f32.mrf.mxu3 }
 0x9b2   : > { %v4863_v45 = vadd.f32 %v4862_v48, %v4814_v34 }
 0x9b4   : > { %v10603_v26 = vadd.f32 %v4911_v58, %v4863_v45 }
 0x9b6   : > { %6747 = vmatmul.msk.bf16.gmra.mxu3 %vm4730_vm12, %v6682_v12 }
 0x9b7   : > { %v4815_v21 = vpop.f32.mrf.mxu0  ;;  %v4869_v33 = vpop.f32.mrf.mxu1 }
 0x9b8   : > { %v4816_v47 = vadd.f32 %v4815_v21, %v4766_v37  ;;  %v4918_v40 = vpop.f32.mrf.mxu2 }
 0x9b9   : > { %v10606_v14 = vpop.f32.mrf.mxu3 }
 0x9ba   : > { %v4865_v31 = vadd.f32 %v4864_v43, %v4816_v47 }
 0x9bc   : > { %v4914_v11 = vadd.f32 %v4913_v20, %v4865_v31 }
 0x9bf   : > { %v4818_v0 = vpop.f32.mrf.mxu0  ;;  %v4872_v7 = vpop.f32.mrf.mxu1 }
 0x9c0   : > { %v4819_v42 = vadd.f32 %v4818_v0, %v4769_v3  ;;  %v4921_v25 = vpop.f32.mrf.mxu2  ;;  %v10654_v0 = vpop.permute.xlu2 %5093 }
 0x9c1   : > { %v10614_v54 = vpop.f32.mrf.mxu3 }
 0x9c2   : > { %v4868_v56 = vadd.f32 %v4867_v53, %v4819_v42 }
 0x9c4   : > { %v4917_v8 = vadd.f32 %v4916_v13, %v4868_v56 }
 0x9c6   : > { %6748 = vmatmul.msk.bf16.gmra.mxu3 %vm4730_vm12, %v6702_v1 }
 0x9c7   : > { %v4820_v62 = vpop.f32.mrf.mxu0  ;;  %v4874_v6 = vpop.f32.mrf.mxu1 }
 0x9c8   : > { %v4821_v61 = vadd.f32 %v4820_v62, %v4771_v50  ;;  %v4923_v17 = vpop.f32.mrf.mxu2  ;;  %v5079_v56 = vpop.permute.xlu2 %5078 }
 0x9c9   : > { %v10617_v32 = vpop.f32.mrf.mxu3 }
 0x9ca   : > { %v4870_v38 = vadd.f32 %v4869_v33, %v4821_v61  ;;  %v10660_v33 = vpop.permute.xlu0 %5200 }
 0x9cc   : > { %v4919_v29 = vadd.f32 %v4918_v40, %v4870_v38 }
 0x9cf   : > { %v4823_v51 = vpop.f32.mrf.mxu0  ;;  %v4877_v41 = vpop.f32.mrf.mxu1 }
 0x9d0   : > { %v4824_v37 = vadd.f32 %v4823_v51, %v4774_v2  ;;  %v4926_v50 = vpop.f32.mrf.mxu2  ;;  %v7030_v2 = vld [vmem:[%s10844_s9 + $0x138] sm:$0xf0]  ;;  %v10680_v46 = vpop.permute.xlu2 %5195 }
 0x9d1   : > { %v10625_v49 = vpop.f32.mrf.mxu3  ;;  %v6742_v39 = vor.u32 %v7030_v2, %v6741_v27 }
 0x9d2   : > { %v4873_v22 = vadd.f32 %v4872_v7, %v4824_v37  ;;  %v10672_v61 = vpop.permute.xlu0 %5083 }
 0x9d4   : > { %v4922_v3 = vadd.f32 %v4921_v25, %v4873_v22 }
 0x9d6   : > { %6749 = vmatmul.msk.bf16.gmra.mxu3 %vm4730_vm12, %v6722_v30 }
 0x9d7   : > { %v4825_v16 = vpop.f32.mrf.mxu0  ;;  %v4879_v48 = vpop.f32.mrf.mxu1 }
 0x9d8   : > { %v4826_v24 = vadd.f32 %v4825_v16, %v4776_v35  ;;  %v4928_v43 = vpop.f32.mrf.mxu2 }
 0x9d9   : > { %v10628_v19 = vpop.f32.mrf.mxu3 }
 0x9da   : > { %v4875_v9 = vadd.f32 %v4874_v6, %v4826_v24  ;;  %v5069_v37 = vpop.permute.xlu0 %5068 }
 0x9dc   : > { %v4924_v10 = vadd.f32 %v4923_v17, %v4875_v9  ;;  %v5181_v17 = vpop.permute.xlu2 %5180 }
 0x9df   : > { %v4828_v52 = vpop.f32.mrf.mxu0  ;;  %v10656_v28 = vpop.f32.mrf.mxu1 }
 0x9e0   : > { %v4829_v5 = vadd.f32 %v4828_v52, %v4779_v23  ;;  %v10664_v42 = vpop.f32.mrf.mxu2 }
 0x9e1   : > { %v10636_v44 = vpop.f32.mrf.mxu3 }
 0x9e2   : > { %v4878_v55 = vadd.f32 %v4877_v41, %v4829_v5 }
 0x9e4   : > { %v4927_v63 = vadd.f32 %v4926_v50, %v4878_v55  ;;  %v10695_v2 = vpop.permute.xlu2 %5063 }
 0x9e6   : > { %6750 = vmatmul.msk.bf16.gmra.mxu3 %vm4730_vm12, %v6742_v39 }
 0x9e7   : > { %v4830_v35 = vpop.f32.mrf.mxu0  ;;  %v10670_v62 = vpop.f32.mrf.mxu1 }
 0x9e8   : > { %v4831_v36 = vadd.f32 %v4830_v35, %v4781_v15  ;;  %v10676_v38 = vpop.f32.mrf.mxu2 }
 0x9e9   : > { %v10639_v58 = vpop.f32.mrf.mxu3 }
 0x9ea   : > { %v4880_v20 = vadd.f32 %v4879_v48, %v4831_v36 }
 0x9ec   : > { %v4929_v18 = vadd.f32 %v4928_v43, %v4880_v20 }
 0x9ef   : > { %v4833_v31 = vpop.f32.mrf.mxu0  ;;  %v4887_v59 = vpop.f32.mrf.mxu1 }
 0x9f0   : > { %v4936_v6 = vpop.f32.mrf.mxu2 }
 0x9f1   : > { %v10641_v60 = vpop.f32.mrf.mxu3 }
 0x9f7   : > { %v10666_v40 = vpop.f32.mrf.mxu0  ;;  %v10685_v24 = vpop.f32.mrf.mxu1 }
 0x9f8   : > { %v10693_v50 = vpop.f32.mrf.mxu2 }
 0x9f9   : > { %v4960_v57 = vpop.f32.mrf.mxu3 }
 0x9fa   : > { %v10644_v23 = vadd.f32 %v4960_v57, %v10603_v26 }
 0x9ff   : > { %v4892_v39 = vpop.f32.mrf.mxu1 }
 0xa00   : > { %v4941_v36 = vpop.f32.mrf.mxu2 }
 0xa01   : > { %v4962_v34 = vpop.f32.mrf.mxu3 }
 0xa02   : > { %v10646_v45 = vadd.f32 %v4962_v34, %v4914_v11  ;;  %v10662_v11 = vpop.permute.xlu1 %5088  ;;  %v10699_v34 = vpop.permute.xlu2 %5048 }
 0xa09   : > { %v4965_v12 = vpop.f32.mrf.mxu3 }
 0xa0a   : > { %v10648_v53 = vadd.f32 %v4965_v12, %v4917_v8  ;;  %v10674_v7 = vpop.permute.xlu1 %5205 }
 0xa11   : > { %v4967_v21 = vpop.f32.mrf.mxu3 }
 0xa12   : > { %v10650_v13 = vadd.f32 %v4967_v21, %v4919_v29  ;;  %v4838_v29 = vpop.f32.mrf.mxu0  ;;  %v5191_v30 = vpop.permute.xlu1 %5190 }
 0xa13   : > { %v4839_v16 = vadd.f32 %v4838_v29, %v10617_v32 }
 0xa15   : > { %v4888_v52 = vadd.f32 %v4887_v59, %v4839_v16  ;;  %v4943_v59 = vpop.f32.mrf.mxu2  ;;  %v5166_v16 = vpop.permute.xlu2 %5165 }
 0xa17   : > { %v4937_v5 = vadd.f32 %v4936_v6, %v4888_v52 }
 0xa19   : > { %v4970_v15 = vpop.f32.mrf.mxu3 }
 0xa1a   : > { %v10652_v47 = vadd.f32 %v4970_v15, %v4922_v3  ;;  %v10682_v3 = vpop.f32.mrf.mxu0  ;;  %v10691_v41 = vpop.permute.xlu1 %5073 }
 0xa1b   : > { %v4894_v15 = vpop.f32.mrf.mxu1 }
 0xa21   : > { %v4972_v4 = vpop.f32.mrf.mxu3 }
 0xa22   : > { %v10658_v26 = vadd.f32 %v4972_v4, %v4924_v10  ;;  %v10689_v10 = vpop.permute.xlu0 %5185  ;;  %v4843_v27 = vpop.f32.mrf.mxu0 }
 0xa23   : > { %v5059_v48 = vpop.permute.xlu1 %5058  ;;  %v4844_v20 = vadd.f32 %v4843_v27, %v10628_v19  ;;  %v4834_v19 = vadd.f32 %v4833_v31, %v10606_v14  ;;  %v4836_v31 = vadd.f32 %v10666_v40, %v10614_v54 }
 0xa25   : > { %v4893_v21 = vadd.f32 %v4892_v39, %v4844_v20 }
 0xa29   : > { %v4975_v1 = vpop.f32.mrf.mxu3 }
 0xa2a   : > { %v10668_v8 = vadd.f32 %v4975_v1, %v4927_v63  ;;  %v5171_v32 = vpop.permute.xlu0 %5170 }
 0xa2b   : > { %v10703_v1 = vpop.permute.xlu1 %5175 }
 0xa31   : > { %v4977_v25 = vpop.f32.mrf.mxu3 }
 0xa32   : > { %v10678_v51 = vadd.f32 %v4977_v25, %v4929_v18  ;;  %v4845_v18 = vpop.f32.mrf.mxu0  ;;  %v5054_v4 = vpop.permute.xlu0 %5053  ;;  %v4942_v25 = vadd.f32 %v4941_v36, %v4893_v21 }
 0xa33   : > { %v4846_v29 = vadd.f32 %v4845_v18, %v10636_v44  ;;  %v10710_v20 = vpop.permute.xlu1 %5160 }
 0xa35   : > { %v4895_v52 = vadd.f32 %v4894_v15, %v4846_v29  ;;  %v4885_v15 = vadd.f32 %v10670_v62, %v4836_v31 }
 0xa37   : > { %v4934_v40 = vadd.f32 %v10676_v38, %v4885_v15 }
 0xa39   : > { %v4980_v22 = vpop.f32.mrf.mxu3 }
 0xa3a   : > { %v4848_v6 = vpop.f32.mrf.mxu0 }
 0xa41   : > { %v10687_v9 = vpop.f32.mrf.mxu3 }
 0xa49   : > { %v4985_v55 = vpop.f32.mrf.mxu3 }
 0xa4a   : > { %v4986_v63 = vadd.f32 %v4985_v55, %v4937_v5  ;;  %v4883_v5 = vadd.f32 %v10656_v28, %v4834_v19  ;;  %v4897_v55 = vpop.f32.mrf.mxu1 }
 0xa4c   : > { %v5106_v35 = vmul.f32 %v5069_v37, %v4986_v63  ;;  %v4944_v63 = vadd.f32 %v4943_v59, %v4895_v52  ;;  %v4932_v14 = vadd.f32 %v10664_v42, %v4883_v5 }
 0xa4e   : > { %v5218_v43 = vadd.f32 %v5181_v17, %v5106_v35  ;;  %v4849_v35 = vadd.f32 %v4848_v6, %v10639_v58  ;;  %v5151_v58 = vpop.permute.xlu2 %5150 }
 0xa50   : > { %v5255_v57 = vsel %vm5224_vm13, %v5218_v43, 0.0  ;;  %v5039_v43 = vpop.permute.xlu0 %5038  ;;  %v4898_v28 = vadd.f32 %v4897_v55, %v4849_v35 }
 0xa51   : > { %v10701_v12 = vpop.f32.mrf.mxu3  ;;  %5256 = vadd.xlane.f32.xlu0 %v5255_v57  ;;  %v4850_v57 = vpop.f32.mrf.mxu0 }
 0xa52   : > { %v4851_v29 = vadd.f32 %v4850_v57, %v10641_v60  ;;  %v4983_v60 = vadd.f32 %v10687_v9, %v4934_v40  ;;  %v5102_v57 = vmul.f32 %v10699_v34, %v10668_v8 }
 0xa56   : > { %v5034_v5 = vpop.permute.xlu2 %5033 }
 0xa59   : > { %v4990_v37 = vpop.f32.mrf.mxu3 }
 0xa5a   : > { %v4991_v17 = vadd.f32 %v4990_v37, %v4942_v25  ;;  %v4899_v37 = vpop.f32.mrf.mxu1 }
 0xa5b   : > { %v4900_v62 = vadd.f32 %v4899_v37, %v4851_v29 }
 0xa5c   : > { %v5108_v27 = vmul.f32 %v5079_v56, %v4991_v17  ;;  %v4946_v56 = vpop.f32.mrf.mxu2  ;;  %v5044_v17 = vpop.permute.xlu1 %5043 }
 0xa5d   : > { %v4947_v59 = vadd.f32 %v4946_v56, %v4898_v28 }
 0xa5e   : > { %v5220_v39 = vadd.f32 %v5191_v30, %v5108_v27  ;;  %v4981_v30 = vadd.f32 %v4980_v22, %v4932_v14  ;;  %v10721_v22 = vpop.permute.xlu0 %5155  ;;  %v5100_v14 = vmul.f32 %v5039_v43, %v10652_v47  ;;  %v5099_v47 = vmul.f32 %v5034_v5, %v10650_v13 }
 0xa60   : > { %v5261_v36 = vsel %vm5224_vm13, %v5220_v39, 0.0  ;;  %v5104_v42 = vmul.f32 %v5059_v48, %v4981_v30  ;;  %v5103_v39 = vmul.f32 %v5054_v4, %v10678_v51 }
 0xa61   : > { %v4992_v44 = vpop.f32.mrf.mxu3  ;;  %5262 = vadd.xlane.f32.xlu2 %v5261_v36 }
 0xa62   : > { %v4993_v18 = vadd.f32 %v4992_v44, %v4944_v63  ;;  %v5216_v48 = vadd.f32 %v5171_v32, %v5104_v42  ;;  %v5105_v63 = vmul.f32 %v10695_v2, %v4983_v60 }
 0xa64   : > { %v5109_v21 = vmul.f32 %v10672_v61, %v4993_v18  ;;  %v4841_v61 = vadd.f32 %v10682_v3, %v10625_v49  ;;  %v5249_v3 = vsel %vm5224_vm13, %v5216_v48, 0.0  ;;  %v5217_v32 = vadd.f32 %v10703_v1, %v5105_v63  ;;  %v5029_v4 = vpop.permute.xlu1 %5028 }
 0xa65   : > { %v5098_v44 = vmul.f32 %v5029_v4, %v10648_v53 }
 0xa66   : > { %v5221_v25 = vadd.f32 %v10680_v46, %v5109_v21  ;;  %v4948_v46 = vpop.f32.mrf.mxu2  ;;  %v4890_v55 = vadd.f32 %v10685_v24, %v4841_v61  ;;  %v5215_v24 = vadd.f32 %v5166_v16, %v5103_v39  ;;  %v5141_v36 = vpop.permute.xlu0 %5140  ;;  %v5252_v31 = vsel %vm5224_vm13, %v5217_v32, 0.0 }
 0xa67   : > { %v4949_v38 = vadd.f32 %v4948_v46, %v4900_v62  ;;  %v5210_v16 = vadd.f32 %v5141_v36, %v5098_v44 }
 0xa68   : > { %v5264_v19 = vsel %vm5224_vm13, %v5221_v25, 0.0  ;;  %v5246_v56 = vsel %vm5224_vm13, %v5215_v24, 0.0  ;;  %v5101_v25 = vmul.f32 %v5044_v17, %v10658_v26 }
 0xa69   : > { %v4995_v54 = vpop.f32.mrf.mxu3  ;;  %5265 = vadd.xlane.f32.xlu2 %v5264_v19  ;;  %v5231_v28 = vsel %vm5224_vm13, %v5210_v16, 0.0  ;;  %v7031_v16 = vld [vmem:[%s10847_s12] sm:$0xff] }
 0xa6a   : > { %v4996_v6 = vadd.f32 %v4995_v54, %v4947_v59  ;;  %v5213_v34 = vadd.f32 %v10721_v22, %v5101_v25  ;;  %v5380_v25 = vld [vmem:[%s10849_s14 + $0x30] sm:$0xff] }
 0xa6c   : > { %v5110_v52 = vmul.f32 %v10662_v11, %v4996_v6  ;;  %v4939_v11 = vadd.f32 %v10693_v50, %v4890_v55  ;;  %v5146_v21 = vpop.permute.xlu1 %5145  ;;  %v5240_v59 = vsel %vm5224_vm13, %v5213_v34, 0.0  ;;  %v5381_v34 = vld [vmem:[%s10849_s14 + $0x38] sm:$0xff] }
 0xa6e   : > { %v5222_v27 = vadd.f32 %v10660_v33, %v5110_v52  ;;  %v4988_v51 = vadd.f32 %v10701_v12, %v4939_v11  ;;  %v5212_v12 = vadd.f32 %v5151_v58, %v5100_v14  ;;  %v5024_v18 = vpop.permute.xlu0 %5023 }
 0xa6f   : > { %v5097_v53 = vmul.f32 %v5024_v18, %v10646_v45  ;;  %v5214_v45 = vadd.f32 %v10710_v20, %v5102_v57  ;;  %v7033_v18 = vld [vmem:[%s10847_s12 + $0x10] sm:$0xff] }
 0xa70   : > { %v5267_v49 = vsel %vm5224_vm13, %v5222_v27, 0.0  ;;  %v5107_v1 = vmul.f32 %v10691_v41, %v4988_v51  ;;  %v5237_v43 = vsel %vm5224_vm13, %v5212_v12, 0.0 }
 0xa71   : > { %v4997_v35 = vpop.f32.mrf.mxu3  ;;  %5268 = vadd.xlane.f32.xlu0 %v5267_v49  ;;  %5250 = vadd.xlane.f32.xlu2 %v5249_v3  ;;  %v5243_v8 = vsel %vm5224_vm13, %v5214_v45, 0.0  ;;  %v5365_v45 = vld [vmem:[%s10848_s13 + $0x38] sm:$0xff] }
 0xa72   : > { %v4998_v9 = vadd.f32 %v4997_v35, %v4949_v38 }
 0xa74   : > { %v5111_v33 = vmul.f32 %v10654_v0, %v4998_v9  ;;  %v5019_v0 = vpop.permute.xlu2 %5018  ;;  %v5131_v37 = vpop.permute.xlu1 %5130 }
 0xa75   : > { %v5096_v29 = vmul.f32 %v5019_v0, %v10644_v23 }
 0xa76   : > { %v5223_v2 = vadd.f32 %v10674_v7, %v5111_v33  ;;  %v5219_v7 = vadd.f32 %v10689_v10, %v5107_v1  ;;  %v5211_v10 = vadd.f32 %v5146_v21, %v5099_v47 }
 0xa77   : > { %v5208_v20 = vadd.f32 %v5131_v37, %v5096_v29  ;;  %v5361_v37 = vld [vmem:[%s10848_s13 + $0x18] sm:$0xff] }
 0xa78   : > { %v5270_v50 = vsel %vm5224_vm13, %v5223_v2, 0.0  ;;  %v5258_v41 = vsel %vm5224_vm13, %v5219_v7, 0.0  ;;  %v5234_v13 = vsel %vm5224_vm13, %v5211_v10, 0.0  ;;  %v7032_v7 = vld [vmem:[%s10847_s12 + $0x8] sm:$0xff]  ;;  %v5364_v10 = vld [vmem:[%s10848_s13 + $0x30] sm:$0xff] }
 0xa79   : > { %5253 = vadd.xlane.f32.xlu0 %v5252_v31  ;;  %5247 = vadd.xlane.f32.xlu2 %v5246_v56  ;;  %v5225_v42 = vsel %vm5224_vm13, %v5208_v20, 0.0  ;;  %v5379_v20 = vld [vmem:[%s10849_s14 + $0x28] sm:$0xff] }
 0xa7a   : > { %5271 = vadd.xlane.f32.xlu1 %v5270_v50 }
 0xa7c   : > { %v5136_v30 = vpop.permute.xlu2 %5135 }
 0xa7d   : > { %v5209_v58 = vadd.f32 %v5136_v30, %v5097_v53  ;;  %v7034_v53 = vld [vmem:[%s10847_s12 + $0x18] sm:$0xff] }
 0xa7f   : > { %v5228_v15 = vsel %vm5224_vm13, %v5209_v58, 0.0  ;;  %v5363_v58 = vld [vmem:[%s10848_s13 + $0x28] sm:$0xff] }
 0xa81   : > { %5238 = vadd.xlane.f32.xlu0 %v5237_v43  ;;  %5232 = vadd.xlane.f32.xlu2 %v5231_v28 }
 0xa82   : > { %5259 = vadd.xlane.f32.xlu1 %v5258_v41 }
 0xa89   : > { %5235 = vadd.xlane.f32.xlu0 %v5234_v13  ;;  %5229 = vadd.xlane.f32.xlu2 %v5228_v15  ;;  %v5362_v15 = vld [vmem:[%s10848_s13 + $0x20] sm:$0xff] }
 0xa8a   : > { %5244 = vadd.xlane.f32.xlu1 %v5243_v8 }
 0xa92   : > { %5241 = vadd.xlane.f32.xlu1 %v5240_v59 }
 0xa9a   : > { %5226 = vadd.xlane.f32.xlu1 %v5225_v42 }
 0xac4   : > { %v5257_v54 = vpop.xlane.xlu0 %5256 }
 0xac5   : > { %v5283_v27 = vmul.f32 0.04, %v5257_v54 }
 0xad4   : > { %v5263_v19 = vpop.xlane.xlu2 %5262 }
 0xad5   : > { %v5285_v23 = vmul.f32 0.04, %v5263_v19 }
 0xadc   : > { %v5266_v26 = vpop.xlane.xlu2 %5265 }
 0xadd   : > { %v5286_v46 = vmul.f32 0.04, %v5266_v26  ;;  %v5360_v26 = vld [vmem:[%s10848_s13 + $0x10] sm:$0xff] }
 0xadf   : > { %v5303_v52 = vpack.c.bf16 %v5286_v46, %v5285_v23  ;;  %v5377_v46 = vld [vmem:[%s10849_s14 + $0x18] sm:$0xff]  ;;  %v5358_v23 = vld [vmem:[%s10848_s13] sm:$0xff] }
 0xae4   : > { %v5269_v40 = vpop.xlane.xlu0 %5268  ;;  %v5251_v6 = vpop.xlane.xlu2 %5250 }
 0xae5   : > { %v5287_v62 = vmul.f32 0.04, %v5269_v40  ;;  %v5281_v63 = vmul.f32 0.04, %v5251_v6  ;;  %v5378_v40 = vld [vmem:[%s10849_s14 + $0x20] sm:$0xff] }
 0xaec   : > { %v5254_v60 = vpop.xlane.xlu0 %5253  ;;  %v5248_v55 = vpop.xlane.xlu2 %5247 }
 0xaed   : > { %v5272_v61 = vpop.xlane.xlu1 %5271  ;;  %v5282_v38 = vmul.f32 0.04, %v5254_v60  ;;  %v5280_v9 = vmul.f32 0.04, %v5248_v55  ;;  %v5375_v55 = vld [vmem:[%s10849_s14 + $0x8] sm:$0xff] }
 0xaee   : > { %v5288_v17 = vmul.f32 0.04, %v5272_v61 }
 0xaef   : > { %v5301_v3 = vpack.c.bf16 %v5282_v38, %v5281_v63  ;;  %v5374_v63 = vld [vmem:[%s10849_s14] sm:$0xff] }
 0xaf0   : > { %v5304_v22 = vpack.c.bf16 %v5288_v17, %v5287_v62  ;;  %v5359_v17 = vld [vmem:[%s10848_s13 + $0x8] sm:$0xff] }
 0xaf2   : > { %5329 = vmatpush.bf16.msra.mxu0 %v5304_v22 }
 0xaf4   : > { %v5239_v49 = vpop.xlane.xlu0 %5238  ;;  %v5233_v32 = vpop.xlane.xlu2 %5232 }
 0xaf5   : > { %v5260_v48 = vpop.xlane.xlu1 %5259  ;;  %v5277_v51 = vmul.f32 0.04, %v5239_v49  ;;  %v5275_v14 = vmul.f32 0.04, %v5233_v32 }
 0xaf6   : > { %v5284_v5 = vmul.f32 0.04, %v5260_v48  ;;  %5330 = vmatpush.bf16.msra.mxu0 %v5303_v52  ;;  %v5376_v52 = vld [vmem:[%s10849_s14 + $0x10] sm:$0xff] }
 0xaf8   : > { %v5302_v39 = vpack.c.bf16 %v5284_v5, %v5283_v27 }
 0xafa   : > { %5331 = vmatpush.bf16.msra.mxu0 %v5302_v39 }
 0xafc   : > { %v5236_v24 = vpop.xlane.xlu0 %5235  ;;  %v5230_v31 = vpop.xlane.xlu2 %5229 }
 0xafd   : > { %v5245_v35 = vpop.xlane.xlu1 %5244  ;;  %v5276_v2 = vmul.f32 0.04, %v5236_v24  ;;  %v5274_v0 = vmul.f32 0.04, %v5230_v31 }
 0xafe   : > { %v5279_v11 = vmul.f32 0.04, %v5245_v35  ;;  %5332 = vmatpush.bf16.msra.mxu0 %v5301_v3 }
 0xaff   : > { %v5298_v56 = vpack.c.bf16 %v5276_v2, %v5275_v14 }
 0xb00   : > { %v5300_v33 = vpack.c.bf16 %v5280_v9, %v5279_v11  ;;  %v5390_v11 = vld [vmem:[%s10956_s27] sm:$0x1] }
 0xb02   : > { %5333 = vmatpush.bf16.msra.mxu0 %v5300_v33  ;;  %v5395_v33 = vld [vmem:[%s10957_s17] sm:$0x3] }
 0xb05   : > { %v5242_v36 = vpop.xlane.xlu1 %5241 }
 0xb06   : > { %v5278_v4 = vmul.f32 0.04, %v5242_v36 }
 0xb08   : > { %v5299_v44 = vpack.c.bf16 %v5278_v4, %v5277_v51 }
 0xb0a   : > { %5334 = vmatpush.bf16.msra.mxu0 %v5299_v44 }
 0xb0d   : > { %v5227_v50 = vpop.xlane.xlu1 %5226 }
 0xb0e   : > { %v5273_v1 = vmul.f32 0.04, %v5227_v50  ;;  %5335 = vmatpush.bf16.msra.mxu0 %v5298_v56 }
 0xb10   : > { %v5297_v12 = vpack.c.bf16 %v5274_v0, %v5273_v1 }
 0xb12   : > { %5336 = vmatpush.bf16.msra.mxu0 %v5297_v12 }
 0xb15   : > { %5337 = vmatmul.bf16.vlgmr.msra.gmra.mxu0 %v7031_v16 }
 0xb25   : > { %5342 = vmatmul.bf16.gmra.mxu0 %v7032_v7 }
 0xb35   : > { %5347 = vmatmul.bf16.gmra.mxu0 %v7033_v18 }
 0xb45   : > { %5352 = vmatmul.bf16.gmra.mxu0 %v7034_v53 }
 0xb92   : > { %v5338_v47 = vpop.f32.mrf.mxu0 }
 0xb93   : > { %v5366_v38 = vmul.f32 %v5358_v23, %v5338_v47 }
 0xb95   : > { %v5382_v35 = vadd.f32 %v5374_v63, %v5366_v38 }
 0xb9a   : > { %v5340_v43 = vpop.f32.mrf.mxu0 }
 0xb9b   : > { %v5367_v48 = vmul.f32 %v5359_v17, %v5340_v43 }
 0xb9d   : > { %v5383_v49 = vadd.f32 %v5375_v55, %v5367_v48 }
 0xb9f   : > { %v5391_v9 = vpack.c.bf16 %v5383_v49, %v5382_v35 }
 0xba2   : > { %v5343_v28 = vpop.f32.mrf.mxu0 }
 0xba3   : > { %v5368_v22 = vmul.f32 %v5360_v26, %v5343_v28 }
 0xba5   : > { %v5384_v39 = vadd.f32 %v5376_v52, %v5368_v22 }
 0xbaa   : > { %v5345_v57 = vpop.f32.mrf.mxu0 }
 0xbab   : > { %v5369_v6 = vmul.f32 %v5361_v37, %v5345_v57 }
 0xbad   : > { %v5385_v27 = vadd.f32 %v5377_v46, %v5369_v6 }
 0xbaf   : > { %v5392_v3 = vpack.c.bf16 %v5385_v27, %v5384_v39 }
 0xbb2   : > { %v5348_v41 = vpop.f32.mrf.mxu0 }
 0xbb3   : > { %v5370_v42 = vmul.f32 %v5362_v15, %v5348_v41 }
 0xbb5   : > { %v5386_v60 = vadd.f32 %v5378_v40, %v5370_v42 }
 0xbba   : > { %v5350_v30 = vpop.f32.mrf.mxu0 }
 0xbbb   : > { %v5371_v29 = vmul.f32 %v5363_v58, %v5350_v30 }
 0xbbd   : > { %v5387_v61 = vadd.f32 %v5379_v20, %v5371_v29 }
 0xbbf   : > { %v5393_v5 = vpack.c.bf16 %v5387_v61, %v5386_v60 }
 0xbc2   : > { %v5353_v21 = vpop.f32.mrf.mxu0 }
 0xbc3   : > { %v5372_v13 = vmul.f32 %v5364_v10, %v5353_v21 }
 0xbc5   : > { %v5388_v19 = vadd.f32 %v5380_v25, %v5372_v13 }
 0xbca   : > { %v5355_v8 = vpop.f32.mrf.mxu0 }
 0xbcb   : > { %v5373_v59 = vmul.f32 %v5365_v45, %v5355_v8 }
 0xbcd   : > { %v5389_v54 = vadd.f32 %v5381_v34, %v5373_v59 }
 0xbcf   : > { %v5394_v62 = vpack.c.bf16 %v5389_v54, %v5388_v19 }
 0xbd1   : > { %5403 = vmatpush.bf16.msra.mxu1 %v5394_v62 }
 0xbd5   : > { %5404 = vmatpush.bf16.msra.mxu1 %v5393_v5 }
 0xbd9   : > { %5405 = vmatpush.bf16.msra.mxu1 %v5392_v3 }
 0xbdd   : > { %5406 = vmatpush.bf16.msra.mxu1 %v5391_v9 }
 0xbe0   : > { %6767 = vmatmul.msk.bf16.vlgmr.msra.gmra.mxu1 %vm4730_vm12, %v5390_v11 }
 0xc5d   : > { %v5408_v32 = vpop.f32.mrf.mxu1 }
 0xc5e   : > { %v5409_v24 = vadd.f32 %v5408_v32, %v5395_v33 }
 0xc60   : > { %5413 = vst.msk [vmem:[%s546_s30] sm:$0x3] %vm5412_vm14, %v5409_v24 }
 0xc65   : > { %v5410_v36 = vpop.f32.mrf.mxu1 }
 0xc66 PF: > { %s10959_s18 = sld [smem:[#allocation2_spill]] }
 0xc6c   : > { %s27_s24 = sadd.s32 1, %s10959_s18  }
 0xc6d   : > { %p24_p4 = scmp.ge.s32.totalorder %s27_s24, 4  }
 0xc6f   :  { %26 = sbr.rel (!%p24_p4) target bundleno = 9 (0x9), region = 124 }

</bundles_post_ra>
